<compile_context>
chip_gen: v7x
topology: tpu7x:2x2x1
jax: 0.10.0
libtpu: 0.0.40
codegen_flags: <defaults>
</compile_context>

<pallas_src>
import jax
import jax.numpy as jnp
import numpy as np
from jax.experimental import pallas as pl
from jax.experimental.pallas import tpu as pltpu


# ----------------------------------------------------------------------------
# Fused model kernel
# ----------------------------------------------------------------------------
def make_model_kernel(T, B, H, n_layers):
    """Whole-model kernel: BiLSTM stack + Linear/ReLU/FC head, everything resident in VMEM.

    Weight layout (prepared by the wrapper, gate order already permuted to [i, f, o, g]):
      wih : (Din, 8H)   columns 0:4H fwd gates, 4H:8H bwd gates
      whh : (2H, 4H)    rows 0:H = Whh_fwd^T, rows H:2H = Whh_bwd^T  (block-stacked)
      b   : (1, 8H)     b_ih + b_hh, fwd | bwd
    """

    def kernel(*args):
        x_ref = args[0]                                    # (T*B, Din) time-major, lane-padded
        layer_refs = args[1:1 + 3 * n_layers]
        w1_ref, b1_ref, w2_ref, b2_ref, out_ref, hs_ref = args[1 + 3 * n_layers:]

        # f32 block-diagonal mask: rows 0:B keep cols 0:H (fwd), rows B:2B keep cols H:2H (bwd).
        row = jax.lax.broadcasted_iota(jnp.int32, (2 * B, 2 * H), 0)
        col = jax.lax.broadcasted_iota(jnp.int32, (2 * B, 2 * H), 1)
        maskf = (((row < B) & (col < H)) | ((row >= B) & (col >= H))).astype(jnp.float32)

        x2d = x_ref[...]                                   # layer input, (T*B, Din)
        for l in range(n_layers):
            wih_ref, whh_ref, b_ref = layer_refs[3 * l:3 * l + 3]

            # Hoisted input projection: all timesteps, both directions, one MXU matmul.
            G = (jnp.dot(x2d, wih_ref[...], preferred_element_type=jnp.float32)
                 + b_ref[...])                             # (T*B, 8H)
            whh = whh_ref[...]                             # (2H, 4H)

            # Hoisted per-step gate shuffle (once per layer, off the recurrent latency chain):
            # gx_all[t] rows 0:B = fwd x-gates at time t, rows B:2B = bwd x-gates at time T-1-t.
            gx_all = jnp.concatenate(
                [jnp.concatenate([G[t * B:(t + 1) * B, 0:4 * H],
                                  G[(T - 1 - t) * B:(T - t) * B, 4 * H:8 * H]], axis=0)
                 for t in range(T)], axis=0).reshape(T, 2 * B, 4 * H)

            hd = jnp.zeros((2 * B, 2 * H), jnp.float32)    # block-diagonal packed hidden state
            c = jnp.zeros((2 * B, H), jnp.float32)

            # T is small & static: fully unrolled, every index static.
            for t in range(T):
                gates = gx_all[t] + jnp.dot(hd, whh,
                                            preferred_element_type=jnp.float32)   # (2B, 4H)
                # Gate order [i, f, o | g]: one sigmoid over 3H lanes, one tanh over H lanes.
                sig = jax.nn.sigmoid(gates[:, 0:3 * H])
                g_g = jnp.tanh(gates[:, 3 * H:4 * H])
                c = sig[:, H:2 * H] * c + sig[:, 0:H] * g_g
                h_new = sig[:, 2 * H:3 * H] * jnp.tanh(c)                          # (2B, H)
                # Re-pack block-diagonally: lane-dup + precomputed mask multiply (no vselect).
                hd = jnp.concatenate([h_new, h_new], axis=1) * maskf

                # Stream per-step outputs into VMEM scratch (independent of the recurrence,
                # so these masked stores hide under the next step's recurrent matmul).
                hs_ref[t * B:(t + 1) * B, 0:H] = h_new[0:B]                 # h_fwd(t)
                hs_ref[(T - 1 - t) * B:(T - t) * B, H:2 * H] = h_new[B:2 * B]  # h_bwd(T-1-t)

            if l + 1 < n_layers:
                # Bidirectional output, time-major: rows t*B:(t+1)*B = [h_fwd(t) | h_bwd(t)].
                x2d = hs_ref[...]                          # (T*B, 2H)

        # lstm_out[-1] = [h_fwd(T-1) | h_bwd(T-1)], then Linear -> ReLU -> Linear head.
        last = hs_ref[(T - 1) * B:T * B, :]                # (B, 2H)
        hh = jnp.dot(last, w1_ref[...], preferred_element_type=jnp.float32) + b1_ref[...]
        hh = jnp.maximum(hh, 0.0)
        out = jnp.dot(hh, w2_ref[...], preferred_element_type=jnp.float32) + b2_ref[...]
        out_ref[...] = out.astype(out_ref.dtype)

    return kernel


# ----------------------------------------------------------------------------
# Wrapper: embedding (XLA gather) -> single fused pallas_call
# ----------------------------------------------------------------------------
def _reorder_gates(w, axis):
    """PyTorch gate order [i, f, g, o] -> kernel order [i, f, o, g] along `axis` (size 4H)."""
    i_, f_, g_, o_ = jnp.split(w, 4, axis=axis)
    return jnp.concatenate([i_, f_, o_, g_], axis=axis)


@jax.jit
def model_forward(token_ids, params):
    B, T = token_ids.shape
    emb = jnp.take(params["embedding"], token_ids, axis=0)          # (B, T, E)
    E = emb.shape[-1]
    x2d = jnp.transpose(emb, (1, 0, 2)).reshape(T * B, E)           # time-major, flattened
    # Pad the embedding (lane) dim to a multiple of 128 for an aligned first-layer projection.
    E_pad = ((E + 127) // 128) * 128
    if E_pad != E:
        x2d = jnp.pad(x2d, ((0, 0), (0, E_pad - E)))

    H = params["lstm"][0]["fwd"][1].shape[1]
    n_layers = len(params["lstm"])
    L = params["w1"].shape[0]
    C = params["w2"].shape[0]

    inputs = [x2d]
    for l, layer in enumerate(params["lstm"]):
        wih_f, whh_f, b_f = layer["fwd"]
        wih_b, whh_b, b_b = layer["bwd"]
        wih = jnp.concatenate([_reorder_gates(wih_f, 0).T,
                               _reorder_gates(wih_b, 0).T], axis=1)       # (Din, 8H)
        if l == 0 and E_pad != E:
            wih = jnp.pad(wih, ((0, E_pad - E), (0, 0)))                  # zero rows: no-op math
        whh = jnp.concatenate([_reorder_gates(whh_f, 0).T,
                               _reorder_gates(whh_b, 0).T], axis=0)       # (2H, 4H)
        b = jnp.concatenate([_reorder_gates(b_f, 0),
                             _reorder_gates(b_b, 0)]).reshape(1, 8 * H)   # (1, 8H)
        inputs += [wih, whh, b]
    inputs += [params["w1"].T, params["b1"].reshape(1, L),
               params["w2"].T, params["b2"].reshape(1, C)]

    vmem = pl.BlockSpec(memory_space=pltpu.MemorySpace.VMEM)
    return pl.pallas_call(
        make_model_kernel(T, B, H, n_layers),
        out_shape=jax.ShapeDtypeStruct((B, C), jnp.float32),
        in_specs=[vmem] * len(inputs),
        out_specs=vmem,
        scratch_shapes=[pltpu.VMEM((T * B, 2 * H), jnp.float32)],   # per-layer BiLSTM outputs
    )(*inputs)


# ----------------------------------------------------------------------------
# Pure-JAX reference for verification (uses raw PyTorch-order weights)
# ----------------------------------------------------------------------------
def lstm_layer_ref(x_seq, wih, whh, bias):
    H = whh.shape[1]
    B = x_seq.shape[1]

    def step(carry, x_t):
        h, c = carry
        gates = x_t @ wih.T + h @ whh.T + bias
        i = jax.nn.sigmoid(gates[:, 0 * H:1 * H])
        f = jax.nn.sigmoid(gates[:, 1 * H:2 * H])
        g = jnp.tanh(gates[:, 2 * H:3 * H])
        o = jax.nn.sigmoid(gates[:, 3 * H:4 * H])
        c = f * c + i * g
        h = o * jnp.tanh(c)
        return (h, c), h

    init = (jnp.zeros((B, H), jnp.float32), jnp.zeros((B, H), jnp.float32))
    _, hs = jax.lax.scan(step, init, x_seq)
    return hs


def model_forward_ref(token_ids, params):
    emb = jnp.take(params["embedding"], token_ids, axis=0)
    x = jnp.transpose(emb, (1, 0, 2))
    for layer in params["lstm"]:
        h_fwd = lstm_layer_ref(x, *layer["fwd"])
        h_bwd = lstm_layer_ref(x[::-1], *layer["bwd"])[::-1]
        x = jnp.concatenate([h_fwd, h_bwd], axis=-1)
    last = x[-1]
    h = jnp.maximum(last @ params["w1"].T + params["b1"], 0.0)
    return h @ params["w2"].T + params["b2"]


# ----------------------------------------------------------------------------
# Deterministic parameter init (shapes follow the nn.Module __init__)
# ----------------------------------------------------------------------------
def make_params(key, n_word, embed_dim, hidden_dim, linear_dim, labels, n_layers):
    keys = iter(jax.random.split(key, 64))
    scale = 1.0 / np.sqrt(hidden_dim)

    def unif(k, shape):
        return jax.random.uniform(k, shape, jnp.float32, -scale, scale)

    params = {
        "embedding": jax.random.normal(next(keys), (n_word, embed_dim), jnp.float32) * 0.1,
        "lstm": [],
    }
    for layer in range(n_layers):
        in_dim = embed_dim if layer == 0 else 2 * hidden_dim
        layer_p = {}
        for direction in ("fwd", "bwd"):
            wih = unif(next(keys), (4 * hidden_dim, in_dim))
            whh = unif(next(keys), (4 * hidden_dim, hidden_dim))
            b_ih = unif(next(keys), (4 * hidden_dim,))
            b_hh = unif(next(keys), (4 * hidden_dim,))
            layer_p[direction] = (wih, whh, b_ih + b_hh)   # PyTorch adds b_ih + b_hh
        params["lstm"].append(layer_p)

    params["w1"] = unif(next(keys), (linear_dim, 2 * hidden_dim))
    params["b1"] = unif(next(keys), (linear_dim,))
    params["w2"] = unif(next(keys), (labels, linear_dim))
    params["b2"] = unif(next(keys), (labels,))
    return params


if __name__ == "__main__":
    # Small shapes consistent with the module's forward.
    n_word, embed_dim = 50, 100     # nn.Embedding(n_word, 100) => embed_dim must be 100
    hidden_dim, linear_dim = 32, 64
    labels, n_layers = 4, 2
    batch, seq = 8, 8               # batch=8 -> recurrent operand has 2B=16 rows (sublane-aligned)

    key = jax.random.PRNGKey(0)
    k_tok, k_par = jax.random.split(key)
    token_ids = jax.random.randint(k_tok, (batch, seq), 0, n_word, jnp.int32)
    params = make_params(k_par, n_word, embed_dim, hidden_dim, linear_dim, labels, n_layers)

    out = jax.block_until_ready(model_forward(token_ids, params))
    ref = jax.block_until_ready(model_forward_ref(token_ids, params))

    assert out.shape == (batch, labels), out.shape
    np.testing.assert_allclose(np.asarray(out), np.asarray(ref), rtol=1e-2, atol=1e-2)
    print("KERNEL_OK")
</pallas_src>

<mosaic_0001>
module attributes {stable_mosaic.version = 11 : i64} {
  func.func @kernel(%arg0: memref<64x128xf32, #tpu.memory_space<vmem>>, %arg1: memref<128x256xf32, #tpu.memory_space<vmem>>, %arg2: memref<64x128xf32, #tpu.memory_space<vmem>>, %arg3: memref<1x256xf32, #tpu.memory_space<vmem>>, %arg4: memref<64x256xf32, #tpu.memory_space<vmem>>, %arg5: memref<64x128xf32, #tpu.memory_space<vmem>>, %arg6: memref<1x256xf32, #tpu.memory_space<vmem>>, %arg7: memref<64x64xf32, #tpu.memory_space<vmem>>, %arg8: memref<1x64xf32, #tpu.memory_space<vmem>>, %arg9: memref<64x4xf32, #tpu.memory_space<vmem>>, %arg10: memref<1x4xf32, #tpu.memory_space<vmem>>, %arg11: memref<8x4xf32, #tpu.memory_space<vmem>>, %arg12: memref<64x64xf32, #tpu.memory_space<vmem>>) attributes {dimension_semantics = [], scalar_prefetch = 0 : i64, scratch_operands = 1 : i64, tpu.core_type = #tpu.core_type<tc>} {
    %0 = tpu.iota {dimensions = array<i32: 0>} : vector<16x64xi32>
    %1 = tpu.iota {dimensions = array<i32: 1>} : vector<16x64xi32>
    %c8_i32 = arith.constant 8 : i32
    %2 = vector.broadcast %c8_i32 : i32 to vector<16x64xi32>
    %3 = arith.cmpi slt, %0, %2 : vector<16x64xi32>
    %c32_i32 = arith.constant 32 : i32
    %4 = vector.broadcast %c32_i32 : i32 to vector<16x64xi32>
    %5 = arith.cmpi slt, %1, %4 : vector<16x64xi32>
    %6 = arith.andi %3, %5 : vector<16x64xi1>
    %c8_i32_0 = arith.constant 8 : i32
    %7 = vector.broadcast %c8_i32_0 : i32 to vector<16x64xi32>
    %8 = arith.cmpi sge, %0, %7 : vector<16x64xi32>
    %c32_i32_1 = arith.constant 32 : i32
    %9 = vector.broadcast %c32_i32_1 : i32 to vector<16x64xi32>
    %10 = arith.cmpi sge, %1, %9 : vector<16x64xi32>
    %11 = arith.andi %8, %10 : vector<16x64xi1>
    %12 = arith.ori %6, %11 : vector<16x64xi1>
    %13 = arith.extui %12 : vector<16x64xi1> to vector<16x64xi32>
    %14 = arith.sitofp %13 : vector<16x64xi32> to vector<16x64xf32>
    %c0 = arith.constant 0 : index
    %c0_2 = arith.constant 0 : index
    %15 = vector.load %arg0[%c0, %c0_2] : memref<64x128xf32, #tpu.memory_space<vmem>>, vector<64x128xf32>
    %c0_3 = arith.constant 0 : index
    %c0_4 = arith.constant 0 : index
    %16 = vector.load %arg1[%c0_3, %c0_4] : memref<128x256xf32, #tpu.memory_space<vmem>>, vector<128x256xf32>
    %cst = arith.constant dense<0.000000e+00> : vector<64x256xf32>
    %17 = tpu.matmul %15, %16, %cst {dimension_numbers = #tpu.dot_dimension_numbers<[1], [0], [0], [1], [0, 0, 1, 1], [], []>} : vector<64x128xf32>, vector<128x256xf32>, vector<64x256xf32> -> vector<64x256xf32>
    %c0_5 = arith.constant 0 : index
    %c0_6 = arith.constant 0 : index
    %18 = vector.load %arg3[%c0_5, %c0_6] : memref<1x256xf32, #tpu.memory_space<vmem>>, vector<1x256xf32>
    %19 = vector.broadcast %18 : vector<1x256xf32> to vector<64x256xf32>
    %20 = arith.addf %17, %19 : vector<64x256xf32>
    %c0_7 = arith.constant 0 : index
    %c0_8 = arith.constant 0 : index
    %21 = vector.load %arg2[%c0_7, %c0_8] : memref<64x128xf32, #tpu.memory_space<vmem>>, vector<64x128xf32>
    %22 = vector.extract_strided_slice %20 {offsets = [0, 0], sizes = [8, 128], strides = [1, 1]} : vector<64x256xf32> to vector<8x128xf32>
    %23 = vector.extract_strided_slice %20 {offsets = [56, 128], sizes = [8, 128], strides = [1, 1]} : vector<64x256xf32> to vector<8x128xf32>
    %24 = tpu.concatenate %22, %23 in 0 : vector<8x128xf32>, vector<8x128xf32> -> vector<16x128xf32>
    %25 = vector.extract_strided_slice %20 {offsets = [8, 0], sizes = [8, 128], strides = [1, 1]} : vector<64x256xf32> to vector<8x128xf32>
    %26 = vector.extract_strided_slice %20 {offsets = [48, 128], sizes = [8, 128], strides = [1, 1]} : vector<64x256xf32> to vector<8x128xf32>
    %27 = tpu.concatenate %25, %26 in 0 : vector<8x128xf32>, vector<8x128xf32> -> vector<16x128xf32>
    %28 = vector.extract_strided_slice %20 {offsets = [16, 0], sizes = [8, 128], strides = [1, 1]} : vector<64x256xf32> to vector<8x128xf32>
    %29 = vector.extract_strided_slice %20 {offsets = [40, 128], sizes = [8, 128], strides = [1, 1]} : vector<64x256xf32> to vector<8x128xf32>
    %30 = tpu.concatenate %28, %29 in 0 : vector<8x128xf32>, vector<8x128xf32> -> vector<16x128xf32>
    %31 = vector.extract_strided_slice %20 {offsets = [24, 0], sizes = [8, 128], strides = [1, 1]} : vector<64x256xf32> to vector<8x128xf32>
    %32 = vector.extract_strided_slice %20 {offsets = [32, 128], sizes = [8, 128], strides = [1, 1]} : vector<64x256xf32> to vector<8x128xf32>
    %33 = tpu.concatenate %31, %32 in 0 : vector<8x128xf32>, vector<8x128xf32> -> vector<16x128xf32>
    %34 = vector.extract_strided_slice %20 {offsets = [32, 0], sizes = [8, 128], strides = [1, 1]} : vector<64x256xf32> to vector<8x128xf32>
    %35 = vector.extract_strided_slice %20 {offsets = [24, 128], sizes = [8, 128], strides = [1, 1]} : vector<64x256xf32> to vector<8x128xf32>
    %36 = tpu.concatenate %34, %35 in 0 : vector<8x128xf32>, vector<8x128xf32> -> vector<16x128xf32>
    %37 = vector.extract_strided_slice %20 {offsets = [40, 0], sizes = [8, 128], strides = [1, 1]} : vector<64x256xf32> to vector<8x128xf32>
    %38 = vector.extract_strided_slice %20 {offsets = [16, 128], sizes = [8, 128], strides = [1, 1]} : vector<64x256xf32> to vector<8x128xf32>
    %39 = tpu.concatenate %37, %38 in 0 : vector<8x128xf32>, vector<8x128xf32> -> vector<16x128xf32>
    %40 = vector.extract_strided_slice %20 {offsets = [48, 0], sizes = [8, 128], strides = [1, 1]} : vector<64x256xf32> to vector<8x128xf32>
    %41 = vector.extract_strided_slice %20 {offsets = [8, 128], sizes = [8, 128], strides = [1, 1]} : vector<64x256xf32> to vector<8x128xf32>
    %42 = tpu.concatenate %40, %41 in 0 : vector<8x128xf32>, vector<8x128xf32> -> vector<16x128xf32>
    %43 = vector.extract_strided_slice %20 {offsets = [56, 0], sizes = [8, 128], strides = [1, 1]} : vector<64x256xf32> to vector<8x128xf32>
    %44 = vector.extract_strided_slice %20 {offsets = [0, 128], sizes = [8, 128], strides = [1, 1]} : vector<64x256xf32> to vector<8x128xf32>
    %45 = tpu.concatenate %43, %44 in 0 : vector<8x128xf32>, vector<8x128xf32> -> vector<16x128xf32>
    %46 = tpu.concatenate %24, %27, %30, %33, %36, %39, %42, %45 in 0 : vector<16x128xf32>, vector<16x128xf32>, vector<16x128xf32>, vector<16x128xf32>, vector<16x128xf32>, vector<16x128xf32>, vector<16x128xf32>, vector<16x128xf32> -> vector<128x128xf32>
    %47 = vector.shape_cast %46 : vector<128x128xf32> to vector<8x16x128xf32>
    %cst_9 = arith.constant 0.000000e+00 : f32
    %48 = vector.broadcast %cst_9 : f32 to vector<16x64xf32>
    %cst_10 = arith.constant 0.000000e+00 : f32
    %49 = vector.broadcast %cst_10 : f32 to vector<16x32xf32>
    %50 = vector.extract_strided_slice %47 {offsets = [0, 0, 0], sizes = [1, 16, 128], strides = [1, 1, 1]} : vector<8x16x128xf32> to vector<1x16x128xf32>
    %51 = vector.shape_cast %50 : vector<1x16x128xf32> to vector<16x128xf32>
    %cst_11 = arith.constant dense<0.000000e+00> : vector<16x128xf32>
    %52 = tpu.matmul %48, %21, %cst_11 {dimension_numbers = #tpu.dot_dimension_numbers<[1], [0], [0], [1], [0, 0, 1, 1], [], []>} : vector<16x64xf32>, vector<64x128xf32>, vector<16x128xf32> -> vector<16x128xf32>
    %53 = arith.addf %51, %52 : vector<16x128xf32>
    %54 = vector.extract_strided_slice %53 {offsets = [0, 0], sizes = [16, 96], strides = [1, 1]} : vector<16x128xf32> to vector<16x96xf32>
    %55 = arith.negf %54 : vector<16x96xf32>
    %56 = math.exp %55 : vector<16x96xf32>
    %cst_12 = arith.constant 1.000000e+00 : f32
    %57 = vector.broadcast %cst_12 : f32 to vector<16x96xf32>
    %58 = arith.addf %57, %56 : vector<16x96xf32>
    %59 = arith.divf %57, %58 : vector<16x96xf32>
    %60 = vector.extract_strided_slice %53 {offsets = [0, 96], sizes = [16, 32], strides = [1, 1]} : vector<16x128xf32> to vector<16x32xf32>
    %61 = math.tanh %60 : vector<16x32xf32>
    %62 = vector.extract_strided_slice %59 {offsets = [0, 32], sizes = [16, 32], strides = [1, 1]} : vector<16x96xf32> to vector<16x32xf32>
    %63 = arith.mulf %62, %49 : vector<16x32xf32>
    %64 = vector.extract_strided_slice %59 {offsets = [0, 0], sizes = [16, 32], strides = [1, 1]} : vector<16x96xf32> to vector<16x32xf32>
    %65 = arith.mulf %64, %61 : vector<16x32xf32>
    %66 = arith.addf %63, %65 : vector<16x32xf32>
    %67 = vector.extract_strided_slice %59 {offsets = [0, 64], sizes = [16, 32], strides = [1, 1]} : vector<16x96xf32> to vector<16x32xf32>
    %68 = math.tanh %66 : vector<16x32xf32>
    %69 = arith.mulf %67, %68 : vector<16x32xf32>
    %70 = tpu.concatenate %69, %69 in 1 : vector<16x32xf32>, vector<16x32xf32> -> vector<16x64xf32>
    %71 = arith.mulf %70, %14 : vector<16x64xf32>
    %72 = vector.extract_strided_slice %69 {offsets = [0, 0], sizes = [8, 32], strides = [1, 1]} : vector<16x32xf32> to vector<8x32xf32>
    %c0_13 = arith.constant 0 : index
    %c0_14 = arith.constant 0 : index
    %73 = vector.load %arg12[%c0_13, %c0_14] : memref<64x64xf32, #tpu.memory_space<vmem>>, vector<8x32xf32>
    tpu.vector_store %arg12[%c0_13, %c0_14], %72 {strides = array<i32>} : memref<64x64xf32, #tpu.memory_space<vmem>>, vector<8x32xf32>,
    %74 = vector.extract_strided_slice %69 {offsets = [8, 0], sizes = [8, 32], strides = [1, 1]} : vector<16x32xf32> to vector<8x32xf32>
    %c56 = arith.constant 56 : index
    %c32 = arith.constant 32 : index
    %75 = vector.load %arg12[%c56, %c32] : memref<64x64xf32, #tpu.memory_space<vmem>>, vector<8x32xf32>
    tpu.vector_store %arg12[%c56, %c32], %74 {strides = array<i32>} : memref<64x64xf32, #tpu.memory_space<vmem>>, vector<8x32xf32>,
    %76 = vector.extract_strided_slice %47 {offsets = [1, 0, 0], sizes = [1, 16, 128], strides = [1, 1, 1]} : vector<8x16x128xf32> to vector<1x16x128xf32>
    %77 = vector.shape_cast %76 : vector<1x16x128xf32> to vector<16x128xf32>
    %cst_15 = arith.constant dense<0.000000e+00> : vector<16x128xf32>
    %78 = tpu.matmul %71, %21, %cst_15 {dimension_numbers = #tpu.dot_dimension_numbers<[1], [0], [0], [1], [0, 0, 1, 1], [], []>} : vector<16x64xf32>, vector<64x128xf32>, vector<16x128xf32> -> vector<16x128xf32>
    %79 = arith.addf %77, %78 : vector<16x128xf32>
    %80 = vector.extract_strided_slice %79 {offsets = [0, 0], sizes = [16, 96], strides = [1, 1]} : vector<16x128xf32> to vector<16x96xf32>
    %81 = arith.negf %80 : vector<16x96xf32>
    %82 = math.exp %81 : vector<16x96xf32>
    %cst_16 = arith.constant 1.000000e+00 : f32
    %83 = vector.broadcast %cst_16 : f32 to vector<16x96xf32>
    %84 = arith.addf %83, %82 : vector<16x96xf32>
    %85 = arith.divf %83, %84 : vector<16x96xf32>
    %86 = vector.extract_strided_slice %79 {offsets = [0, 96], sizes = [16, 32], strides = [1, 1]} : vector<16x128xf32> to vector<16x32xf32>
    %87 = math.tanh %86 : vector<16x32xf32>
    %88 = vector.extract_strided_slice %85 {offsets = [0, 32], sizes = [16, 32], strides = [1, 1]} : vector<16x96xf32> to vector<16x32xf32>
    %89 = arith.mulf %88, %66 : vector<16x32xf32>
    %90 = vector.extract_strided_slice %85 {offsets = [0, 0], sizes = [16, 32], strides = [1, 1]} : vector<16x96xf32> to vector<16x32xf32>
    %91 = arith.mulf %90, %87 : vector<16x32xf32>
    %92 = arith.addf %89, %91 : vector<16x32xf32>
    %93 = vector.extract_strided_slice %85 {offsets = [0, 64], sizes = [16, 32], strides = [1, 1]} : vector<16x96xf32> to vector<16x32xf32>
    %94 = math.tanh %92 : vector<16x32xf32>
    %95 = arith.mulf %93, %94 : vector<16x32xf32>
    %96 = tpu.concatenate %95, %95 in 1 : vector<16x32xf32>, vector<16x32xf32> -> vector<16x64xf32>
    %97 = arith.mulf %96, %14 : vector<16x64xf32>
    %98 = vector.extract_strided_slice %95 {offsets = [0, 0], sizes = [8, 32], strides = [1, 1]} : vector<16x32xf32> to vector<8x32xf32>
    %c8 = arith.constant 8 : index
    %c0_17 = arith.constant 0 : index
    %99 = vector.load %arg12[%c8, %c0_17] : memref<64x64xf32, #tpu.memory_space<vmem>>, vector<8x32xf32>
    tpu.vector_store %arg12[%c8, %c0_17], %98 {strides = array<i32>} : memref<64x64xf32, #tpu.memory_space<vmem>>, vector<8x32xf32>,
    %100 = vector.extract_strided_slice %95 {offsets = [8, 0], sizes = [8, 32], strides = [1, 1]} : vector<16x32xf32> to vector<8x32xf32>
    %c48 = arith.constant 48 : index
    %c32_18 = arith.constant 32 : index
    %101 = vector.load %arg12[%c48, %c32_18] : memref<64x64xf32, #tpu.memory_space<vmem>>, vector<8x32xf32>
    tpu.vector_store %arg12[%c48, %c32_18], %100 {strides = array<i32>} : memref<64x64xf32, #tpu.memory_space<vmem>>, vector<8x32xf32>,
    %102 = vector.extract_strided_slice %47 {offsets = [2, 0, 0], sizes = [1, 16, 128], strides = [1, 1, 1]} : vector<8x16x128xf32> to vector<1x16x128xf32>
    %103 = vector.shape_cast %102 : vector<1x16x128xf32> to vector<16x128xf32>
    %cst_19 = arith.constant dense<0.000000e+00> : vector<16x128xf32>
    %104 = tpu.matmul %97, %21, %cst_19 {dimension_numbers = #tpu.dot_dimension_numbers<[1], [0], [0], [1], [0, 0, 1, 1], [], []>} : vector<16x64xf32>, vector<64x128xf32>, vector<16x128xf32> -> vector<16x128xf32>
    %105 = arith.addf %103, %104 : vector<16x128xf32>
    %106 = vector.extract_strided_slice %105 {offsets = [0, 0], sizes = [16, 96], strides = [1, 1]} : vector<16x128xf32> to vector<16x96xf32>
    %107 = arith.negf %106 : vector<16x96xf32>
    %108 = math.exp %107 : vector<16x96xf32>
    %cst_20 = arith.constant 1.000000e+00 : f32
    %109 = vector.broadcast %cst_20 : f32 to vector<16x96xf32>
    %110 = arith.addf %109, %108 : vector<16x96xf32>
    %111 = arith.divf %109, %110 : vector<16x96xf32>
    %112 = vector.extract_strided_slice %105 {offsets = [0, 96], sizes = [16, 32], strides = [1, 1]} : vector<16x128xf32> to vector<16x32xf32>
    %113 = math.tanh %112 : vector<16x32xf32>
    %114 = vector.extract_strided_slice %111 {offsets = [0, 32], sizes = [16, 32], strides = [1, 1]} : vector<16x96xf32> to vector<16x32xf32>
    %115 = arith.mulf %114, %92 : vector<16x32xf32>
    %116 = vector.extract_strided_slice %111 {offsets = [0, 0], sizes = [16, 32], strides = [1, 1]} : vector<16x96xf32> to vector<16x32xf32>
    %117 = arith.mulf %116, %113 : vector<16x32xf32>
    %118 = arith.addf %115, %117 : vector<16x32xf32>
    %119 = vector.extract_strided_slice %111 {offsets = [0, 64], sizes = [16, 32], strides = [1, 1]} : vector<16x96xf32> to vector<16x32xf32>
    %120 = math.tanh %118 : vector<16x32xf32>
    %121 = arith.mulf %119, %120 : vector<16x32xf32>
    %122 = tpu.concatenate %121, %121 in 1 : vector<16x32xf32>, vector<16x32xf32> -> vector<16x64xf32>
    %123 = arith.mulf %122, %14 : vector<16x64xf32>
    %124 = vector.extract_strided_slice %121 {offsets = [0, 0], sizes = [8, 32], strides = [1, 1]} : vector<16x32xf32> to vector<8x32xf32>
    %c16 = arith.constant 16 : index
    %c0_21 = arith.constant 0 : index
    %125 = vector.load %arg12[%c16, %c0_21] : memref<64x64xf32, #tpu.memory_space<vmem>>, vector<8x32xf32>
    tpu.vector_store %arg12[%c16, %c0_21], %124 {strides = array<i32>} : memref<64x64xf32, #tpu.memory_space<vmem>>, vector<8x32xf32>,
    %126 = vector.extract_strided_slice %121 {offsets = [8, 0], sizes = [8, 32], strides = [1, 1]} : vector<16x32xf32> to vector<8x32xf32>
    %c40 = arith.constant 40 : index
    %c32_22 = arith.constant 32 : index
    %127 = vector.load %arg12[%c40, %c32_22] : memref<64x64xf32, #tpu.memory_space<vmem>>, vector<8x32xf32>
    tpu.vector_store %arg12[%c40, %c32_22], %126 {strides = array<i32>} : memref<64x64xf32, #tpu.memory_space<vmem>>, vector<8x32xf32>,
    %128 = vector.extract_strided_slice %47 {offsets = [3, 0, 0], sizes = [1, 16, 128], strides = [1, 1, 1]} : vector<8x16x128xf32> to vector<1x16x128xf32>
    %129 = vector.shape_cast %128 : vector<1x16x128xf32> to vector<16x128xf32>
    %cst_23 = arith.constant dense<0.000000e+00> : vector<16x128xf32>
    %130 = tpu.matmul %123, %21, %cst_23 {dimension_numbers = #tpu.dot_dimension_numbers<[1], [0], [0], [1], [0, 0, 1, 1], [], []>} : vector<16x64xf32>, vector<64x128xf32>, vector<16x128xf32> -> vector<16x128xf32>
    %131 = arith.addf %129, %130 : vector<16x128xf32>
    %132 = vector.extract_strided_slice %131 {offsets = [0, 0], sizes = [16, 96], strides = [1, 1]} : vector<16x128xf32> to vector<16x96xf32>
    %133 = arith.negf %132 : vector<16x96xf32>
    %134 = math.exp %133 : vector<16x96xf32>
    %cst_24 = arith.constant 1.000000e+00 : f32
    %135 = vector.broadcast %cst_24 : f32 to vector<16x96xf32>
    %136 = arith.addf %135, %134 : vector<16x96xf32>
    %137 = arith.divf %135, %136 : vector<16x96xf32>
    %138 = vector.extract_strided_slice %131 {offsets = [0, 96], sizes = [16, 32], strides = [1, 1]} : vector<16x128xf32> to vector<16x32xf32>
    %139 = math.tanh %138 : vector<16x32xf32>
    %140 = vector.extract_strided_slice %137 {offsets = [0, 32], sizes = [16, 32], strides = [1, 1]} : vector<16x96xf32> to vector<16x32xf32>
    %141 = arith.mulf %140, %118 : vector<16x32xf32>
    %142 = vector.extract_strided_slice %137 {offsets = [0, 0], sizes = [16, 32], strides = [1, 1]} : vector<16x96xf32> to vector<16x32xf32>
    %143 = arith.mulf %142, %139 : vector<16x32xf32>
    %144 = arith.addf %141, %143 : vector<16x32xf32>
    %145 = vector.extract_strided_slice %137 {offsets = [0, 64], sizes = [16, 32], strides = [1, 1]} : vector<16x96xf32> to vector<16x32xf32>
    %146 = math.tanh %144 : vector<16x32xf32>
    %147 = arith.mulf %145, %146 : vector<16x32xf32>
    %148 = tpu.concatenate %147, %147 in 1 : vector<16x32xf32>, vector<16x32xf32> -> vector<16x64xf32>
    %149 = arith.mulf %148, %14 : vector<16x64xf32>
    %150 = vector.extract_strided_slice %147 {offsets = [0, 0], sizes = [8, 32], strides = [1, 1]} : vector<16x32xf32> to vector<8x32xf32>
    %c24 = arith.constant 24 : index
    %c0_25 = arith.constant 0 : index
    %151 = vector.load %arg12[%c24, %c0_25] : memref<64x64xf32, #tpu.memory_space<vmem>>, vector<8x32xf32>
    tpu.vector_store %arg12[%c24, %c0_25], %150 {strides = array<i32>} : memref<64x64xf32, #tpu.memory_space<vmem>>, vector<8x32xf32>,
    %152 = vector.extract_strided_slice %147 {offsets = [8, 0], sizes = [8, 32], strides = [1, 1]} : vector<16x32xf32> to vector<8x32xf32>
    %c32_26 = arith.constant 32 : index
    %c32_27 = arith.constant 32 : index
    %153 = vector.load %arg12[%c32_26, %c32_27] : memref<64x64xf32, #tpu.memory_space<vmem>>, vector<8x32xf32>
    tpu.vector_store %arg12[%c32_26, %c32_27], %152 {strides = array<i32>} : memref<64x64xf32, #tpu.memory_space<vmem>>, vector<8x32xf32>,
    %154 = vector.extract_strided_slice %47 {offsets = [4, 0, 0], sizes = [1, 16, 128], strides = [1, 1, 1]} : vector<8x16x128xf32> to vector<1x16x128xf32>
    %155 = vector.shape_cast %154 : vector<1x16x128xf32> to vector<16x128xf32>
    %cst_28 = arith.constant dense<0.000000e+00> : vector<16x128xf32>
    %156 = tpu.matmul %149, %21, %cst_28 {dimension_numbers = #tpu.dot_dimension_numbers<[1], [0], [0], [1], [0, 0, 1, 1], [], []>} : vector<16x64xf32>, vector<64x128xf32>, vector<16x128xf32> -> vector<16x128xf32>
    %157 = arith.addf %155, %156 : vector<16x128xf32>
    %158 = vector.extract_strided_slice %157 {offsets = [0, 0], sizes = [16, 96], strides = [1, 1]} : vector<16x128xf32> to vector<16x96xf32>
    %159 = arith.negf %158 : vector<16x96xf32>
    %160 = math.exp %159 : vector<16x96xf32>
    %cst_29 = arith.constant 1.000000e+00 : f32
    %161 = vector.broadcast %cst_29 : f32 to vector<16x96xf32>
    %162 = arith.addf %161, %160 : vector<16x96xf32>
    %163 = arith.divf %161, %162 : vector<16x96xf32>
    %164 = vector.extract_strided_slice %157 {offsets = [0, 96], sizes = [16, 32], strides = [1, 1]} : vector<16x128xf32> to vector<16x32xf32>
    %165 = math.tanh %164 : vector<16x32xf32>
    %166 = vector.extract_strided_slice %163 {offsets = [0, 32], sizes = [16, 32], strides = [1, 1]} : vector<16x96xf32> to vector<16x32xf32>
    %167 = arith.mulf %166, %144 : vector<16x32xf32>
    %168 = vector.extract_strided_slice %163 {offsets = [0, 0], sizes = [16, 32], strides = [1, 1]} : vector<16x96xf32> to vector<16x32xf32>
    %169 = arith.mulf %168, %165 : vector<16x32xf32>
    %170 = arith.addf %167, %169 : vector<16x32xf32>
    %171 = vector.extract_strided_slice %163 {offsets = [0, 64], sizes = [16, 32], strides = [1, 1]} : vector<16x96xf32> to vector<16x32xf32>
    %172 = math.tanh %170 : vector<16x32xf32>
    %173 = arith.mulf %171, %172 : vector<16x32xf32>
    %174 = tpu.concatenate %173, %173 in 1 : vector<16x32xf32>, vector<16x32xf32> -> vector<16x64xf32>
    %175 = arith.mulf %174, %14 : vector<16x64xf32>
    %176 = vector.extract_strided_slice %173 {offsets = [0, 0], sizes = [8, 32], strides = [1, 1]} : vector<16x32xf32> to vector<8x32xf32>
    %c32_30 = arith.constant 32 : index
    %c0_31 = arith.constant 0 : index
    %177 = vector.load %arg12[%c32_30, %c0_31] : memref<64x64xf32, #tpu.memory_space<vmem>>, vector<8x32xf32>
    tpu.vector_store %arg12[%c32_30, %c0_31], %176 {strides = array<i32>} : memref<64x64xf32, #tpu.memory_space<vmem>>, vector<8x32xf32>,
    %178 = vector.extract_strided_slice %173 {offsets = [8, 0], sizes = [8, 32], strides = [1, 1]} : vector<16x32xf32> to vector<8x32xf32>
    %c24_32 = arith.constant 24 : index
    %c32_33 = arith.constant 32 : index
    %179 = vector.load %arg12[%c24_32, %c32_33] : memref<64x64xf32, #tpu.memory_space<vmem>>, vector<8x32xf32>
    tpu.vector_store %arg12[%c24_32, %c32_33], %178 {strides = array<i32>} : memref<64x64xf32, #tpu.memory_space<vmem>>, vector<8x32xf32>,
    %180 = vector.extract_strided_slice %47 {offsets = [5, 0, 0], sizes = [1, 16, 128], strides = [1, 1, 1]} : vector<8x16x128xf32> to vector<1x16x128xf32>
    %181 = vector.shape_cast %180 : vector<1x16x128xf32> to vector<16x128xf32>
    %cst_34 = arith.constant dense<0.000000e+00> : vector<16x128xf32>
    %182 = tpu.matmul %175, %21, %cst_34 {dimension_numbers = #tpu.dot_dimension_numbers<[1], [0], [0], [1], [0, 0, 1, 1], [], []>} : vector<16x64xf32>, vector<64x128xf32>, vector<16x128xf32> -> vector<16x128xf32>
    %183 = arith.addf %181, %182 : vector<16x128xf32>
    %184 = vector.extract_strided_slice %183 {offsets = [0, 0], sizes = [16, 96], strides = [1, 1]} : vector<16x128xf32> to vector<16x96xf32>
    %185 = arith.negf %184 : vector<16x96xf32>
    %186 = math.exp %185 : vector<16x96xf32>
    %cst_35 = arith.constant 1.000000e+00 : f32
    %187 = vector.broadcast %cst_35 : f32 to vector<16x96xf32>
    %188 = arith.addf %187, %186 : vector<16x96xf32>
    %189 = arith.divf %187, %188 : vector<16x96xf32>
    %190 = vector.extract_strided_slice %183 {offsets = [0, 96], sizes = [16, 32], strides = [1, 1]} : vector<16x128xf32> to vector<16x32xf32>
    %191 = math.tanh %190 : vector<16x32xf32>
    %192 = vector.extract_strided_slice %189 {offsets = [0, 32], sizes = [16, 32], strides = [1, 1]} : vector<16x96xf32> to vector<16x32xf32>
    %193 = arith.mulf %192, %170 : vector<16x32xf32>
    %194 = vector.extract_strided_slice %189 {offsets = [0, 0], sizes = [16, 32], strides = [1, 1]} : vector<16x96xf32> to vector<16x32xf32>
    %195 = arith.mulf %194, %191 : vector<16x32xf32>
    %196 = arith.addf %193, %195 : vector<16x32xf32>
    %197 = vector.extract_strided_slice %189 {offsets = [0, 64], sizes = [16, 32], strides = [1, 1]} : vector<16x96xf32> to vector<16x32xf32>
    %198 = math.tanh %196 : vector<16x32xf32>
    %199 = arith.mulf %197, %198 : vector<16x32xf32>
    %200 = tpu.concatenate %199, %199 in 1 : vector<16x32xf32>, vector<16x32xf32> -> vector<16x64xf32>
    %201 = arith.mulf %200, %14 : vector<16x64xf32>
    %202 = vector.extract_strided_slice %199 {offsets = [0, 0], sizes = [8, 32], strides = [1, 1]} : vector<16x32xf32> to vector<8x32xf32>
    %c40_36 = arith.constant 40 : index
    %c0_37 = arith.constant 0 : index
    %203 = vector.load %arg12[%c40_36, %c0_37] : memref<64x64xf32, #tpu.memory_space<vmem>>, vector<8x32xf32>
    tpu.vector_store %arg12[%c40_36, %c0_37], %202 {strides = array<i32>} : memref<64x64xf32, #tpu.memory_space<vmem>>, vector<8x32xf32>,
    %204 = vector.extract_strided_slice %199 {offsets = [8, 0], sizes = [8, 32], strides = [1, 1]} : vector<16x32xf32> to vector<8x32xf32>
    %c16_38 = arith.constant 16 : index
    %c32_39 = arith.constant 32 : index
    %205 = vector.load %arg12[%c16_38, %c32_39] : memref<64x64xf32, #tpu.memory_space<vmem>>, vector<8x32xf32>
    tpu.vector_store %arg12[%c16_38, %c32_39], %204 {strides = array<i32>} : memref<64x64xf32, #tpu.memory_space<vmem>>, vector<8x32xf32>,
    %206 = vector.extract_strided_slice %47 {offsets = [6, 0, 0], sizes = [1, 16, 128], strides = [1, 1, 1]} : vector<8x16x128xf32> to vector<1x16x128xf32>
    %207 = vector.shape_cast %206 : vector<1x16x128xf32> to vector<16x128xf32>
    %cst_40 = arith.constant dense<0.000000e+00> : vector<16x128xf32>
    %208 = tpu.matmul %201, %21, %cst_40 {dimension_numbers = #tpu.dot_dimension_numbers<[1], [0], [0], [1], [0, 0, 1, 1], [], []>} : vector<16x64xf32>, vector<64x128xf32>, vector<16x128xf32> -> vector<16x128xf32>
    %209 = arith.addf %207, %208 : vector<16x128xf32>
    %210 = vector.extract_strided_slice %209 {offsets = [0, 0], sizes = [16, 96], strides = [1, 1]} : vector<16x128xf32> to vector<16x96xf32>
    %211 = arith.negf %210 : vector<16x96xf32>
    %212 = math.exp %211 : vector<16x96xf32>
    %cst_41 = arith.constant 1.000000e+00 : f32
    %213 = vector.broadcast %cst_41 : f32 to vector<16x96xf32>
    %214 = arith.addf %213, %212 : vector<16x96xf32>
    %215 = arith.divf %213, %214 : vector<16x96xf32>
    %216 = vector.extract_strided_slice %209 {offsets = [0, 96], sizes = [16, 32], strides = [1, 1]} : vector<16x128xf32> to vector<16x32xf32>
    %217 = math.tanh %216 : vector<16x32xf32>
    %218 = vector.extract_strided_slice %215 {offsets = [0, 32], sizes = [16, 32], strides = [1, 1]} : vector<16x96xf32> to vector<16x32xf32>
    %219 = arith.mulf %218, %196 : vector<16x32xf32>
    %220 = vector.extract_strided_slice %215 {offsets = [0, 0], sizes = [16, 32], strides = [1, 1]} : vector<16x96xf32> to vector<16x32xf32>
    %221 = arith.mulf %220, %217 : vector<16x32xf32>
    %222 = arith.addf %219, %221 : vector<16x32xf32>
    %223 = vector.extract_strided_slice %215 {offsets = [0, 64], sizes = [16, 32], strides = [1, 1]} : vector<16x96xf32> to vector<16x32xf32>
    %224 = math.tanh %222 : vector<16x32xf32>
    %225 = arith.mulf %223, %224 : vector<16x32xf32>
    %226 = tpu.concatenate %225, %225 in 1 : vector<16x32xf32>, vector<16x32xf32> -> vector<16x64xf32>
    %227 = arith.mulf %226, %14 : vector<16x64xf32>
    %228 = vector.extract_strided_slice %225 {offsets = [0, 0], sizes = [8, 32], strides = [1, 1]} : vector<16x32xf32> to vector<8x32xf32>
    %c48_42 = arith.constant 48 : index
    %c0_43 = arith.constant 0 : index
    %229 = vector.load %arg12[%c48_42, %c0_43] : memref<64x64xf32, #tpu.memory_space<vmem>>, vector<8x32xf32>
    tpu.vector_store %arg12[%c48_42, %c0_43], %228 {strides = array<i32>} : memref<64x64xf32, #tpu.memory_space<vmem>>, vector<8x32xf32>,
    %230 = vector.extract_strided_slice %225 {offsets = [8, 0], sizes = [8, 32], strides = [1, 1]} : vector<16x32xf32> to vector<8x32xf32>
    %c8_44 = arith.constant 8 : index
    %c32_45 = arith.constant 32 : index
    %231 = vector.load %arg12[%c8_44, %c32_45] : memref<64x64xf32, #tpu.memory_space<vmem>>, vector<8x32xf32>
    tpu.vector_store %arg12[%c8_44, %c32_45], %230 {strides = array<i32>} : memref<64x64xf32, #tpu.memory_space<vmem>>, vector<8x32xf32>,
    %232 = vector.extract_strided_slice %47 {offsets = [7, 0, 0], sizes = [1, 16, 128], strides = [1, 1, 1]} : vector<8x16x128xf32> to vector<1x16x128xf32>
    %233 = vector.shape_cast %232 : vector<1x16x128xf32> to vector<16x128xf32>
    %cst_46 = arith.constant dense<0.000000e+00> : vector<16x128xf32>
    %234 = tpu.matmul %227, %21, %cst_46 {dimension_numbers = #tpu.dot_dimension_numbers<[1], [0], [0], [1], [0, 0, 1, 1], [], []>} : vector<16x64xf32>, vector<64x128xf32>, vector<16x128xf32> -> vector<16x128xf32>
    %235 = arith.addf %233, %234 : vector<16x128xf32>
    %236 = vector.extract_strided_slice %235 {offsets = [0, 0], sizes = [16, 96], strides = [1, 1]} : vector<16x128xf32> to vector<16x96xf32>
    %237 = arith.negf %236 : vector<16x96xf32>
    %238 = math.exp %237 : vector<16x96xf32>
    %cst_47 = arith.constant 1.000000e+00 : f32
    %239 = vector.broadcast %cst_47 : f32 to vector<16x96xf32>
    %240 = arith.addf %239, %238 : vector<16x96xf32>
    %241 = arith.divf %239, %240 : vector<16x96xf32>
    %242 = vector.extract_strided_slice %235 {offsets = [0, 96], sizes = [16, 32], strides = [1, 1]} : vector<16x128xf32> to vector<16x32xf32>
    %243 = math.tanh %242 : vector<16x32xf32>
    %244 = vector.extract_strided_slice %241 {offsets = [0, 32], sizes = [16, 32], strides = [1, 1]} : vector<16x96xf32> to vector<16x32xf32>
    %245 = arith.mulf %244, %222 : vector<16x32xf32>
    %246 = vector.extract_strided_slice %241 {offsets = [0, 0], sizes = [16, 32], strides = [1, 1]} : vector<16x96xf32> to vector<16x32xf32>
    %247 = arith.mulf %246, %243 : vector<16x32xf32>
    %248 = arith.addf %245, %247 : vector<16x32xf32>
    %249 = vector.extract_strided_slice %241 {offsets = [0, 64], sizes = [16, 32], strides = [1, 1]} : vector<16x96xf32> to vector<16x32xf32>
    %250 = math.tanh %248 : vector<16x32xf32>
    %251 = arith.mulf %249, %250 : vector<16x32xf32>
    %252 = vector.extract_strided_slice %251 {offsets = [0, 0], sizes = [8, 32], strides = [1, 1]} : vector<16x32xf32> to vector<8x32xf32>
    %c56_48 = arith.constant 56 : index
    %c0_49 = arith.constant 0 : index
    %253 = vector.load %arg12[%c56_48, %c0_49] : memref<64x64xf32, #tpu.memory_space<vmem>>, vector<8x32xf32>
    tpu.vector_store %arg12[%c56_48, %c0_49], %252 {strides = array<i32>} : memref<64x64xf32, #tpu.memory_space<vmem>>, vector<8x32xf32>,
    %254 = vector.extract_strided_slice %251 {offsets = [8, 0], sizes = [8, 32], strides = [1, 1]} : vector<16x32xf32> to vector<8x32xf32>
    %c0_50 = arith.constant 0 : index
    %c32_51 = arith.constant 32 : index
    %255 = vector.load %arg12[%c0_50, %c32_51] : memref<64x64xf32, #tpu.memory_space<vmem>>, vector<8x32xf32>
    tpu.vector_store %arg12[%c0_50, %c32_51], %254 {strides = array<i32>} : memref<64x64xf32, #tpu.memory_space<vmem>>, vector<8x32xf32>,
    %c0_52 = arith.constant 0 : index
    %c0_53 = arith.constant 0 : index
    %256 = vector.load %arg12[%c0_52, %c0_53] : memref<64x64xf32, #tpu.memory_space<vmem>>, vector<64x64xf32>
    %c0_54 = arith.constant 0 : index
    %c0_55 = arith.constant 0 : index
    %257 = vector.load %arg4[%c0_54, %c0_55] : memref<64x256xf32, #tpu.memory_space<vmem>>, vector<64x256xf32>
    %cst_56 = arith.constant dense<0.000000e+00> : vector<64x256xf32>
    %258 = tpu.matmul %256, %257, %cst_56 {dimension_numbers = #tpu.dot_dimension_numbers<[1], [0], [0], [1], [0, 0, 1, 1], [], []>} : vector<64x64xf32>, vector<64x256xf32>, vector<64x256xf32> -> vector<64x256xf32>
    %c0_57 = arith.constant 0 : index
    %c0_58 = arith.constant 0 : index
    %259 = vector.load %arg6[%c0_57, %c0_58] : memref<1x256xf32, #tpu.memory_space<vmem>>, vector<1x256xf32>
    %260 = vector.broadcast %259 : vector<1x256xf32> to vector<64x256xf32>
    %261 = arith.addf %258, %260 : vector<64x256xf32>
    %c0_59 = arith.constant 0 : index
    %c0_60 = arith.constant 0 : index
    %262 = vector.load %arg5[%c0_59, %c0_60] : memref<64x128xf32, #tpu.memory_space<vmem>>, vector<64x128xf32>
    %263 = vector.extract_strided_slice %261 {offsets = [0, 0], sizes = [8, 128], strides = [1, 1]} : vector<64x256xf32> to vector<8x128xf32>
    %264 = vector.extract_strided_slice %261 {offsets = [56, 128], sizes = [8, 128], strides = [1, 1]} : vector<64x256xf32> to vector<8x128xf32>
    %265 = tpu.concatenate %263, %264 in 0 : vector<8x128xf32>, vector<8x128xf32> -> vector<16x128xf32>
    %266 = vector.extract_strided_slice %261 {offsets = [8, 0], sizes = [8, 128], strides = [1, 1]} : vector<64x256xf32> to vector<8x128xf32>
    %267 = vector.extract_strided_slice %261 {offsets = [48, 128], sizes = [8, 128], strides = [1, 1]} : vector<64x256xf32> to vector<8x128xf32>
    %268 = tpu.concatenate %266, %267 in 0 : vector<8x128xf32>, vector<8x128xf32> -> vector<16x128xf32>
    %269 = vector.extract_strided_slice %261 {offsets = [16, 0], sizes = [8, 128], strides = [1, 1]} : vector<64x256xf32> to vector<8x128xf32>
    %270 = vector.extract_strided_slice %261 {offsets = [40, 128], sizes = [8, 128], strides = [1, 1]} : vector<64x256xf32> to vector<8x128xf32>
    %271 = tpu.concatenate %269, %270 in 0 : vector<8x128xf32>, vector<8x128xf32> -> vector<16x128xf32>
    %272 = vector.extract_strided_slice %261 {offsets = [24, 0], sizes = [8, 128], strides = [1, 1]} : vector<64x256xf32> to vector<8x128xf32>
    %273 = vector.extract_strided_slice %261 {offsets = [32, 128], sizes = [8, 128], strides = [1, 1]} : vector<64x256xf32> to vector<8x128xf32>
    %274 = tpu.concatenate %272, %273 in 0 : vector<8x128xf32>, vector<8x128xf32> -> vector<16x128xf32>
    %275 = vector.extract_strided_slice %261 {offsets = [32, 0], sizes = [8, 128], strides = [1, 1]} : vector<64x256xf32> to vector<8x128xf32>
    %276 = vector.extract_strided_slice %261 {offsets = [24, 128], sizes = [8, 128], strides = [1, 1]} : vector<64x256xf32> to vector<8x128xf32>
    %277 = tpu.concatenate %275, %276 in 0 : vector<8x128xf32>, vector<8x128xf32> -> vector<16x128xf32>
    %278 = vector.extract_strided_slice %261 {offsets = [40, 0], sizes = [8, 128], strides = [1, 1]} : vector<64x256xf32> to vector<8x128xf32>
    %279 = vector.extract_strided_slice %261 {offsets = [16, 128], sizes = [8, 128], strides = [1, 1]} : vector<64x256xf32> to vector<8x128xf32>
    %280 = tpu.concatenate %278, %279 in 0 : vector<8x128xf32>, vector<8x128xf32> -> vector<16x128xf32>
    %281 = vector.extract_strided_slice %261 {offsets = [48, 0], sizes = [8, 128], strides = [1, 1]} : vector<64x256xf32> to vector<8x128xf32>
    %282 = vector.extract_strided_slice %261 {offsets = [8, 128], sizes = [8, 128], strides = [1, 1]} : vector<64x256xf32> to vector<8x128xf32>
    %283 = tpu.concatenate %281, %282 in 0 : vector<8x128xf32>, vector<8x128xf32> -> vector<16x128xf32>
    %284 = vector.extract_strided_slice %261 {offsets = [56, 0], sizes = [8, 128], strides = [1, 1]} : vector<64x256xf32> to vector<8x128xf32>
    %285 = vector.extract_strided_slice %261 {offsets = [0, 128], sizes = [8, 128], strides = [1, 1]} : vector<64x256xf32> to vector<8x128xf32>
    %286 = tpu.concatenate %284, %285 in 0 : vector<8x128xf32>, vector<8x128xf32> -> vector<16x128xf32>
    %287 = tpu.concatenate %265, %268, %271, %274, %277, %280, %283, %286 in 0 : vector<16x128xf32>, vector<16x128xf32>, vector<16x128xf32>, vector<16x128xf32>, vector<16x128xf32>, vector<16x128xf32>, vector<16x128xf32>, vector<16x128xf32> -> vector<128x128xf32>
    %288 = vector.shape_cast %287 : vector<128x128xf32> to vector<8x16x128xf32>
    %cst_61 = arith.constant 0.000000e+00 : f32
    %289 = vector.broadcast %cst_61 : f32 to vector<16x64xf32>
    %cst_62 = arith.constant 0.000000e+00 : f32
    %290 = vector.broadcast %cst_62 : f32 to vector<16x32xf32>
    %291 = vector.extract_strided_slice %288 {offsets = [0, 0, 0], sizes = [1, 16, 128], strides = [1, 1, 1]} : vector<8x16x128xf32> to vector<1x16x128xf32>
    %292 = vector.shape_cast %291 : vector<1x16x128xf32> to vector<16x128xf32>
    %cst_63 = arith.constant dense<0.000000e+00> : vector<16x128xf32>
    %293 = tpu.matmul %289, %262, %cst_63 {dimension_numbers = #tpu.dot_dimension_numbers<[1], [0], [0], [1], [0, 0, 1, 1], [], []>} : vector<16x64xf32>, vector<64x128xf32>, vector<16x128xf32> -> vector<16x128xf32>
    %294 = arith.addf %292, %293 : vector<16x128xf32>
    %295 = vector.extract_strided_slice %294 {offsets = [0, 0], sizes = [16, 96], strides = [1, 1]} : vector<16x128xf32> to vector<16x96xf32>
    %296 = arith.negf %295 : vector<16x96xf32>
    %297 = math.exp %296 : vector<16x96xf32>
    %cst_64 = arith.constant 1.000000e+00 : f32
    %298 = vector.broadcast %cst_64 : f32 to vector<16x96xf32>
    %299 = arith.addf %298, %297 : vector<16x96xf32>
    %300 = arith.divf %298, %299 : vector<16x96xf32>
    %301 = vector.extract_strided_slice %294 {offsets = [0, 96], sizes = [16, 32], strides = [1, 1]} : vector<16x128xf32> to vector<16x32xf32>
    %302 = math.tanh %301 : vector<16x32xf32>
    %303 = vector.extract_strided_slice %300 {offsets = [0, 32], sizes = [16, 32], strides = [1, 1]} : vector<16x96xf32> to vector<16x32xf32>
    %304 = arith.mulf %303, %290 : vector<16x32xf32>
    %305 = vector.extract_strided_slice %300 {offsets = [0, 0], sizes = [16, 32], strides = [1, 1]} : vector<16x96xf32> to vector<16x32xf32>
    %306 = arith.mulf %305, %302 : vector<16x32xf32>
    %307 = arith.addf %304, %306 : vector<16x32xf32>
    %308 = vector.extract_strided_slice %300 {offsets = [0, 64], sizes = [16, 32], strides = [1, 1]} : vector<16x96xf32> to vector<16x32xf32>
    %309 = math.tanh %307 : vector<16x32xf32>
    %310 = arith.mulf %308, %309 : vector<16x32xf32>
    %311 = tpu.concatenate %310, %310 in 1 : vector<16x32xf32>, vector<16x32xf32> -> vector<16x64xf32>
    %312 = arith.mulf %311, %14 : vector<16x64xf32>
    %313 = vector.extract_strided_slice %310 {offsets = [0, 0], sizes = [8, 32], strides = [1, 1]} : vector<16x32xf32> to vector<8x32xf32>
    %c0_65 = arith.constant 0 : index
    %c0_66 = arith.constant 0 : index
    %314 = vector.load %arg12[%c0_65, %c0_66] : memref<64x64xf32, #tpu.memory_space<vmem>>, vector<8x32xf32>
    tpu.vector_store %arg12[%c0_65, %c0_66], %313 {strides = array<i32>} : memref<64x64xf32, #tpu.memory_space<vmem>>, vector<8x32xf32>,
    %315 = vector.extract_strided_slice %310 {offsets = [8, 0], sizes = [8, 32], strides = [1, 1]} : vector<16x32xf32> to vector<8x32xf32>
    %c56_67 = arith.constant 56 : index
    %c32_68 = arith.constant 32 : index
    %316 = vector.load %arg12[%c56_67, %c32_68] : memref<64x64xf32, #tpu.memory_space<vmem>>, vector<8x32xf32>
    tpu.vector_store %arg12[%c56_67, %c32_68], %315 {strides = array<i32>} : memref<64x64xf32, #tpu.memory_space<vmem>>, vector<8x32xf32>,
    %317 = vector.extract_strided_slice %288 {offsets = [1, 0, 0], sizes = [1, 16, 128], strides = [1, 1, 1]} : vector<8x16x128xf32> to vector<1x16x128xf32>
    %318 = vector.shape_cast %317 : vector<1x16x128xf32> to vector<16x128xf32>
    %cst_69 = arith.constant dense<0.000000e+00> : vector<16x128xf32>
    %319 = tpu.matmul %312, %262, %cst_69 {dimension_numbers = #tpu.dot_dimension_numbers<[1], [0], [0], [1], [0, 0, 1, 1], [], []>} : vector<16x64xf32>, vector<64x128xf32>, vector<16x128xf32> -> vector<16x128xf32>
    %320 = arith.addf %318, %319 : vector<16x128xf32>
    %321 = vector.extract_strided_slice %320 {offsets = [0, 0], sizes = [16, 96], strides = [1, 1]} : vector<16x128xf32> to vector<16x96xf32>
    %322 = arith.negf %321 : vector<16x96xf32>
    %323 = math.exp %322 : vector<16x96xf32>
    %cst_70 = arith.constant 1.000000e+00 : f32
    %324 = vector.broadcast %cst_70 : f32 to vector<16x96xf32>
    %325 = arith.addf %324, %323 : vector<16x96xf32>
    %326 = arith.divf %324, %325 : vector<16x96xf32>
    %327 = vector.extract_strided_slice %320 {offsets = [0, 96], sizes = [16, 32], strides = [1, 1]} : vector<16x128xf32> to vector<16x32xf32>
    %328 = math.tanh %327 : vector<16x32xf32>
    %329 = vector.extract_strided_slice %326 {offsets = [0, 32], sizes = [16, 32], strides = [1, 1]} : vector<16x96xf32> to vector<16x32xf32>
    %330 = arith.mulf %329, %307 : vector<16x32xf32>
    %331 = vector.extract_strided_slice %326 {offsets = [0, 0], sizes = [16, 32], strides = [1, 1]} : vector<16x96xf32> to vector<16x32xf32>
    %332 = arith.mulf %331, %328 : vector<16x32xf32>
    %333 = arith.addf %330, %332 : vector<16x32xf32>
    %334 = vector.extract_strided_slice %326 {offsets = [0, 64], sizes = [16, 32], strides = [1, 1]} : vector<16x96xf32> to vector<16x32xf32>
    %335 = math.tanh %333 : vector<16x32xf32>
    %336 = arith.mulf %334, %335 : vector<16x32xf32>
    %337 = tpu.concatenate %336, %336 in 1 : vector<16x32xf32>, vector<16x32xf32> -> vector<16x64xf32>
    %338 = arith.mulf %337, %14 : vector<16x64xf32>
    %339 = vector.extract_strided_slice %336 {offsets = [0, 0], sizes = [8, 32], strides = [1, 1]} : vector<16x32xf32> to vector<8x32xf32>
    %c8_71 = arith.constant 8 : index
    %c0_72 = arith.constant 0 : index
    %340 = vector.load %arg12[%c8_71, %c0_72] : memref<64x64xf32, #tpu.memory_space<vmem>>, vector<8x32xf32>
    tpu.vector_store %arg12[%c8_71, %c0_72], %339 {strides = array<i32>} : memref<64x64xf32, #tpu.memory_space<vmem>>, vector<8x32xf32>,
    %341 = vector.extract_strided_slice %336 {offsets = [8, 0], sizes = [8, 32], strides = [1, 1]} : vector<16x32xf32> to vector<8x32xf32>
    %c48_73 = arith.constant 48 : index
    %c32_74 = arith.constant 32 : index
    %342 = vector.load %arg12[%c48_73, %c32_74] : memref<64x64xf32, #tpu.memory_space<vmem>>, vector<8x32xf32>
    tpu.vector_store %arg12[%c48_73, %c32_74], %341 {strides = array<i32>} : memref<64x64xf32, #tpu.memory_space<vmem>>, vector<8x32xf32>,
    %343 = vector.extract_strided_slice %288 {offsets = [2, 0, 0], sizes = [1, 16, 128], strides = [1, 1, 1]} : vector<8x16x128xf32> to vector<1x16x128xf32>
    %344 = vector.shape_cast %343 : vector<1x16x128xf32> to vector<16x128xf32>
    %cst_75 = arith.constant dense<0.000000e+00> : vector<16x128xf32>
    %345 = tpu.matmul %338, %262, %cst_75 {dimension_numbers = #tpu.dot_dimension_numbers<[1], [0], [0], [1], [0, 0, 1, 1], [], []>} : vector<16x64xf32>, vector<64x128xf32>, vector<16x128xf32> -> vector<16x128xf32>
    %346 = arith.addf %344, %345 : vector<16x128xf32>
    %347 = vector.extract_strided_slice %346 {offsets = [0, 0], sizes = [16, 96], strides = [1, 1]} : vector<16x128xf32> to vector<16x96xf32>
    %348 = arith.negf %347 : vector<16x96xf32>
    %349 = math.exp %348 : vector<16x96xf32>
    %cst_76 = arith.constant 1.000000e+00 : f32
    %350 = vector.broadcast %cst_76 : f32 to vector<16x96xf32>
    %351 = arith.addf %350, %349 : vector<16x96xf32>
    %352 = arith.divf %350, %351 : vector<16x96xf32>
    %353 = vector.extract_strided_slice %346 {offsets = [0, 96], sizes = [16, 32], strides = [1, 1]} : vector<16x128xf32> to vector<16x32xf32>
    %354 = math.tanh %353 : vector<16x32xf32>
    %355 = vector.extract_strided_slice %352 {offsets = [0, 32], sizes = [16, 32], strides = [1, 1]} : vector<16x96xf32> to vector<16x32xf32>
    %356 = arith.mulf %355, %333 : vector<16x32xf32>
    %357 = vector.extract_strided_slice %352 {offsets = [0, 0], sizes = [16, 32], strides = [1, 1]} : vector<16x96xf32> to vector<16x32xf32>
    %358 = arith.mulf %357, %354 : vector<16x32xf32>
    %359 = arith.addf %356, %358 : vector<16x32xf32>
    %360 = vector.extract_strided_slice %352 {offsets = [0, 64], sizes = [16, 32], strides = [1, 1]} : vector<16x96xf32> to vector<16x32xf32>
    %361 = math.tanh %359 : vector<16x32xf32>
    %362 = arith.mulf %360, %361 : vector<16x32xf32>
    %363 = tpu.concatenate %362, %362 in 1 : vector<16x32xf32>, vector<16x32xf32> -> vector<16x64xf32>
    %364 = arith.mulf %363, %14 : vector<16x64xf32>
    %365 = vector.extract_strided_slice %362 {offsets = [0, 0], sizes = [8, 32], strides = [1, 1]} : vector<16x32xf32> to vector<8x32xf32>
    %c16_77 = arith.constant 16 : index
    %c0_78 = arith.constant 0 : index
    %366 = vector.load %arg12[%c16_77, %c0_78] : memref<64x64xf32, #tpu.memory_space<vmem>>, vector<8x32xf32>
    tpu.vector_store %arg12[%c16_77, %c0_78], %365 {strides = array<i32>} : memref<64x64xf32, #tpu.memory_space<vmem>>, vector<8x32xf32>,
    %367 = vector.extract_strided_slice %362 {offsets = [8, 0], sizes = [8, 32], strides = [1, 1]} : vector<16x32xf32> to vector<8x32xf32>
    %c40_79 = arith.constant 40 : index
    %c32_80 = arith.constant 32 : index
    %368 = vector.load %arg12[%c40_79, %c32_80] : memref<64x64xf32, #tpu.memory_space<vmem>>, vector<8x32xf32>
    tpu.vector_store %arg12[%c40_79, %c32_80], %367 {strides = array<i32>} : memref<64x64xf32, #tpu.memory_space<vmem>>, vector<8x32xf32>,
    %369 = vector.extract_strided_slice %288 {offsets = [3, 0, 0], sizes = [1, 16, 128], strides = [1, 1, 1]} : vector<8x16x128xf32> to vector<1x16x128xf32>
    %370 = vector.shape_cast %369 : vector<1x16x128xf32> to vector<16x128xf32>
    %cst_81 = arith.constant dense<0.000000e+00> : vector<16x128xf32>
    %371 = tpu.matmul %364, %262, %cst_81 {dimension_numbers = #tpu.dot_dimension_numbers<[1], [0], [0], [1], [0, 0, 1, 1], [], []>} : vector<16x64xf32>, vector<64x128xf32>, vector<16x128xf32> -> vector<16x128xf32>
    %372 = arith.addf %370, %371 : vector<16x128xf32>
    %373 = vector.extract_strided_slice %372 {offsets = [0, 0], sizes = [16, 96], strides = [1, 1]} : vector<16x128xf32> to vector<16x96xf32>
    %374 = arith.negf %373 : vector<16x96xf32>
    %375 = math.exp %374 : vector<16x96xf32>
    %cst_82 = arith.constant 1.000000e+00 : f32
    %376 = vector.broadcast %cst_82 : f32 to vector<16x96xf32>
    %377 = arith.addf %376, %375 : vector<16x96xf32>
    %378 = arith.divf %376, %377 : vector<16x96xf32>
    %379 = vector.extract_strided_slice %372 {offsets = [0, 96], sizes = [16, 32], strides = [1, 1]} : vector<16x128xf32> to vector<16x32xf32>
    %380 = math.tanh %379 : vector<16x32xf32>
    %381 = vector.extract_strided_slice %378 {offsets = [0, 32], sizes = [16, 32], strides = [1, 1]} : vector<16x96xf32> to vector<16x32xf32>
    %382 = arith.mulf %381, %359 : vector<16x32xf32>
    %383 = vector.extract_strided_slice %378 {offsets = [0, 0], sizes = [16, 32], strides = [1, 1]} : vector<16x96xf32> to vector<16x32xf32>
    %384 = arith.mulf %383, %380 : vector<16x32xf32>
    %385 = arith.addf %382, %384 : vector<16x32xf32>
    %386 = vector.extract_strided_slice %378 {offsets = [0, 64], sizes = [16, 32], strides = [1, 1]} : vector<16x96xf32> to vector<16x32xf32>
    %387 = math.tanh %385 : vector<16x32xf32>
    %388 = arith.mulf %386, %387 : vector<16x32xf32>
    %389 = tpu.concatenate %388, %388 in 1 : vector<16x32xf32>, vector<16x32xf32> -> vector<16x64xf32>
    %390 = arith.mulf %389, %14 : vector<16x64xf32>
    %391 = vector.extract_strided_slice %388 {offsets = [0, 0], sizes = [8, 32], strides = [1, 1]} : vector<16x32xf32> to vector<8x32xf32>
    %c24_83 = arith.constant 24 : index
    %c0_84 = arith.constant 0 : index
    %392 = vector.load %arg12[%c24_83, %c0_84] : memref<64x64xf32, #tpu.memory_space<vmem>>, vector<8x32xf32>
    tpu.vector_store %arg12[%c24_83, %c0_84], %391 {strides = array<i32>} : memref<64x64xf32, #tpu.memory_space<vmem>>, vector<8x32xf32>,
    %393 = vector.extract_strided_slice %388 {offsets = [8, 0], sizes = [8, 32], strides = [1, 1]} : vector<16x32xf32> to vector<8x32xf32>
    %c32_85 = arith.constant 32 : index
    %c32_86 = arith.constant 32 : index
    %394 = vector.load %arg12[%c32_85, %c32_86] : memref<64x64xf32, #tpu.memory_space<vmem>>, vector<8x32xf32>
    tpu.vector_store %arg12[%c32_85, %c32_86], %393 {strides = array<i32>} : memref<64x64xf32, #tpu.memory_space<vmem>>, vector<8x32xf32>,
    %395 = vector.extract_strided_slice %288 {offsets = [4, 0, 0], sizes = [1, 16, 128], strides = [1, 1, 1]} : vector<8x16x128xf32> to vector<1x16x128xf32>
    %396 = vector.shape_cast %395 : vector<1x16x128xf32> to vector<16x128xf32>
    %cst_87 = arith.constant dense<0.000000e+00> : vector<16x128xf32>
    %397 = tpu.matmul %390, %262, %cst_87 {dimension_numbers = #tpu.dot_dimension_numbers<[1], [0], [0], [1], [0, 0, 1, 1], [], []>} : vector<16x64xf32>, vector<64x128xf32>, vector<16x128xf32> -> vector<16x128xf32>
    %398 = arith.addf %396, %397 : vector<16x128xf32>
    %399 = vector.extract_strided_slice %398 {offsets = [0, 0], sizes = [16, 96], strides = [1, 1]} : vector<16x128xf32> to vector<16x96xf32>
    %400 = arith.negf %399 : vector<16x96xf32>
    %401 = math.exp %400 : vector<16x96xf32>
    %cst_88 = arith.constant 1.000000e+00 : f32
    %402 = vector.broadcast %cst_88 : f32 to vector<16x96xf32>
    %403 = arith.addf %402, %401 : vector<16x96xf32>
    %404 = arith.divf %402, %403 : vector<16x96xf32>
    %405 = vector.extract_strided_slice %398 {offsets = [0, 96], sizes = [16, 32], strides = [1, 1]} : vector<16x128xf32> to vector<16x32xf32>
    %406 = math.tanh %405 : vector<16x32xf32>
    %407 = vector.extract_strided_slice %404 {offsets = [0, 32], sizes = [16, 32], strides = [1, 1]} : vector<16x96xf32> to vector<16x32xf32>
    %408 = arith.mulf %407, %385 : vector<16x32xf32>
    %409 = vector.extract_strided_slice %404 {offsets = [0, 0], sizes = [16, 32], strides = [1, 1]} : vector<16x96xf32> to vector<16x32xf32>
    %410 = arith.mulf %409, %406 : vector<16x32xf32>
    %411 = arith.addf %408, %410 : vector<16x32xf32>
    %412 = vector.extract_strided_slice %404 {offsets = [0, 64], sizes = [16, 32], strides = [1, 1]} : vector<16x96xf32> to vector<16x32xf32>
    %413 = math.tanh %411 : vector<16x32xf32>
    %414 = arith.mulf %412, %413 : vector<16x32xf32>
    %415 = tpu.concatenate %414, %414 in 1 : vector<16x32xf32>, vector<16x32xf32> -> vector<16x64xf32>
    %416 = arith.mulf %415, %14 : vector<16x64xf32>
    %417 = vector.extract_strided_slice %414 {offsets = [0, 0], sizes = [8, 32], strides = [1, 1]} : vector<16x32xf32> to vector<8x32xf32>
    %c32_89 = arith.constant 32 : index
    %c0_90 = arith.constant 0 : index
    %418 = vector.load %arg12[%c32_89, %c0_90] : memref<64x64xf32, #tpu.memory_space<vmem>>, vector<8x32xf32>
    tpu.vector_store %arg12[%c32_89, %c0_90], %417 {strides = array<i32>} : memref<64x64xf32, #tpu.memory_space<vmem>>, vector<8x32xf32>,
    %419 = vector.extract_strided_slice %414 {offsets = [8, 0], sizes = [8, 32], strides = [1, 1]} : vector<16x32xf32> to vector<8x32xf32>
    %c24_91 = arith.constant 24 : index
    %c32_92 = arith.constant 32 : index
    %420 = vector.load %arg12[%c24_91, %c32_92] : memref<64x64xf32, #tpu.memory_space<vmem>>, vector<8x32xf32>
    tpu.vector_store %arg12[%c24_91, %c32_92], %419 {strides = array<i32>} : memref<64x64xf32, #tpu.memory_space<vmem>>, vector<8x32xf32>,
    %421 = vector.extract_strided_slice %288 {offsets = [5, 0, 0], sizes = [1, 16, 128], strides = [1, 1, 1]} : vector<8x16x128xf32> to vector<1x16x128xf32>
    %422 = vector.shape_cast %421 : vector<1x16x128xf32> to vector<16x128xf32>
    %cst_93 = arith.constant dense<0.000000e+00> : vector<16x128xf32>
    %423 = tpu.matmul %416, %262, %cst_93 {dimension_numbers = #tpu.dot_dimension_numbers<[1], [0], [0], [1], [0, 0, 1, 1], [], []>} : vector<16x64xf32>, vector<64x128xf32>, vector<16x128xf32> -> vector<16x128xf32>
    %424 = arith.addf %422, %423 : vector<16x128xf32>
    %425 = vector.extract_strided_slice %424 {offsets = [0, 0], sizes = [16, 96], strides = [1, 1]} : vector<16x128xf32> to vector<16x96xf32>
    %426 = arith.negf %425 : vector<16x96xf32>
    %427 = math.exp %426 : vector<16x96xf32>
    %cst_94 = arith.constant 1.000000e+00 : f32
    %428 = vector.broadcast %cst_94 : f32 to vector<16x96xf32>
    %429 = arith.addf %428, %427 : vector<16x96xf32>
    %430 = arith.divf %428, %429 : vector<16x96xf32>
    %431 = vector.extract_strided_slice %424 {offsets = [0, 96], sizes = [16, 32], strides = [1, 1]} : vector<16x128xf32> to vector<16x32xf32>
    %432 = math.tanh %431 : vector<16x32xf32>
    %433 = vector.extract_strided_slice %430 {offsets = [0, 32], sizes = [16, 32], strides = [1, 1]} : vector<16x96xf32> to vector<16x32xf32>
    %434 = arith.mulf %433, %411 : vector<16x32xf32>
    %435 = vector.extract_strided_slice %430 {offsets = [0, 0], sizes = [16, 32], strides = [1, 1]} : vector<16x96xf32> to vector<16x32xf32>
    %436 = arith.mulf %435, %432 : vector<16x32xf32>
    %437 = arith.addf %434, %436 : vector<16x32xf32>
    %438 = vector.extract_strided_slice %430 {offsets = [0, 64], sizes = [16, 32], strides = [1, 1]} : vector<16x96xf32> to vector<16x32xf32>
    %439 = math.tanh %437 : vector<16x32xf32>
    %440 = arith.mulf %438, %439 : vector<16x32xf32>
    %441 = tpu.concatenate %440, %440 in 1 : vector<16x32xf32>, vector<16x32xf32> -> vector<16x64xf32>
    %442 = arith.mulf %441, %14 : vector<16x64xf32>
    %443 = vector.extract_strided_slice %440 {offsets = [0, 0], sizes = [8, 32], strides = [1, 1]} : vector<16x32xf32> to vector<8x32xf32>
    %c40_95 = arith.constant 40 : index
    %c0_96 = arith.constant 0 : index
    %444 = vector.load %arg12[%c40_95, %c0_96] : memref<64x64xf32, #tpu.memory_space<vmem>>, vector<8x32xf32>
    tpu.vector_store %arg12[%c40_95, %c0_96], %443 {strides = array<i32>} : memref<64x64xf32, #tpu.memory_space<vmem>>, vector<8x32xf32>,
    %445 = vector.extract_strided_slice %440 {offsets = [8, 0], sizes = [8, 32], strides = [1, 1]} : vector<16x32xf32> to vector<8x32xf32>
    %c16_97 = arith.constant 16 : index
    %c32_98 = arith.constant 32 : index
    %446 = vector.load %arg12[%c16_97, %c32_98] : memref<64x64xf32, #tpu.memory_space<vmem>>, vector<8x32xf32>
    tpu.vector_store %arg12[%c16_97, %c32_98], %445 {strides = array<i32>} : memref<64x64xf32, #tpu.memory_space<vmem>>, vector<8x32xf32>,
    %447 = vector.extract_strided_slice %288 {offsets = [6, 0, 0], sizes = [1, 16, 128], strides = [1, 1, 1]} : vector<8x16x128xf32> to vector<1x16x128xf32>
    %448 = vector.shape_cast %447 : vector<1x16x128xf32> to vector<16x128xf32>
    %cst_99 = arith.constant dense<0.000000e+00> : vector<16x128xf32>
    %449 = tpu.matmul %442, %262, %cst_99 {dimension_numbers = #tpu.dot_dimension_numbers<[1], [0], [0], [1], [0, 0, 1, 1], [], []>} : vector<16x64xf32>, vector<64x128xf32>, vector<16x128xf32> -> vector<16x128xf32>
    %450 = arith.addf %448, %449 : vector<16x128xf32>
    %451 = vector.extract_strided_slice %450 {offsets = [0, 0], sizes = [16, 96], strides = [1, 1]} : vector<16x128xf32> to vector<16x96xf32>
    %452 = arith.negf %451 : vector<16x96xf32>
    %453 = math.exp %452 : vector<16x96xf32>
    %cst_100 = arith.constant 1.000000e+00 : f32
    %454 = vector.broadcast %cst_100 : f32 to vector<16x96xf32>
    %455 = arith.addf %454, %453 : vector<16x96xf32>
    %456 = arith.divf %454, %455 : vector<16x96xf32>
    %457 = vector.extract_strided_slice %450 {offsets = [0, 96], sizes = [16, 32], strides = [1, 1]} : vector<16x128xf32> to vector<16x32xf32>
    %458 = math.tanh %457 : vector<16x32xf32>
    %459 = vector.extract_strided_slice %456 {offsets = [0, 32], sizes = [16, 32], strides = [1, 1]} : vector<16x96xf32> to vector<16x32xf32>
    %460 = arith.mulf %459, %437 : vector<16x32xf32>
    %461 = vector.extract_strided_slice %456 {offsets = [0, 0], sizes = [16, 32], strides = [1, 1]} : vector<16x96xf32> to vector<16x32xf32>
    %462 = arith.mulf %461, %458 : vector<16x32xf32>
    %463 = arith.addf %460, %462 : vector<16x32xf32>
    %464 = vector.extract_strided_slice %456 {offsets = [0, 64], sizes = [16, 32], strides = [1, 1]} : vector<16x96xf32> to vector<16x32xf32>
    %465 = math.tanh %463 : vector<16x32xf32>
    %466 = arith.mulf %464, %465 : vector<16x32xf32>
    %467 = tpu.concatenate %466, %466 in 1 : vector<16x32xf32>, vector<16x32xf32> -> vector<16x64xf32>
    %468 = arith.mulf %467, %14 : vector<16x64xf32>
    %469 = vector.extract_strided_slice %466 {offsets = [0, 0], sizes = [8, 32], strides = [1, 1]} : vector<16x32xf32> to vector<8x32xf32>
    %c48_101 = arith.constant 48 : index
    %c0_102 = arith.constant 0 : index
    %470 = vector.load %arg12[%c48_101, %c0_102] : memref<64x64xf32, #tpu.memory_space<vmem>>, vector<8x32xf32>
    tpu.vector_store %arg12[%c48_101, %c0_102], %469 {strides = array<i32>} : memref<64x64xf32, #tpu.memory_space<vmem>>, vector<8x32xf32>,
    %471 = vector.extract_strided_slice %466 {offsets = [8, 0], sizes = [8, 32], strides = [1, 1]} : vector<16x32xf32> to vector<8x32xf32>
    %c8_103 = arith.constant 8 : index
    %c32_104 = arith.constant 32 : index
    %472 = vector.load %arg12[%c8_103, %c32_104] : memref<64x64xf32, #tpu.memory_space<vmem>>, vector<8x32xf32>
    tpu.vector_store %arg12[%c8_103, %c32_104], %471 {strides = array<i32>} : memref<64x64xf32, #tpu.memory_space<vmem>>, vector<8x32xf32>,
    %473 = vector.extract_strided_slice %288 {offsets = [7, 0, 0], sizes = [1, 16, 128], strides = [1, 1, 1]} : vector<8x16x128xf32> to vector<1x16x128xf32>
    %474 = vector.shape_cast %473 : vector<1x16x128xf32> to vector<16x128xf32>
    %cst_105 = arith.constant dense<0.000000e+00> : vector<16x128xf32>
    %475 = tpu.matmul %468, %262, %cst_105 {dimension_numbers = #tpu.dot_dimension_numbers<[1], [0], [0], [1], [0, 0, 1, 1], [], []>} : vector<16x64xf32>, vector<64x128xf32>, vector<16x128xf32> -> vector<16x128xf32>
    %476 = arith.addf %474, %475 : vector<16x128xf32>
    %477 = vector.extract_strided_slice %476 {offsets = [0, 0], sizes = [16, 96], strides = [1, 1]} : vector<16x128xf32> to vector<16x96xf32>
    %478 = arith.negf %477 : vector<16x96xf32>
    %479 = math.exp %478 : vector<16x96xf32>
    %cst_106 = arith.constant 1.000000e+00 : f32
    %480 = vector.broadcast %cst_106 : f32 to vector<16x96xf32>
    %481 = arith.addf %480, %479 : vector<16x96xf32>
    %482 = arith.divf %480, %481 : vector<16x96xf32>
    %483 = vector.extract_strided_slice %476 {offsets = [0, 96], sizes = [16, 32], strides = [1, 1]} : vector<16x128xf32> to vector<16x32xf32>
    %484 = math.tanh %483 : vector<16x32xf32>
    %485 = vector.extract_strided_slice %482 {offsets = [0, 32], sizes = [16, 32], strides = [1, 1]} : vector<16x96xf32> to vector<16x32xf32>
    %486 = arith.mulf %485, %463 : vector<16x32xf32>
    %487 = vector.extract_strided_slice %482 {offsets = [0, 0], sizes = [16, 32], strides = [1, 1]} : vector<16x96xf32> to vector<16x32xf32>
    %488 = arith.mulf %487, %484 : vector<16x32xf32>
    %489 = arith.addf %486, %488 : vector<16x32xf32>
    %490 = vector.extract_strided_slice %482 {offsets = [0, 64], sizes = [16, 32], strides = [1, 1]} : vector<16x96xf32> to vector<16x32xf32>
    %491 = math.tanh %489 : vector<16x32xf32>
    %492 = arith.mulf %490, %491 : vector<16x32xf32>
    %493 = vector.extract_strided_slice %492 {offsets = [0, 0], sizes = [8, 32], strides = [1, 1]} : vector<16x32xf32> to vector<8x32xf32>
    %c56_107 = arith.constant 56 : index
    %c0_108 = arith.constant 0 : index
    %494 = vector.load %arg12[%c56_107, %c0_108] : memref<64x64xf32, #tpu.memory_space<vmem>>, vector<8x32xf32>
    tpu.vector_store %arg12[%c56_107, %c0_108], %493 {strides = array<i32>} : memref<64x64xf32, #tpu.memory_space<vmem>>, vector<8x32xf32>,
    %495 = vector.extract_strided_slice %492 {offsets = [8, 0], sizes = [8, 32], strides = [1, 1]} : vector<16x32xf32> to vector<8x32xf32>
    %c0_109 = arith.constant 0 : index
    %c32_110 = arith.constant 32 : index
    %496 = vector.load %arg12[%c0_109, %c32_110] : memref<64x64xf32, #tpu.memory_space<vmem>>, vector<8x32xf32>
    tpu.vector_store %arg12[%c0_109, %c32_110], %495 {strides = array<i32>} : memref<64x64xf32, #tpu.memory_space<vmem>>, vector<8x32xf32>,
    %c56_111 = arith.constant 56 : index
    %c0_112 = arith.constant 0 : index
    %497 = vector.load %arg12[%c56_111, %c0_112] : memref<64x64xf32, #tpu.memory_space<vmem>>, vector<8x64xf32>
    %c0_113 = arith.constant 0 : index
    %c0_114 = arith.constant 0 : index
    %498 = vector.load %arg7[%c0_113, %c0_114] : memref<64x64xf32, #tpu.memory_space<vmem>>, vector<64x64xf32>
    %cst_115 = arith.constant dense<0.000000e+00> : vector<8x64xf32>
    %499 = tpu.matmul %497, %498, %cst_115 {dimension_numbers = #tpu.dot_dimension_numbers<[1], [0], [0], [1], [0, 0, 1, 1], [], []>} : vector<8x64xf32>, vector<64x64xf32>, vector<8x64xf32> -> vector<8x64xf32>
    %c0_116 = arith.constant 0 : index
    %c0_117 = arith.constant 0 : index
    %500 = vector.load %arg8[%c0_116, %c0_117] : memref<1x64xf32, #tpu.memory_space<vmem>>, vector<1x64xf32>
    %501 = vector.broadcast %500 : vector<1x64xf32> to vector<8x64xf32>
    %502 = arith.addf %499, %501 : vector<8x64xf32>
    %cst_118 = arith.constant 0.000000e+00 : f32
    %503 = vector.broadcast %cst_118 : f32 to vector<8x64xf32>
    %504 = arith.maximumf %502, %503 : vector<8x64xf32>
    %c0_119 = arith.constant 0 : index
    %c0_120 = arith.constant 0 : index
    %505 = vector.load %arg9[%c0_119, %c0_120] : memref<64x4xf32, #tpu.memory_space<vmem>>, vector<64x4xf32>
    %cst_121 = arith.constant dense<0.000000e+00> : vector<8x4xf32>
    %506 = tpu.matmul %504, %505, %cst_121 {dimension_numbers = #tpu.dot_dimension_numbers<[1], [0], [0], [1], [0, 0, 1, 1], [], []>} : vector<8x64xf32>, vector<64x4xf32>, vector<8x4xf32> -> vector<8x4xf32>
    %c0_122 = arith.constant 0 : index
    %c0_123 = arith.constant 0 : index
    %507 = vector.load %arg10[%c0_122, %c0_123] : memref<1x4xf32, #tpu.memory_space<vmem>>, vector<1x4xf32>
    %508 = vector.broadcast %507 : vector<1x4xf32> to vector<8x4xf32>
    %509 = arith.addf %506, %508 : vector<8x4xf32>
    %c0_124 = arith.constant 0 : index
    %c0_125 = arith.constant 0 : index
    %510 = vector.load %arg11[%c0_124, %c0_125] : memref<8x4xf32, #tpu.memory_space<vmem>>, vector<8x4xf32>
    tpu.vector_store %arg11[%c0_124, %c0_125], %509 {strides = array<i32>} : memref<8x4xf32, #tpu.memory_space<vmem>>, vector<8x4xf32>,
    return
  }
}

</mosaic_0001>

<bundles_post_ra>
// kernel: model_forward.1
= control target key start
LH: loop header
LB: loop body
LE: loop exit
PB: predicated region body
PF: predicated region fallthrough
CT: control target
= control target key end

     0   :  { %v4171_v3 = vmov 0.0   ;;  %s4174_s17 = smov 64   ;;  %vm375_vm1 = vcmask 261120   ;;  %vm232_vm2 = vcmask 523264   ;;  %vm381_vm4 = vcmask 523520   ;;  %s5166_s1 = inlined_call_operand.vmem [shape: f32[128,256], index: 1, kind: input, shape index: {}]   ;;  %s5167_s2 = inlined_call_operand.vmem [shape: f32[64,128], index: 2, kind: input, shape index: {}]   ;;  %s5168_s0 = inlined_call_operand.vmem [shape: f32[64,128], index: 0, kind: input, shape index: {}]   ;;  %s5169_s3 = inlined_call_operand.vmem [shape: f32[1,256], index: 3, kind: input, shape index: {}]   ;;  %s5170_s4 = inlined_call_operand.vmem [shape: f32[64,256], index: 4, kind: input, shape index: {}]   ;;  %s5171_s5 = inlined_call_operand.vmem [shape: f32[64,128], index: 5, kind: input, shape index: {}]   ;;  %s5172_s6 = inlined_call_operand.vmem [shape: f32[1,256], index: 6, kind: input, shape index: {}]   ;;  %s5173_s7 = inlined_call_operand.vmem [shape: f32[64,64], index: 7, kind: input, shape index: {}]   ;;  %s5174_s9 = inlined_call_operand.vmem [shape: f32[64,4], index: 9, kind: input, shape index: {}]   ;;  %s5175_s8 = inlined_call_operand.vmem [shape: f32[1,64], index: 8, kind: input, shape index: {}]   ;;  %s5176_s10 = inlined_call_operand.vmem [shape: f32[1,4], index: 10, kind: input, shape index: {}]   ;;  %s5177_s11 = inlined_call_operand.vmem [shape: f32[8,4], index: 11, kind: output, shape index: {}]  }
   0x1   :  { %v68_v0 = vld [vmem:[%s5166_s1 + $0x8] sm:$0xff]  ;;  %v70_v1 = vld [vmem:[%s5166_s1 + $0x18] sm:$0xff]  ;;  %v67_v2 = vld [vmem:[%s5166_s1] sm:$0xff]  ;;  %175 = vmatprep.mubr.f32.mxu0 %v4171_v3  ;;  %3255 = vmatprep.mubr.f32.mxu1 %v4171_v3  ;;  %vm4176_vm5 = vmmov 0   ;;  %vm2981_vm6 = vcmask 31744  }
   0x2   :  { %v3581_v4 = vpack.c.bf16 %v70_v1, %v68_v0  ;;  %v69_v5 = vld [vmem:[%s5166_s1 + $0x10] sm:$0xff]  ;;  %v72_v6 = vld [vmem:[%s5166_s1 + $0x28] sm:$0xff]  ;;  %v74_v7 = vld [vmem:[%s5166_s1 + $0x38] sm:$0xff] }
   0x3   :  { %v3583_v8 = vpack.c.bf16 %v69_v5, %v67_v2  ;;  %v3585_v9 = vpack.c.bf16 %v74_v7, %v72_v6  ;;  %v71_v10 = vld [vmem:[%s5166_s1 + $0x20] sm:$0xff]  ;;  %v73_v11 = vld [vmem:[%s5166_s1 + $0x30] sm:$0xff]  ;;  %v76_v12 = vld [vmem:[%s5166_s1 + $0x48] sm:$0xff]  ;;  %v41_v6 = vlaneseq }
   0x4   :  { %3582 = vmatprep.subr.bf16.mxu0 %v3581_v4  ;;  %v78_v13 = vld [vmem:[%s5166_s1 + $0x58] sm:$0xff]  ;;  %v3587_v14 = vpack.c.bf16 %v73_v11, %v71_v10  ;;  %v75_v16 = vld [vmem:[%s5166_s1 + $0x40] sm:$0xff]  ;;  %v77_v17 = vld [vmem:[%s5166_s1 + $0x50] sm:$0xff] }
   0x5   :  { %3584 = vmatpush1.bf16.msra.mxu0 %v3583_v8  ;;  %v3589_v15 = vpack.c.bf16 %v78_v13, %v76_v12  ;;  %v80_v18 = vld [vmem:[%s5166_s1 + $0x68] sm:$0xff]  ;;  %v82_v19 = vld [vmem:[%s5166_s1 + $0x78] sm:$0xff]  ;;  %v224_v20 = vld [vmem:[%s5167_s2] sm:$0xff]  ;;  %v3591_v22 = vpack.c.bf16 %v77_v17, %v75_v16  ;;  %v4426_v7 = vshrl.u32 %v41_v6, 7 }
   0x6   :  { %3586 = vmatprep.subr.bf16.mxu0 %v3585_v9  ;;  %v225_v21 = vld [vmem:[%s5167_s2 + $0x8] sm:$0xff]  ;;  %v226_v24 = vld [vmem:[%s5167_s2 + $0x10] sm:$0xff]  ;;  %v3593_v25 = vpack.c.bf16 %v82_v19, %v80_v18  ;;  %v79_v26 = vld [vmem:[%s5166_s1 + $0x60] sm:$0xff] }
   0x7   :  { %v4287_v23 = vpack.c.bf16 %v225_v21, %v224_v20  ;;  %v81_v27 = vld [vmem:[%s5166_s1 + $0x70] sm:$0xff]  ;;  %v227_v28 = vld [vmem:[%s5167_s2 + $0x18] sm:$0xff]  ;;  %v84_v29 = vld [vmem:[%s5166_s1 + $0x88] sm:$0xff]  ;;  %v103_v10 = vsub.s32 0, %v4426_v7  ;;  %v107_v12 = vsub.s32 1, %v4426_v7 }
   0x8   :  { %v86_v30 = vld [vmem:[%s5166_s1 + $0x98] sm:$0xff]  ;;  %v4308_v31 = vpack.c.bf16 %v227_v28, %v226_v24  ;;  %v228_v32 = vld [vmem:[%s5167_s2 + $0x20] sm:$0xff]  ;;  %v229_v33 = vld [vmem:[%s5167_s2 + $0x28] sm:$0xff]  ;;  %v3595_v34 = vpack.c.bf16 %v81_v27, %v79_v26 }
   0x9   :  { %3588 = vmatpush1.bf16.msra.mxu0 %v3587_v14  ;;  %3614 = vmatprep.subr.bf16.mxu1 %v4287_v23  ;;  %v83_v35 = vld [vmem:[%s5166_s1 + $0x80] sm:$0xff]  ;;  %v4321_v36 = vpack.c.bf16 %v229_v33, %v228_v32  ;;  %v3597_v37 = vpack.c.bf16 %v86_v30, %v84_v29  ;;  %v85_v38 = vld [vmem:[%s5166_s1 + $0x90] sm:$0xff]  ;;  %v231_v40 = vld [vmem:[%s5167_s2 + $0x38] sm:$0xff] }
   0xa   :  { %3590 = vmatprep.subr.bf16.mxu0 %v3589_v15  ;;  %3616 = vmatpush3.bf16.msra.mxu1 %v4287_v23  ;;  %v230_v39 = vld [vmem:[%s5167_s2 + $0x30] sm:$0xff]  ;;  %v88_v41 = vld [vmem:[%s5166_s1 + $0xa8] sm:$0xff]  ;;  %v90_v42 = vld [vmem:[%s5166_s1 + $0xb8] sm:$0xff]  ;;  %v3599_v43 = vpack.c.bf16 %v85_v38, %v83_v35 }
   0xb   :  { %3618 = vmatprep.subr.bf16.mxu1 %v4308_v31  ;;  %v4340_v44 = vpack.c.bf16 %v231_v40, %v230_v39  ;;  %v3601_v45 = vpack.c.bf16 %v90_v42, %v88_v41  ;;  %v87_v46 = vld [vmem:[%s5166_s1 + $0xa0] sm:$0xff]  ;;  %v89_v47 = vld [vmem:[%s5166_s1 + $0xb0] sm:$0xff]  ;;  %v92_v48 = vld [vmem:[%s5166_s1 + $0xc8] sm:$0xff] }
   0xc   :  { %v94_v49 = vld [vmem:[%s5166_s1 + $0xd8] sm:$0xff]  ;;  %v3603_v50 = vpack.c.bf16 %v89_v47, %v87_v46  ;;  %v91_v52 = vld [vmem:[%s5166_s1 + $0xc0] sm:$0xff]  ;;  %v93_v53 = vld [vmem:[%s5166_s1 + $0xd0] sm:$0xff] }
   0xd   :  { %3592 = vmatpush1.bf16.msra.mxu0 %v3591_v22  ;;  %v3605_v51 = vpack.c.bf16 %v94_v49, %v92_v48  ;;  %v96_v54 = vld [vmem:[%s5166_s1 + $0xe8] sm:$0xff]  ;;  %v98_v55 = vld [vmem:[%s5166_s1 + $0xf8] sm:$0xff]  ;;  %v3607_v56 = vpack.c.bf16 %v93_v53, %v91_v52  ;;  %v95_v58 = vld [vmem:[%s5166_s1 + $0xe0] sm:$0xff] }
   0xe   :  { %3594 = vmatprep.subr.bf16.mxu0 %v3593_v25  ;;  %3620 = vmatpush3.bf16.msra.mxu1 %v4308_v31  ;;  %v3609_v57 = vpack.c.bf16 %v98_v55, %v96_v54  ;;  %v97_v59 = vld [vmem:[%s5166_s1 + $0xf0] sm:$0xff]  ;;  %v59_v61 = vld [vmem:[%s5168_s0] sm:$0xff]  ;;  %v60_v62 = vld [vmem:[%s5168_s0 + $0x8] sm:$0xff] }
   0xf   :  { %3622 = vmatprep.subr.bf16.mxu1 %v4321_v36  ;;  %v3611_v60 = vpack.c.bf16 %v97_v59, %v95_v58  ;;  %v61_v63 = vld [vmem:[%s5168_s0 + $0x10] sm:$0xff]  ;;  %v62_v0 = vld [vmem:[%s5168_s0 + $0x18] sm:$0xff]  ;;  %v63_v1 = vld [vmem:[%s5168_s0 + $0x20] sm:$0xff] }
  0x10   :  { %v64_v2 = vld [vmem:[%s5168_s0 + $0x28] sm:$0xff]  ;;  %v65_v4 = vld [vmem:[%s5168_s0 + $0x30] sm:$0xff]  ;;  %v66_v5 = vld [vmem:[%s5168_s0 + $0x38] sm:$0xff]  ;;  %s4172_s0 = smov 32  }
  0x11   :  { %3596 = vmatpush1.bf16.msra.mxu0 %v3595_v34  ;;  %v99_v11 = vld [vmem:[%s5169_s3] sm:$0x3]  ;;  %s4173_s3 = smov 96  }
  0x12   :  { %3598 = vmatprep.subr.bf16.mxu0 %v3597_v37  ;;  %3624 = vmatpush3.bf16.msra.mxu1 %v4321_v36  ;;  %v104_v13 = vrot.slane %v99_v11, %v103_v10  ;;  %v108_v14 = vrot.slane %v99_v11, %v107_v12 }
  0x13   :  { %3626 = vmatprep.subr.bf16.mxu1 %v4340_v44 }
  0x15   :  { %3600 = vmatpush1.bf16.msra.mxu0 %v3599_v43 }
  0x16   :  { %3602 = vmatprep.subr.bf16.mxu0 %v3601_v45  ;;  %3628 = vmatpush3.bf16.msra.mxu1 %v4340_v44 }
  0x17   :  { %3630 = vmatprep.subr.bf16.mxu1 %v4287_v23 }
  0x19   :  { %3604 = vmatpush1.bf16.msra.mxu0 %v3603_v50  ;;  %3256 = vmatmul.mubr.f32.vlgmr.msra.gmra.mrb[0].mxu1 %v4171_v3 }
  0x1a   :  { %3606 = vmatprep.subr.bf16.mxu0 %v3605_v51  ;;  %3632 = vmatpush3.bf16.msra.mxu1 %v4287_v23 }
  0x1b   :  { %3634 = vmatprep.subr.bf16.mxu1 %v4308_v31 }
  0x1d   :  { %3608 = vmatpush1.bf16.msra.mxu0 %v3607_v56 }
  0x1e   :  { %3610 = vmatprep.subr.bf16.mxu0 %v3609_v57  ;;  %3636 = vmatpush3.bf16.msra.mxu1 %v4308_v31 }
  0x1f   :  { %3638 = vmatprep.subr.bf16.mxu1 %v4321_v36 }
  0x21   :  { %3612 = vmatpush1.bf16.msra.mxu0 %v3611_v60 }
  0x22   :  { %3662 = vmatprep.subr.bf16.mxu0 %v4287_v23  ;;  %3640 = vmatpush3.bf16.msra.mxu1 %v4321_v36 }
  0x23   :  { %3642 = vmatprep.subr.bf16.mxu1 %v4340_v44 }
  0x24   :  { %176 = vmatmul.mubr.f32.vlgmr.msra.gmra.mrb[0].mxu0 %v59_v61 }
  0x25   :  { %181 = vmatprep.mubr.f32.mxu0 %v4171_v3  ;;  %3664 = vmatpush3.bf16.msra.mxu0 %v4287_v23 }
  0x26   :  { %3666 = vmatprep.subr.bf16.mxu0 %v4308_v31  ;;  %3644 = vmatpush3.bf16.msra.mxu1 %v4340_v44 }
  0x27   :  { %3646 = vmatprep.subr.bf16.mxu1 %v4287_v23 }
  0x28   :  { %182 = vmatmul.mubr.f32.gmra.mrb[2].mxu0 %v60_v62 }
  0x29   :  { %187 = vmatprep.mubr.f32.mxu0 %v4171_v3  ;;  %3668 = vmatpush3.bf16.msra.mxu0 %v4308_v31 }
  0x2a   :  { %3670 = vmatprep.subr.bf16.mxu0 %v4321_v36 }
  0x2c   :  { %188 = vmatmul.mubr.f32.gmra.mrb[4].mxu0 %v61_v63 }
  0x2d   :  { %193 = vmatprep.mubr.f32.mxu0 %v4171_v3  ;;  %3672 = vmatpush3.bf16.msra.mxu0 %v4321_v36 }
  0x2e   :  { %3674 = vmatprep.subr.bf16.mxu0 %v4340_v44 }
  0x30   :  { %194 = vmatmul.mubr.f32.gmra.mrb[6].mxu0 %v62_v0 }
  0x31   :  { %199 = vmatprep.mubr.f32.mxu0 %v4171_v3  ;;  %3676 = vmatpush3.bf16.msra.mxu0 %v4340_v44 }
  0x32   :  { %3694 = vmatprep.subr.bf16.mxu0 %v4287_v23 }
  0x34   :  { %200 = vmatmul.mubr.f32.gmra.mrb[8].mxu0 %v63_v1 }
  0x35   :  { %205 = vmatprep.mubr.f32.mxu0 %v4171_v3 }
  0x38   :  { %206 = vmatmul.mubr.f32.gmra.mrb[10].mxu0 %v64_v2 }
  0x39   :  { %211 = vmatprep.mubr.f32.mxu0 %v4171_v3 }
  0x3c   :  { %212 = vmatmul.mubr.f32.gmra.mrb[12].mxu0 %v65_v4 }
  0x3d   :  { %217 = vmatprep.mubr.f32.mxu0 %v4171_v3 }
  0x40   :  { %218 = vmatmul.mubr.f32.gmra.mrb[14].mxu0 %v66_v5 }
  0xec   :  { %v3257_v8 = vpop.f32.mrb[0].mxu1 }
  0xed   :  { %v302_v9 = vpop.f32.mrb[1].mxu1 }
  0xf7   :  { %v177_v15 = vpop.f32.mrb[0].mxu0 }
  0xf8   :  { %v178_v16 = vadd.f32 %v177_v15, %v104_v13  ;;  %v179_v17 = vpop.f32.mrb[1].mxu0 }
  0xf9   :  { %v4437_v18 = vadd.f32 %v179_v17, %v108_v14 }
  0xfa   :  { %v311_v19 = vadd.f32 %v302_v9, %v178_v16 }
  0xfb   :  { %v183_v20 = vpop.f32.mrb[2].mxu0 }
  0xfc   :  { %3915 = vtanh.f32 %v311_v19  ;;  %v4439_v21 = vadd.f32 %v183_v20, %v104_v13  ;;  %v185_v22 = vpop.f32.mrb[3].mxu0  ;;  %v2989_v55 = vmul.f32 -1.442695, %v311_v19 }
  0xfd   :  { %v4441_v24 = vadd.f32 %v185_v22, %v108_v14  ;;  %v42_v22 = vand.u32 127, %v41_v6 }
  0xff   :  { %v189_v25 = vpop.f32.mrb[4].mxu0  ;;  %vm45_vm0 = vcmp.lt.s32.totalorder %v42_v22, 32  ;;  %vm50_vm3 = vcmp.ge.s32.totalorder %v42_v22, 32 }
 0x100   :  { %v4443_v26 = vadd.f32 %v189_v25, %v104_v13  ;;  %v191_v27 = vpop.f32.mrb[5].mxu0  ;;  %v4483_v25 = vsel %vm45_vm0, 1.0, %v4171_v3  ;;  %v4490_v6 = vsel %vm50_vm3, 1.0, %v4171_v3 }
 0x101   :  { %v4445_v28 = vadd.f32 %v191_v27, %v108_v14 }
 0x103   :  { %v195_v29 = vpop.f32.mrb[6].mxu0 }
 0x104   :  { %v4447_v30 = vadd.f32 %v195_v29, %v104_v13  ;;  %v197_v32 = vpop.f32.mrb[7].mxu0 }
 0x105   :  { %v4449_v33 = vadd.f32 %v197_v32, %v108_v14 }
 0x106   :  { %v3916_v34 = vpop.eup %3915 }
 0x107   :  { %v201_v35 = vpop.f32.mrb[8].mxu0  ;;  %331 = vrot.lane.b32.xlu0 %v3916_v34, %s4172_s0 }
 0x108   :  { %v4452_v37 = vadd.f32 %v201_v35, %v104_v13  ;;  %v203_v38 = vpop.f32.mrb[9].mxu0 }
 0x109   :  { %v4454_v39 = vadd.f32 %v203_v38, %v108_v14 }
 0x10b   :  { %v207_v40 = vpop.f32.mrb[10].mxu0 }
 0x10c   :  { %v4456_v41 = vadd.f32 %v207_v40, %v104_v13  ;;  %v209_v42 = vpop.f32.mrb[11].mxu0 }
 0x10d   :  { %v4458_v43 = vadd.f32 %v209_v42, %v108_v14 }
 0x10f   :  { %v213_v45 = vpop.f32.mrb[12].mxu0 }
 0x110   :  { %v4460_v46 = vadd.f32 %v213_v45, %v104_v13  ;;  %v215_v47 = vpop.f32.mrb[13].mxu0 }
 0x111   :  { %v4462_v48 = vadd.f32 %v215_v47, %v108_v14 }
 0x113   :  { %v219_v49 = vpop.f32.mrb[14].mxu0 }
 0x114   :  { %v4464_v50 = vadd.f32 %v219_v49, %v104_v13  ;;  %v221_v51 = vpop.f32.mrb[15].mxu0 }
 0x115   :  { %v222_v52 = vadd.f32 %v221_v51, %v108_v14 }
 0x117   :  { %v312_v53 = vadd.f32 %v3257_v8, %v222_v52 }
 0x119   :  { %3917 = vtanh.f32 %v312_v53  ;;  %v2990_v58 = vmul.f32 -1.442695, %v312_v53 }
 0x11a   :  { %3919 = vpow2.f32 %v2989_v55 }
 0x123   :  { %v3918_v54 = vpop.eup %3917 }
 0x124   :  { %333 = vrot.lane.b32.xlu0 %v3918_v54, %s4172_s0  ;;  %v3920_v56 = vpop.eup %3919 }
 0x125   :  { %v319_v57 = vadd.f32 1.0, %v3920_v56 }
 0x127   :  { %3921 = vrcp.f32 %v319_v57 }
 0x128   :  { %3923 = vpow2.f32 %v2990_v58 }
 0x131   :  { %v3922_v59 = vpop.eup %3921 }
 0x132   :  { %v3924_v62 = vpop.eup %3923  ;;  %v327_v4 = vmul.f32 0.0, %v3922_v59 }
 0x133   :  { %v320_v63 = vadd.f32 1.0, %v3924_v62 }
 0x135   :  { %3925 = vrcp.f32 %v320_v63 }
 0x13f   :  { %v3926_v0 = vpop.eup %3925 }
 0x140   :  { %v328_v11 = vmul.f32 0.0, %v3926_v0 }
 0x179   :  { %v332_v60 = vpop.permute.xlu0 %331 }
 0x17a   :  { %v337_v61 = vmul.f32 %v3922_v59, %v332_v60 }
 0x17c   :  { %341 = vrot.lane.b32.xlu1 %v337_v61, %s4172_s0 }
 0x196   :  { %v334_v1 = vpop.permute.xlu0 %333 }
 0x197   :  { %v338_v2 = vmul.f32 %v3926_v0, %v334_v1 }
 0x199   :  { %343 = vrot.lane.b32.xlu1 %v338_v2, %s4172_s0 }
 0x1ee   :  { %v342_v5 = vpop.permute.xlu1 %341 }
 0x1ef   :  { %v4469_v8 = vadd.f32 %v342_v5, %v327_v4 }
 0x1f1   :  { %3927 = vtanh.f32 %v4469_v8 }
 0x1fb   :  { %v3928_v9 = vpop.eup %3927 }
 0x1fc   :  { %353 = vrot.lane.b32.xlu0 %v3928_v9, %s4172_s0 }
 0x20b   :  { %v344_v13 = vpop.permute.xlu1 %343 }
 0x20c   :  { %v4473_v14 = vadd.f32 %v344_v13, %v328_v11 }
 0x20e   :  { %3929 = vtanh.f32 %v4473_v14 }
 0x218   :  { %v3930_v15 = vpop.eup %3929 }
 0x219   :  { %355 = vrot.lane.b32.xlu1 %v3930_v15, %s4172_s0 }
 0x26e   :  { %v354_v16 = vpop.permute.xlu0 %353 }
 0x26f   :  { %v359_v17 = vmul.f32 %v3922_v59, %v354_v16 }
 0x271   :  { %369 = vrot.lane.b32.xlu1 %v359_v17, %s4173_s3  ;;  %363 = vrot.lane.b32.xlu0 %v359_v17, %s4174_s17 }
 0x28b   :  { %v356_v19 = vpop.permute.xlu1 %355 }
 0x28c   :  { %v360_v20 = vmul.f32 %v3926_v0, %v356_v19 }
 0x28e   :  { %371 = vrot.lane.b32.xlu1 %v360_v20, %s4173_s3  ;;  %365 = vrot.lane.b32.xlu0 %v360_v20, %s4174_s17 }
 0x2e3   :  { %v370_v27 = vpop.permute.xlu1 %369  ;;  %v364_v29 = vpop.permute.xlu0 %363 }
 0x2e4   :  { %v376_v32 = vsel %vm375_vm1, %v364_v29, %v370_v27  ;;  %380 = vst.msk [vmem:[#allocation2] sm:$0xff] %vm375_vm1, %v364_v29 }
 0x2e5   :  { %v378_v34 = vmul.f32 %v4483_v25, %v376_v32 }
 0x2e7   :  { %3274 = vmatprep.mubr.msk.f32.mxu1 %vm232_vm2, %v378_v34 }
 0x300   :  { %v372_v35 = vpop.permute.xlu1 %371  ;;  %v366_v38 = vpop.permute.xlu0 %365 }
 0x301   :  { %382 = vst.msk [vmem:[#allocation2 + $0x38] sm:$0xff] %vm381_vm4, %v372_v35  ;;  %v377_v40 = vsel %vm375_vm1, %v366_v38, %v372_v35 }
 0x302   :  { %v379_v42 = vmul.f32 %v4490_v6, %v377_v40 }
 0x304   :  { %3275 = vmatmul.mubr.msk.f32.vlgmr.msra.gmra.mrb[2].mxu1 %vm232_vm2, %v379_v42 }
 0x305   :  { %3648 = vmatpush3.bf16.msra.mxu1 %v4287_v23 }
 0x306   :  { %3650 = vmatprep.subr.bf16.mxu1 %v4308_v31 }
 0x309   :  { %3652 = vmatpush3.bf16.msra.mxu1 %v4308_v31 }
 0x30a   :  { %3654 = vmatprep.subr.bf16.mxu1 %v4321_v36 }
 0x30d   :  { %3656 = vmatpush3.bf16.msra.mxu1 %v4321_v36 }
 0x30e   :  { %3658 = vmatprep.subr.bf16.mxu1 %v4340_v44 }
 0x311   :  { %3660 = vmatpush3.bf16.msra.mxu1 %v4340_v44 }
 0x312   :  { %3678 = vmatprep.subr.bf16.mxu1 %v4287_v23 }
 0x3d7   :  { %v3276_v45 = vpop.f32.mrb[2].mxu1 }
 0x3d8   :  { %v465_v47 = vadd.f32 %v3276_v45, %v4462_v48  ;;  %v455_v49 = vpop.f32.mrb[3].mxu1 }
 0x3d9   :  { %v464_v51 = vadd.f32 %v455_v49, %v4439_v21 }
 0x3da   :  { %3931 = vtanh.f32 %v465_v47  ;;  %v2994_v54 = vmul.f32 -1.442695, %v465_v47 }
 0x3db   :  { %3933 = vtanh.f32 %v464_v51  ;;  %v2993_v55 = vmul.f32 -1.442695, %v464_v51 }
 0x3dc   :  { %3935 = vpow2.f32 %v2994_v54 }
 0x3dd   :  { %3937 = vpow2.f32 %v2993_v55 }
 0x3e4   :  { %v3932_v52 = vpop.eup %3931 }
 0x3e5   :  { %v3934_v53 = vpop.eup %3933  ;;  %486 = vrot.lane.b32.xlu1 %v3932_v52, %s4172_s0 }
 0x3e6   :  { %484 = vrot.lane.b32.xlu0 %v3934_v53, %s4172_s0  ;;  %v3936_v56 = vpop.eup %3935 }
 0x3e7   :  { %v3938_v57 = vpop.eup %3937  ;;  %v473_v58 = vadd.f32 1.0, %v3936_v56 }
 0x3e8   :  { %v472_v59 = vadd.f32 1.0, %v3938_v57 }
 0x3e9   :  { %3939 = vrcp.f32 %v473_v58 }
 0x3ea   :  { %3941 = vrcp.f32 %v472_v59 }
 0x3f3   :  { %v3940_v48 = vpop.eup %3939 }
 0x3f4   :  { %v3942_v60 = vpop.eup %3941  ;;  %v481_v0 = vmul.f32 %v3940_v48, %v4473_v14 }
 0x3f5   :  { %v480_v2 = vmul.f32 %v3942_v60, %v4469_v8 }
 0x457   :  { %v487_v21 = vpop.permute.xlu1 %486 }
 0x458   :  { %v491_v61 = vmul.f32 %v3940_v48, %v487_v21  ;;  %v485_v62 = vpop.permute.xlu0 %484 }
 0x459   :  { %v490_v63 = vmul.f32 %v3942_v60, %v485_v62 }
 0x45a   :  { %496 = vrot.lane.b32.xlu1 %v491_v61, %s4172_s0 }
 0x45b   :  { %494 = vrot.lane.b32.xlu0 %v490_v63, %s4172_s0 }
 0x4cc   :  { %v497_v1 = vpop.permute.xlu1 %496 }
 0x4cd   :  { %v4512_v4 = vadd.f32 %v497_v1, %v481_v0  ;;  %v495_v5 = vpop.permute.xlu0 %494 }
 0x4ce   :  { %v4514_v9 = vadd.f32 %v495_v5, %v480_v2 }
 0x4cf   :  { %3943 = vtanh.f32 %v4512_v4 }
 0x4d0   :  { %3945 = vtanh.f32 %v4514_v9 }
 0x4d9   :  { %v3944_v11 = vpop.eup %3943 }
 0x4da   :  { %v3946_v13 = vpop.eup %3945  ;;  %508 = vrot.lane.b32.xlu1 %v3944_v11, %s4172_s0 }
 0x4db   :  { %506 = vrot.lane.b32.xlu0 %v3946_v13, %s4172_s0 }
 0x54c   :  { %v509_v16 = vpop.permute.xlu1 %508 }
 0x54d   :  { %v507_v15 = vpop.permute.xlu0 %506  ;;  %v513_v8 = vmul.f32 %v3940_v48, %v509_v16 }
 0x54e   :  { %v512_v14 = vmul.f32 %v3942_v60, %v507_v15 }
 0x550   :  { %522 = vrot.lane.b32.xlu1 %v512_v14, %s4173_s3  ;;  %516 = vrot.lane.b32.xlu0 %v512_v14, %s4174_s17 }
 0x554   :  { %524 = vrot.lane.b32.xlu1 %v513_v8, %s4173_s3  ;;  %518 = vrot.lane.b32.xlu0 %v513_v8, %s4174_s17 }
 0x5c2   :  { %v523_v17 = vpop.permute.xlu1 %522  ;;  %v517_v19 = vpop.permute.xlu0 %516 }
 0x5c3   :  { %v528_v20 = vsel %vm375_vm1, %v517_v19, %v523_v17  ;;  %532 = vst.msk [vmem:[#allocation2 + $0x8] sm:$0xff] %vm375_vm1, %v517_v19 }
 0x5c4   :  { %v530_v22 = vmul.f32 %v4483_v25, %v528_v20 }
 0x5c6   :  { %v525_v27 = vpop.permute.xlu1 %524  ;;  %3293 = vmatprep.mubr.msk.f32.mxu1 %vm232_vm2, %v530_v22  ;;  %v519_v29 = vpop.permute.xlu0 %518 }
 0x5c7   :  { %533 = vst.msk [vmem:[#allocation2 + $0x30] sm:$0xff] %vm381_vm4, %v525_v27  ;;  %v529_v32 = vsel %vm375_vm1, %v519_v29, %v525_v27 }
 0x5c8   :  { %v531_v34 = vmul.f32 %v4490_v6, %v529_v32 }
 0x5ca   :  { %3294 = vmatmul.mubr.msk.f32.vlgmr.msra.gmra.mrb[4].mxu1 %vm232_vm2, %v531_v34 }
 0x5cb   :  { %3680 = vmatpush3.bf16.msra.mxu1 %v4287_v23 }
 0x5cc   :  { %3682 = vmatprep.subr.bf16.mxu1 %v4308_v31 }
 0x5cf   :  { %3684 = vmatpush3.bf16.msra.mxu1 %v4308_v31 }
 0x5d0   :  { %3686 = vmatprep.subr.bf16.mxu1 %v4321_v36 }
 0x5d3   :  { %3688 = vmatpush3.bf16.msra.mxu1 %v4321_v36 }
 0x5d4   :  { %3690 = vmatprep.subr.bf16.mxu1 %v4340_v44 }
 0x5d7   :  { %3692 = vmatpush3.bf16.msra.mxu1 %v4340_v44 }
 0x5d8   :  { %3710 = vmatprep.subr.bf16.mxu1 %v4287_v23 }
 0x69d   :  { %v3295_v35 = vpop.f32.mrb[4].mxu1 }
 0x69e   :  { %v616_v38 = vadd.f32 %v3295_v35, %v4458_v43  ;;  %v606_v40 = vpop.f32.mrb[5].mxu1 }
 0x69f   :  { %v615_v42 = vadd.f32 %v606_v40, %v4443_v26 }
 0x6a0   :  { %3947 = vtanh.f32 %v616_v38  ;;  %v2998_v49 = vmul.f32 -1.442695, %v616_v38 }
 0x6a1   :  { %3949 = vtanh.f32 %v615_v42  ;;  %v2997_v51 = vmul.f32 -1.442695, %v615_v42 }
 0x6a2   :  { %3951 = vpow2.f32 %v2998_v49 }
 0x6a3   :  { %3953 = vpow2.f32 %v2997_v51 }
 0x6aa   :  { %v3948_v45 = vpop.eup %3947 }
 0x6ab   :  { %v3950_v47 = vpop.eup %3949  ;;  %637 = vrot.lane.b32.xlu1 %v3948_v45, %s4172_s0 }
 0x6ac   :  { %635 = vrot.lane.b32.xlu0 %v3950_v47, %s4172_s0  ;;  %v3952_v52 = vpop.eup %3951 }
 0x6ad   :  { %v3954_v53 = vpop.eup %3953  ;;  %v624_v54 = vadd.f32 1.0, %v3952_v52 }
 0x6ae   :  { %v623_v55 = vadd.f32 1.0, %v3954_v53 }
 0x6af   :  { %3955 = vrcp.f32 %v624_v54 }
 0x6b0   :  { %3957 = vrcp.f32 %v623_v55 }
 0x6b9   :  { %v3956_v43 = vpop.eup %3955 }
 0x6ba   :  { %v3958_v56 = vpop.eup %3957  ;;  %v632_v48 = vmul.f32 %v3956_v43, %v4512_v4 }
 0x6bb   :  { %v631_v60 = vmul.f32 %v3958_v56, %v4514_v9 }
 0x71d   :  { %v638_v26 = vpop.permute.xlu1 %637 }
 0x71e   :  { %v642_v57 = vmul.f32 %v3956_v43, %v638_v26  ;;  %v636_v58 = vpop.permute.xlu0 %635 }
 0x71f   :  { %v641_v59 = vmul.f32 %v3958_v56, %v636_v58 }
 0x720   :  { %647 = vrot.lane.b32.xlu1 %v642_v57, %s4172_s0 }
 0x721   :  { %645 = vrot.lane.b32.xlu0 %v641_v59, %s4172_s0 }
 0x792   :  { %v648_v21 = vpop.permute.xlu1 %647 }
 0x793   :  { %v4548_v61 = vadd.f32 %v648_v21, %v632_v48  ;;  %v646_v62 = vpop.permute.xlu0 %645 }
 0x794   :  { %v4550_v63 = vadd.f32 %v646_v62, %v631_v60 }
 0x795   :  { %3959 = vtanh.f32 %v4548_v61 }
 0x796   :  { %3961 = vtanh.f32 %v4550_v63 }
 0x79f   :  { %v3960_v0 = vpop.eup %3959 }
 0x7a0   :  { %v3962_v1 = vpop.eup %3961  ;;  %659 = vrot.lane.b32.xlu1 %v3960_v0, %s4172_s0 }
 0x7a1   :  { %657 = vrot.lane.b32.xlu0 %v3962_v1, %s4172_s0 }
 0x812   :  { %v660_v5 = vpop.permute.xlu1 %659 }
 0x813   :  { %v658_v2 = vpop.permute.xlu0 %657  ;;  %v664_v9 = vmul.f32 %v3956_v43, %v660_v5 }
 0x814   :  { %v663_v4 = vmul.f32 %v3958_v56, %v658_v2 }
 0x816   :  { %673 = vrot.lane.b32.xlu1 %v663_v4, %s4173_s3  ;;  %667 = vrot.lane.b32.xlu0 %v663_v4, %s4174_s17 }
 0x81a   :  { %675 = vrot.lane.b32.xlu1 %v664_v9, %s4173_s3  ;;  %669 = vrot.lane.b32.xlu0 %v664_v9, %s4174_s17 }
 0x888   :  { %v674_v11 = vpop.permute.xlu1 %673  ;;  %v668_v13 = vpop.permute.xlu0 %667 }
 0x889   :  { %v679_v15 = vsel %vm375_vm1, %v668_v13, %v674_v11  ;;  %683 = vst.msk [vmem:[#allocation2 + $0x10] sm:$0xff] %vm375_vm1, %v668_v13 }
 0x88a   :  { %v681_v14 = vmul.f32 %v4483_v25, %v679_v15 }
 0x88c   :  { %v676_v16 = vpop.permute.xlu1 %675  ;;  %3312 = vmatprep.mubr.msk.f32.mxu0 %vm232_vm2, %v681_v14  ;;  %v670_v8 = vpop.permute.xlu0 %669 }
 0x88d   :  { %684 = vst.msk [vmem:[#allocation2 + $0x28] sm:$0xff] %vm381_vm4, %v676_v16  ;;  %v680_v17 = vsel %vm375_vm1, %v670_v8, %v676_v16 }
 0x88e   :  { %v682_v19 = vmul.f32 %v4490_v6, %v680_v17 }
 0x890   :  { %3313 = vmatmul.mubr.msk.f32.vlgmr.msra.gmra.mrb[16].mxu0 %vm232_vm2, %v682_v19 }
 0x891   :  { %3696 = vmatpush3.bf16.msra.mxu0 %v4287_v23 }
 0x892   :  { %3698 = vmatprep.subr.bf16.mxu0 %v4308_v31 }
 0x895   :  { %3700 = vmatpush3.bf16.msra.mxu0 %v4308_v31 }
 0x896   :  { %3702 = vmatprep.subr.bf16.mxu0 %v4321_v36 }
 0x899   :  { %3704 = vmatpush3.bf16.msra.mxu0 %v4321_v36 }
 0x89a   :  { %3706 = vmatprep.subr.bf16.mxu0 %v4340_v44 }
 0x89d   :  { %3708 = vmatpush3.bf16.msra.mxu0 %v4340_v44 }
 0x89e   :  { %3726 = vmatprep.subr.bf16.mxu0 %v4287_v23 }
 0x963   :  { %v3314_v20 = vpop.f32.mrb[16].mxu0 }
 0x964   :  { %v767_v22 = vadd.f32 %v3314_v20, %v4454_v39  ;;  %v757_v27 = vpop.f32.mrb[17].mxu0 }
 0x965   :  { %v766_v29 = vadd.f32 %v757_v27, %v4447_v30 }
 0x966   :  { %3963 = vtanh.f32 %v767_v22  ;;  %v3002_v35 = vmul.f32 -1.442695, %v767_v22 }
 0x967   :  { %3965 = vtanh.f32 %v766_v29  ;;  %v3001_v38 = vmul.f32 -1.442695, %v766_v29 }
 0x968   :  { %3967 = vpow2.f32 %v3002_v35 }
 0x969   :  { %3969 = vpow2.f32 %v3001_v38 }
 0x970   :  { %v3964_v32 = vpop.eup %3963 }
 0x971   :  { %v3966_v34 = vpop.eup %3965  ;;  %788 = vrot.lane.b32.xlu1 %v3964_v32, %s4172_s0 }
 0x972   :  { %786 = vrot.lane.b32.xlu0 %v3966_v34, %s4172_s0  ;;  %v3968_v40 = vpop.eup %3967 }
 0x973   :  { %v3970_v42 = vpop.eup %3969  ;;  %v775_v45 = vadd.f32 1.0, %v3968_v40 }
 0x974   :  { %v774_v47 = vadd.f32 1.0, %v3970_v42 }
 0x975   :  { %3971 = vrcp.f32 %v775_v45 }
 0x976   :  { %3973 = vrcp.f32 %v774_v47 }
 0x97f   :  { %v3972_v39 = vpop.eup %3971 }
 0x980   :  { %v3974_v49 = vpop.eup %3973  ;;  %v783_v54 = vmul.f32 %v3972_v39, %v4548_v61 }
 0x981   :  { %v782_v43 = vmul.f32 %v3974_v49, %v4550_v63 }
 0x9e3   :  { %v789_v30 = vpop.permute.xlu1 %788 }
 0x9e4   :  { %v793_v51 = vmul.f32 %v3972_v39, %v789_v30  ;;  %v787_v52 = vpop.permute.xlu0 %786 }
 0x9e5   :  { %v792_v53 = vmul.f32 %v3974_v49, %v787_v52 }
 0x9e6   :  { %798 = vrot.lane.b32.xlu1 %v793_v51, %s4172_s0 }
 0x9e7   :  { %796 = vrot.lane.b32.xlu0 %v792_v53, %s4172_s0 }
 0xa58   :  { %v799_v55 = vpop.permute.xlu1 %798 }
 0xa59   :  { %v4584_v26 = vadd.f32 %v799_v55, %v783_v54  ;;  %v797_v56 = vpop.permute.xlu0 %796 }
 0xa5a   :  { %v4586_v57 = vadd.f32 %v797_v56, %v782_v43 }
 0xa5b   :  { %3975 = vtanh.f32 %v4584_v26 }
 0xa5c   :  { %3977 = vtanh.f32 %v4586_v57 }
 0xa65   :  { %v3976_v58 = vpop.eup %3975 }
 0xa66   :  { %v3978_v59 = vpop.eup %3977  ;;  %810 = vrot.lane.b32.xlu1 %v3976_v58, %s4172_s0 }
 0xa67   :  { %808 = vrot.lane.b32.xlu0 %v3978_v59, %s4172_s0 }
 0xad8   :  { %v811_v60 = vpop.permute.xlu1 %810 }
 0xad9   :  { %v809_v48 = vpop.permute.xlu0 %808  ;;  %v815_v61 = vmul.f32 %v3972_v39, %v811_v60 }
 0xada   :  { %v814_v21 = vmul.f32 %v3974_v49, %v809_v48 }
 0xadc   :  { %824 = vrot.lane.b32.xlu1 %v814_v21, %s4173_s3  ;;  %818 = vrot.lane.b32.xlu0 %v814_v21, %s4174_s17 }
 0xae0   :  { %826 = vrot.lane.b32.xlu1 %v815_v61, %s4173_s3  ;;  %820 = vrot.lane.b32.xlu0 %v815_v61, %s4174_s17 }
 0xb4e   :  { %v825_v62 = vpop.permute.xlu1 %824  ;;  %v819_v63 = vpop.permute.xlu0 %818 }
 0xb4f   :  { %v830_v0 = vsel %vm375_vm1, %v819_v63, %v825_v62  ;;  %834 = vst.msk [vmem:[#allocation2 + $0x18] sm:$0xff] %vm375_vm1, %v819_v63 }
 0xb50   :  { %v832_v1 = vmul.f32 %v4483_v25, %v830_v0 }
 0xb52   :  { %v827_v2 = vpop.permute.xlu1 %826  ;;  %3331 = vmatprep.mubr.msk.f32.mxu1 %vm232_vm2, %v832_v1  ;;  %v821_v4 = vpop.permute.xlu0 %820 }
 0xb53   :  { %835 = vst.msk [vmem:[#allocation2 + $0x20] sm:$0xff] %vm381_vm4, %v827_v2  ;;  %v831_v5 = vsel %vm375_vm1, %v821_v4, %v827_v2 }
 0xb54   :  { %v833_v9 = vmul.f32 %v4490_v6, %v831_v5 }
 0xb56   :  { %3332 = vmatmul.mubr.msk.f32.vlgmr.msra.gmra.mrb[6].mxu1 %vm232_vm2, %v833_v9 }
 0xb57   :  { %3712 = vmatpush3.bf16.msra.mxu1 %v4287_v23 }
 0xb58   :  { %3714 = vmatprep.subr.bf16.mxu1 %v4308_v31 }
 0xb5b   :  { %3716 = vmatpush3.bf16.msra.mxu1 %v4308_v31 }
 0xb5c   :  { %3718 = vmatprep.subr.bf16.mxu1 %v4321_v36 }
 0xb5f   :  { %3720 = vmatpush3.bf16.msra.mxu1 %v4321_v36 }
 0xb60   :  { %3722 = vmatprep.subr.bf16.mxu1 %v4340_v44 }
 0xb63   :  { %3724 = vmatpush3.bf16.msra.mxu1 %v4340_v44 }
 0xc29   :  { %v3333_v11 = vpop.f32.mrb[6].mxu1 }
 0xc2a   :  { %v918_v13 = vadd.f32 %v3333_v11, %v4449_v33  ;;  %v908_v15 = vpop.f32.mrb[7].mxu1 }
 0xc2b   :  { %v917_v14 = vadd.f32 %v908_v15, %v4452_v37 }
 0xc2c   :  { %3979 = vtanh.f32 %v918_v13  ;;  %v3006_v17 = vmul.f32 -1.442695, %v918_v13 }
 0xc2d   :  { %3981 = vtanh.f32 %v917_v14  ;;  %v3005_v19 = vmul.f32 -1.442695, %v917_v14 }
 0xc2e   :  { %3983 = vpow2.f32 %v3006_v17 }
 0xc2f   :  { %3985 = vpow2.f32 %v3005_v19 }
 0xc36   :  { %v3980_v16 = vpop.eup %3979 }
 0xc37   :  { %v3982_v8 = vpop.eup %3981  ;;  %939 = vrot.lane.b32.xlu1 %v3980_v16, %s4172_s0 }
 0xc38   :  { %937 = vrot.lane.b32.xlu0 %v3982_v8, %s4172_s0  ;;  %v3984_v20 = vpop.eup %3983 }
 0xc39   :  { %v3986_v22 = vpop.eup %3985  ;;  %v926_v27 = vadd.f32 1.0, %v3984_v20 }
 0xc3a   :  { %v925_v29 = vadd.f32 1.0, %v3986_v22 }
 0xc3b   :  { %3987 = vrcp.f32 %v926_v27 }
 0xc3c   :  { %3989 = vrcp.f32 %v925_v29 }
 0xc45   :  { %v3988_v33 = vpop.eup %3987 }
 0xc46   :  { %v3990_v32 = vpop.eup %3989  ;;  %v934_v40 = vmul.f32 %v3988_v33, %v4584_v26 }
 0xc47   :  { %v933_v45 = vmul.f32 %v3990_v32, %v4586_v57 }
 0xca9   :  { %v940_v37 = vpop.permute.xlu1 %939 }
 0xcaa   :  { %v944_v34 = vmul.f32 %v3988_v33, %v940_v37  ;;  %v938_v35 = vpop.permute.xlu0 %937 }
 0xcab   :  { %v943_v38 = vmul.f32 %v3990_v32, %v938_v35 }
 0xcac   :  { %949 = vrot.lane.b32.xlu1 %v944_v34, %s4172_s0 }
 0xcad   :  { %947 = vrot.lane.b32.xlu0 %v943_v38, %s4172_s0 }
 0xd1e   :  { %v950_v42 = vpop.permute.xlu1 %949 }
 0xd1f   :  { %v4619_v47 = vadd.f32 %v950_v42, %v934_v40  ;;  %v948_v39 = vpop.permute.xlu0 %947 }
 0xd20   :  { %v4621_v30 = vadd.f32 %v948_v39, %v933_v45 }
 0xd21   :  { %3991 = vtanh.f32 %v4619_v47 }
 0xd22   :  { %3993 = vtanh.f32 %v4621_v30 }
 0xd2b   :  { %v3992_v49 = vpop.eup %3991 }
 0xd2c   :  { %v3994_v51 = vpop.eup %3993  ;;  %961 = vrot.lane.b32.xlu1 %v3992_v49, %s4172_s0 }
 0xd2d   :  { %959 = vrot.lane.b32.xlu0 %v3994_v51, %s4172_s0 }
 0xd9e   :  { %v962_v54 = vpop.permute.xlu1 %961 }
 0xd9f   :  { %v960_v52 = vpop.permute.xlu0 %959  ;;  %v966_v55 = vmul.f32 %v3988_v33, %v962_v54 }
 0xda0   :  { %v965_v53 = vmul.f32 %v3990_v32, %v960_v52 }
 0xda2   :  { %975 = vrot.lane.b32.xlu1 %v965_v53, %s4173_s3  ;;  %969 = vrot.lane.b32.xlu0 %v965_v53, %s4174_s17 }
 0xda6   :  { %977 = vrot.lane.b32.xlu1 %v966_v55, %s4173_s3  ;;  %971 = vrot.lane.b32.xlu0 %v966_v55, %s4174_s17 }
 0xe14   :  { %v976_v43 = vpop.permute.xlu1 %975  ;;  %v970_v26 = vpop.permute.xlu0 %969 }
 0xe15   :  { %v981_v56 = vsel %vm375_vm1, %v970_v26, %v976_v43  ;;  %985 = vst.msk [vmem:[#allocation2 + $0x20] sm:$0xff] %vm375_vm1, %v970_v26 }
 0xe16   :  { %v983_v57 = vmul.f32 %v4483_v25, %v981_v56 }
 0xe18   :  { %v978_v58 = vpop.permute.xlu1 %977  ;;  %3350 = vmatprep.mubr.msk.f32.mxu0 %vm232_vm2, %v983_v57  ;;  %v972_v59 = vpop.permute.xlu0 %971 }
 0xe19   :  { %986 = vst.msk [vmem:[#allocation2 + $0x18] sm:$0xff] %vm381_vm4, %v978_v58  ;;  %v982_v48 = vsel %vm375_vm1, %v972_v59, %v978_v58 }
 0xe1a   :  { %v984_v21 = vmul.f32 %v4490_v6, %v982_v48 }
 0xe1c   :  { %3351 = vmatmul.mubr.msk.f32.vlgmr.msra.gmra.mrb[18].mxu0 %vm232_vm2, %v984_v21 }
 0xe1d   :  { %3728 = vmatpush3.bf16.msra.mxu0 %v4287_v23 }
 0xe1e   :  { %3730 = vmatprep.subr.bf16.mxu0 %v4308_v31 }
 0xe21   :  { %3732 = vmatpush3.bf16.msra.mxu0 %v4308_v31 }
 0xe22   :  { %3734 = vmatprep.subr.bf16.mxu0 %v4321_v36 }
 0xe25   :  { %3736 = vmatpush3.bf16.msra.mxu0 %v4321_v36 }
 0xe26   :  { %3738 = vmatprep.subr.bf16.mxu0 %v4340_v44 }
 0xe29   :  { %3740 = vmatpush3.bf16.msra.mxu0 %v4340_v44 }
 0xeef   :  { %v3352_v60 = vpop.f32.mrb[18].mxu0 }
 0xef0   :  { %v1069_v61 = vadd.f32 %v3352_v60, %v4445_v28  ;;  %v1059_v62 = vpop.f32.mrb[19].mxu0 }
 0xef1   :  { %v1068_v63 = vadd.f32 %v1059_v62, %v4456_v41 }
 0xef2   :  { %3995 = vtanh.f32 %v1069_v61  ;;  %v3010_v31 = vmul.f32 -1.442695, %v1069_v61 }
 0xef3   :  { %3997 = vtanh.f32 %v1068_v63  ;;  %v3009_v36 = vmul.f32 -1.442695, %v1068_v63 }
 0xef4   :  { %3999 = vpow2.f32 %v3010_v31 }
 0xef5   :  { %4001 = vpow2.f32 %v3009_v36 }
 0xefc   :  { %v3996_v23 = vpop.eup %3995 }
 0xefd   :  { %v3998_v0 = vpop.eup %3997  ;;  %1090 = vrot.lane.b32.xlu1 %v3996_v23, %s4172_s0 }
 0xefe   :  { %1088 = vrot.lane.b32.xlu0 %v3998_v0, %s4172_s0  ;;  %v4000_v1 = vpop.eup %3999 }
 0xeff   :  { %v4002_v44 = vpop.eup %4001  ;;  %v1077_v2 = vadd.f32 1.0, %v4000_v1 }
 0xf00   :  { %v1076_v4 = vadd.f32 1.0, %v4002_v44 }
 0xf01   :  { %4003 = vrcp.f32 %v1077_v2 }
 0xf02   :  { %4005 = vrcp.f32 %v1076_v4 }
 0xf0b   :  { %v4004_v28 = vpop.eup %4003 }
 0xf0c   :  { %v4006_v5 = vpop.eup %4005  ;;  %v1085_v15 = vmul.f32 %v4004_v28, %v4619_v47 }
 0xf0d   :  { %v1084_v16 = vmul.f32 %v4006_v5, %v4621_v30 }
 0xf6f   :  { %v1091_v41 = vpop.permute.xlu1 %1090 }
 0xf70   :  { %v1095_v9 = vmul.f32 %v4004_v28, %v1091_v41  ;;  %v1089_v11 = vpop.permute.xlu0 %1088 }
 0xf71   :  { %v1094_v13 = vmul.f32 %v4006_v5, %v1089_v11 }
 0xf72   :  { %1100 = vrot.lane.b32.xlu1 %v1095_v9, %s4172_s0 }
 0xf73   :  { %1098 = vrot.lane.b32.xlu0 %v1094_v13, %s4172_s0 }
 0xfe4   :  { %v1101_v14 = vpop.permute.xlu1 %1100 }
 0xfe5   :  { %v1105_v8 = vadd.f32 %v1101_v14, %v1085_v15  ;;  %v1099_v17 = vpop.permute.xlu0 %1098 }
 0xfe6   :  { %v1104_v19 = vadd.f32 %v1099_v17, %v1084_v16 }
 0xfe7   :  { %4007 = vtanh.f32 %v1105_v8 }
 0xfe8   :  { %4009 = vtanh.f32 %v1104_v19 }
 0xff1   :  { %v4008_v20 = vpop.eup %4007 }
 0xff2   :  { %v4010_v22 = vpop.eup %4009  ;;  %1112 = vrot.lane.b32.xlu1 %v4008_v20, %s4172_s0 }
 0xff3   :  { %1110 = vrot.lane.b32.xlu0 %v4010_v22, %s4172_s0 }
0x1064   :  { %v1113_v33 = vpop.permute.xlu1 %1112 }
0x1065   :  { %v1111_v27 = vpop.permute.xlu0 %1110  ;;  %v1117_v37 = vmul.f32 %v4004_v28, %v1113_v33 }
0x1066   :  { %v1116_v29 = vmul.f32 %v4006_v5, %v1111_v27 }
0x1068   :  { %1126 = vrot.lane.b32.xlu1 %v1116_v29, %s4173_s3  ;;  %1120 = vrot.lane.b32.xlu0 %v1116_v29, %s4174_s17 }
0x106c   :  { %1128 = vrot.lane.b32.xlu1 %v1117_v37, %s4173_s3  ;;  %1122 = vrot.lane.b32.xlu0 %v1117_v37, %s4174_s17 }
0x10da   :  { %v1127_v32 = vpop.permute.xlu1 %1126  ;;  %v1121_v34 = vpop.permute.xlu0 %1120 }
0x10db   :  { %v1132_v35 = vsel %vm375_vm1, %v1121_v34, %v1127_v32  ;;  %1136 = vst.msk [vmem:[#allocation2 + $0x28] sm:$0xff] %vm375_vm1, %v1121_v34 }
0x10dc   :  { %v1134_v38 = vmul.f32 %v4483_v25, %v1132_v35 }
0x10de   :  { %v1129_v40 = vpop.permute.xlu1 %1128  ;;  %3369 = vmatprep.mubr.msk.f32.mxu1 %vm232_vm2, %v1134_v38  ;;  %v1123_v42 = vpop.permute.xlu0 %1122 }
0x10df   :  { %1137 = vst.msk [vmem:[#allocation2 + $0x10] sm:$0xff] %vm381_vm4, %v1129_v40  ;;  %v1133_v45 = vsel %vm375_vm1, %v1123_v42, %v1129_v40 }
0x10e0   :  { %v1135_v47 = vmul.f32 %v4490_v6, %v1133_v45 }
0x10e2   :  { %3370 = vmatmul.mubr.msk.f32.vlgmr.msra.gmra.mrb[8].mxu1 %vm232_vm2, %v1135_v47 }
0x10e3   :  { %1554 = vmatprep.mubr.f32.mxu1 %v4171_v3 }
0x11b5   :  { %v3371_v39 = vpop.f32.mrb[8].mxu1 }
0x11b6   :  { %v1220_v30 = vadd.f32 %v3371_v39, %v4441_v24  ;;  %v1210_v49 = vpop.f32.mrb[9].mxu1 }
0x11b7   :  { %v1219_v51 = vadd.f32 %v1210_v49, %v4460_v46 }
0x11b8   :  { %4011 = vtanh.f32 %v1220_v30  ;;  %v3014_v54 = vmul.f32 -1.442695, %v1220_v30 }
0x11b9   :  { %4013 = vtanh.f32 %v1219_v51  ;;  %v3013_v55 = vmul.f32 -1.442695, %v1219_v51 }
0x11ba   :  { %4015 = vpow2.f32 %v3014_v54  ;;  %v1438_v54 = vld [vmem:[%s5170_s4] sm:$0xff] }
0x11bb   :  { %4017 = vpow2.f32 %v3013_v55 }
0x11c2   :  { %v4012_v52 = vpop.eup %4011 }
0x11c3   :  { %v4014_v53 = vpop.eup %4013  ;;  %1241 = vrot.lane.b32.xlu1 %v4012_v52, %s4172_s0  ;;  %v1439_v52 = vld [vmem:[%s5170_s4 + $0x8] sm:$0xff] }
0x11c4   :  { %1239 = vrot.lane.b32.xlu0 %v4014_v53, %s4172_s0  ;;  %v4016_v43 = vpop.eup %4015  ;;  %v1441_v53 = vld [vmem:[%s5170_s4 + $0x18] sm:$0xff] }
0x11c5   :  { %v4018_v26 = vpop.eup %4017  ;;  %v1228_v56 = vadd.f32 1.0, %v4016_v43  ;;  %v3741_v55 = vpack.c.bf16 %v1441_v53, %v1439_v52  ;;  %v1440_v43 = vld [vmem:[%s5170_s4 + $0x10] sm:$0xff] }
0x11c6   :  { %v1227_v57 = vadd.f32 1.0, %v4018_v26  ;;  %v1603_v26 = vld [vmem:[%s5171_s5] sm:$0xff] }
0x11c7   :  { %4019 = vrcp.f32 %v1228_v56  ;;  %v1604_v56 = vld [vmem:[%s5171_s5 + $0x8] sm:$0xff]  ;;  %3742 = vmatprep.subr.bf16.mxu1 %v3741_v55 }
0x11c8   :  { %4021 = vrcp.f32 %v1227_v57  ;;  %v3743_v57 = vpack.c.bf16 %v1440_v43, %v1438_v54 }
0x11ca   :  { %3744 = vmatpush1.bf16.msra.mxu1 %v3743_v57 }
0x11d1   :  { %v4020_v24 = vpop.eup %4019 }
0x11d2   :  { %v4022_v58 = vpop.eup %4021  ;;  %v1236_v60 = vmul.f32 %v4020_v24, %v1105_v8 }
0x11d3   :  { %v1235_v62 = vmul.f32 %v4022_v58, %v1104_v19 }
0x1235   :  { %v1242_v46 = vpop.permute.xlu1 %1241 }
0x1236   :  { %v1246_v59 = vmul.f32 %v4020_v24, %v1242_v46  ;;  %v1240_v48 = vpop.permute.xlu0 %1239  ;;  %v1443_v46 = vld [vmem:[%s5170_s4 + $0x28] sm:$0xff] }
0x1237   :  { %v1245_v21 = vmul.f32 %v4022_v58, %v1240_v48 }
0x1238   :  { %1251 = vrot.lane.b32.xlu1 %v1246_v59, %s4172_s0  ;;  %v1442_v59 = vld [vmem:[%s5170_s4 + $0x20] sm:$0xff] }
0x1239   :  { %1249 = vrot.lane.b32.xlu0 %v1245_v21, %s4172_s0  ;;  %v1444_v21 = vld [vmem:[%s5170_s4 + $0x30] sm:$0xff] }
0x12aa   :  { %v1252_v61 = vpop.permute.xlu1 %1251 }
0x12ab   :  { %v1256_v63 = vadd.f32 %v1252_v61, %v1236_v60  ;;  %v1250_v23 = vpop.permute.xlu0 %1249  ;;  %v1605_v60 = vld [vmem:[%s5171_s5 + $0x10] sm:$0xff]  ;;  %v1606_v61 = vld [vmem:[%s5171_s5 + $0x18] sm:$0xff] }
0x12ac   :  { %v1255_v0 = vadd.f32 %v1250_v23, %v1235_v62  ;;  %v3747_v62 = vpack.c.bf16 %v1444_v21, %v1442_v59 }
0x12ad   :  { %4023 = vtanh.f32 %v1256_v63 }
0x12ae   :  { %4025 = vtanh.f32 %v1255_v0 }
0x12b7   :  { %v4024_v31 = vpop.eup %4023 }
0x12b8   :  { %v4026_v36 = vpop.eup %4025  ;;  %1263 = vrot.lane.b32.xlu1 %v4024_v31, %s4172_s0  ;;  %v1447_v31 = vld [vmem:[%s5170_s4 + $0x48] sm:$0xff] }
0x12b9   :  { %1261 = vrot.lane.b32.xlu0 %v4026_v36, %s4172_s0  ;;  %v1449_v36 = vld [vmem:[%s5170_s4 + $0x58] sm:$0xff] }
0x132a   :  { %v1264_v2 = vpop.permute.xlu1 %1263 }
0x132b   :  { %v1262_v1 = vpop.permute.xlu0 %1261  ;;  %v1268_v4 = vmul.f32 %v4020_v24, %v1264_v2  ;;  %v4722_v24 = vpack.c.bf16 %v1604_v56, %v1603_v26  ;;  %v1448_v2 = vld [vmem:[%s5170_s4 + $0x50] sm:$0xff] }
0x132c   :  { %v1267_v44 = vmul.f32 %v4022_v58, %v1262_v1  ;;  %v1445_v58 = vld [vmem:[%s5170_s4 + $0x38] sm:$0xff]  ;;  %v3749_v1 = vpack.c.bf16 %v1449_v36, %v1447_v31 }
0x132d   :  { %v3745_v48 = vpack.c.bf16 %v1445_v58, %v1443_v46  ;;  %3758 = vmatprep.subr.bf16.mxu0 %v4722_v24 }
0x132e   :  { %1277 = vrot.lane.b32.xlu1 %v1267_v44, %s4173_s3  ;;  %1271 = vrot.lane.b32.xlu0 %v1267_v44, %s4174_s17  ;;  %v1446_v44 = vld [vmem:[%s5170_s4 + $0x40] sm:$0xff] }
0x132f   :  { %3746 = vmatprep.subr.bf16.mxu1 %v3745_v48 }
0x1330   :  { %3748 = vmatpush1.bf16.msra.mxu1 %v3747_v62 }
0x1331   :  { %3750 = vmatprep.subr.bf16.mxu1 %v3749_v1 }
0x1332   :  { %1279 = vrot.lane.b32.xlu1 %v1268_v4, %s4173_s3  ;;  %1273 = vrot.lane.b32.xlu0 %v1268_v4, %s4174_s17  ;;  %v1607_v4 = vld [vmem:[%s5171_s5 + $0x20] sm:$0xff] }
0x13a0   :  { %v1278_v28 = vpop.permute.xlu1 %1277  ;;  %v1272_v41 = vpop.permute.xlu0 %1271 }
0x13a1   :  { %v1283_v5 = vsel %vm375_vm1, %v1272_v41, %v1278_v28  ;;  %1287 = vst.msk [vmem:[#allocation2 + $0x30] sm:$0xff] %vm375_vm1, %v1272_v41  ;;  %v3751_v28 = vpack.c.bf16 %v1448_v2, %v1446_v44  ;;  %v1608_v41 = vld [vmem:[%s5171_s5 + $0x28] sm:$0xff] }
0x13a2   :  { %v1285_v9 = vmul.f32 %v4483_v25, %v1283_v5  ;;  %v4768_v5 = vpack.c.bf16 %v1608_v41, %v1607_v4 }
0x13a3   :  { %3752 = vmatpush1.bf16.msra.mxu1 %v3751_v28 }
0x13a4   :  { %v1280_v11 = vpop.permute.xlu1 %1279  ;;  %3388 = vmatprep.mubr.msk.f32.mxu0 %vm232_vm2, %v1285_v9  ;;  %v1274_v13 = vpop.permute.xlu0 %1273  ;;  %v1451_v9 = vld [vmem:[%s5170_s4 + $0x68] sm:$0xff] }
0x13a5   :  { %1288 = vst.msk [vmem:[#allocation2 + $0x8] sm:$0xff] %vm381_vm4, %v1280_v11  ;;  %v1284_v15 = vsel %vm375_vm1, %v1274_v13, %v1280_v11  ;;  %v1453_v11 = vld [vmem:[%s5170_s4 + $0x78] sm:$0xff]  ;;  %v1450_v13 = vld [vmem:[%s5170_s4 + $0x60] sm:$0xff] }
0x13a6   :  { %v1286_v14 = vmul.f32 %v4490_v6, %v1284_v15  ;;  %v3753_v15 = vpack.c.bf16 %v1453_v11, %v1451_v9 }
0x13a8   :  { %3389 = vmatmul.mubr.msk.f32.vlgmr.msra.gmra.mrb[20].mxu0 %vm232_vm2, %v1286_v14  ;;  %v1452_v14 = vld [vmem:[%s5170_s4 + $0x70] sm:$0xff]  ;;  %3754 = vmatprep.subr.bf16.mxu1 %v3753_v15 }
0x13a9   :  { %3407 = vmatprep.mubr.f32.mxu0 %v4171_v3  ;;  %3760 = vmatpush3.bf16.msra.mxu0 %v4722_v24 }
0x147b   :  { %v3390_v16 = vpop.f32.mrb[20].mxu0 }
0x147c   :  { %v1371_v8 = vadd.f32 %v3390_v16, %v4437_v18  ;;  %v1361_v17 = vpop.f32.mrb[21].mxu0  ;;  %v1609_v16 = vld [vmem:[%s5171_s5 + $0x30] sm:$0xff] }
0x147d   :  { %v1370_v19 = vadd.f32 %v1361_v17, %v4464_v50  ;;  %v3755_v17 = vpack.c.bf16 %v1452_v14, %v1450_v13 }
0x147e   :  { %4027 = vtanh.f32 %v1371_v8  ;;  %v3018_v27 = vmul.f32 -1.442695, %v1371_v8  ;;  %v1610_v8 = vld [vmem:[%s5171_s5 + $0x38] sm:$0xff] }
0x147f   :  { %4029 = vtanh.f32 %v1370_v19  ;;  %v3017_v29 = vmul.f32 -1.442695, %v1370_v19  ;;  %v4790_v19 = vpack.c.bf16 %v1610_v8, %v1609_v16  ;;  %3756 = vmatpush1.bf16.msra.mxu1 %v3755_v17 }
0x1480   :  { %4031 = vpow2.f32 %v3018_v27  ;;  %3790 = vmatprep.subr.bf16.mxu1 %v4722_v24 }
0x1481   :  { %4033 = vpow2.f32 %v3017_v29 }
0x1488   :  { %v4028_v20 = vpop.eup %4027 }
0x1489   :  { %v4030_v22 = vpop.eup %4029  ;;  %1392 = vrot.lane.b32.xlu0 %v4028_v20, %s4172_s0 }
0x148a   :  { %1390 = vrot.lane.b32.xlu1 %v4030_v22, %s4172_s0  ;;  %v4032_v33 = vpop.eup %4031 }
0x148b   :  { %v4034_v37 = vpop.eup %4033  ;;  %v1379_v32 = vadd.f32 1.0, %v4032_v33 }
0x148c   :  { %v1378_v34 = vadd.f32 1.0, %v4034_v37 }
0x148d   :  { %4035 = vrcp.f32 %v1379_v32 }
0x148e   :  { %4037 = vrcp.f32 %v1378_v34  ;;  %v1431_v34 = vld [vmem:[#allocation2 + $0x8] sm:$0xff] }
0x1497   :  { %v4694_v18 = vpop.eup %4035 }
0x1498   :  { %v4696_v35 = vpop.eup %4037  ;;  %v1387_v45 = vmul.f32 %v4694_v18, %v1256_v63  ;;  %v4743_v63 = vpack.c.bf16 %v1606_v61, %v1605_v60 }
0x1499   :  { %v1386_v39 = vmul.f32 %v4696_v35, %v1255_v0 }
0x149a   :  { %3762 = vmatprep.subr.bf16.mxu0 %v4743_v63 }
0x149b   :  { %3764 = vmatpush3.bf16.msra.mxu0 %v4743_v63 }
0x149c   :  { %3766 = vmatprep.subr.bf16.mxu0 %v4768_v5 }
0x149f   :  { %3768 = vmatpush3.bf16.msra.mxu0 %v4768_v5 }
0x14a0   :  { %3770 = vmatprep.subr.bf16.mxu0 %v4790_v19 }
0x14a3   :  { %3772 = vmatpush3.bf16.msra.mxu0 %v4790_v19 }
0x14a4   :  { %3774 = vmatprep.subr.bf16.mxu0 %v4722_v24 }
0x14a6   :  { %3408 = vmatmul.mubr.f32.vlgmr.msra.gmra.mrb[22].mxu0 %v4171_v3 }
0x14a7   :  { %3776 = vmatpush3.bf16.msra.mxu0 %v4722_v24 }
0x14a8   :  { %3778 = vmatprep.subr.bf16.mxu0 %v4743_v63 }
0x14ab   :  { %3780 = vmatpush3.bf16.msra.mxu0 %v4743_v63 }
0x14ac   :  { %3782 = vmatprep.subr.bf16.mxu0 %v4768_v5 }
0x14af   :  { %3784 = vmatpush3.bf16.msra.mxu0 %v4768_v5 }
0x14b0   :  { %3786 = vmatprep.subr.bf16.mxu0 %v4790_v19 }
0x14b3   :  { %3788 = vmatpush3.bf16.msra.mxu0 %v4790_v19 }
0x14b4   :  { %3806 = vmatprep.subr.bf16.mxu0 %v4722_v24 }
0x14fb   :  { %v1393_v50 = vpop.permute.xlu0 %1392 }
0x14fc   :  { %v1397_v38 = vmul.f32 %v4694_v18, %v1393_v50  ;;  %v1391_v40 = vpop.permute.xlu1 %1390  ;;  %v1433_v50 = vld [vmem:[#allocation2 + $0x18] sm:$0xff] }
0x14fd   :  { %v1396_v42 = vmul.f32 %v4696_v35, %v1391_v40  ;;  %v1436_v40 = vld [vmem:[#allocation2 + $0x30] sm:$0xff] }
0x14fe   :  { %1402 = vrot.lane.b32.xlu0 %v1397_v38, %s4172_s0  ;;  %v1435_v38 = vld [vmem:[#allocation2 + $0x28] sm:$0xff] }
0x14ff   :  { %1400 = vrot.lane.b32.xlu1 %v1396_v42, %s4172_s0 }
0x1570   :  { %v1403_v47 = vpop.permute.xlu0 %1402 }
0x1571   :  { %v1407_v30 = vadd.f32 %v1403_v47, %v1387_v45  ;;  %v1401_v49 = vpop.permute.xlu1 %1400 }
0x1572   :  { %v1406_v51 = vadd.f32 %v1401_v49, %v1386_v39  ;;  %v1454_v39 = vld [vmem:[%s5172_s6] sm:$0x3] }
0x1573   :  { %4039 = vtanh.f32 %v1407_v30  ;;  %v1459_v30 = vrot.slane %v1454_v39, %v103_v10  ;;  %v1463_v49 = vrot.slane %v1454_v39, %v107_v12 }
0x1574   :  { %4041 = vtanh.f32 %v1406_v51 }
0x1579   :  { %v3409_v45 = vpop.f32.mrb[22].mxu0 }
0x157a   :  { %v1677_v47 = vpop.f32.mrb[23].mxu0 }
0x157d   :  { %v4040_v23 = vpop.eup %4039 }
0x157e   :  { %v4042_v0 = vpop.eup %4041  ;;  %1414 = vrot.lane.b32.xlu0 %v4040_v23, %s4172_s0 }
0x157f   :  { %1412 = vrot.lane.b32.xlu1 %v4042_v0, %s4172_s0 }
0x15f0   :  { %v1415_v20 = vpop.permute.xlu0 %1414 }
0x15f1   :  { %v1419_v22 = vmul.f32 %v4694_v18, %v1415_v20  ;;  %v1413_v27 = vpop.permute.xlu1 %1412  ;;  %v1432_v18 = vld [vmem:[#allocation2 + $0x10] sm:$0xff] }
0x15f2   :  { %v1418_v29 = vmul.f32 %v4696_v35, %v1413_v27  ;;  %v1434_v35 = vld [vmem:[#allocation2 + $0x20] sm:$0xff] }
0x15f3   :  { %1426 = vrot.lane.b32.xlu0 %v1419_v22, %s4173_s3 }
0x15f4   :  { %1421 = vrot.lane.b32.xlu1 %v1418_v29, %s4174_s17 }
0x1665   :  { %v1427_v33 = vpop.permute.xlu0 %1426 }
0x1666   :  { %1429 = vst.msk [vmem:[#allocation2] sm:$0xff] %vm381_vm4, %v1427_v33  ;;  %v1422_v37 = vpop.permute.xlu1 %1421 }
0x1667   :  { %1424 = vst.msk [vmem:[#allocation2 + $0x38] sm:$0xff] %vm375_vm1, %v1422_v37 }
0x166d   :  { %v1430_v32 = vld [vmem:[#allocation2] sm:$0xff] }
0x166e   :  { %3019 = vmatmul.mubr.msk.f32.vlgmr.msra.gmra.mrb[10].mxu1 %vm232_vm2, %v1430_v32  ;;  %v1437_v42 = vld [vmem:[#allocation2 + $0x38] sm:$0xff] }
0x166f   :  { %1560 = vmatprep.mubr.f32.mxu1 %v4171_v3  ;;  %3792 = vmatpush3.bf16.msra.mxu1 %v4722_v24 }
0x1670   :  { %3794 = vmatprep.subr.bf16.mxu1 %v4743_v63 }
0x1672   :  { %3020 = vmatmul.mubr.msk.f32.gmra.mrb[12].mxu1 %vm232_vm2, %v1431_v34 }
0x1673   :  { %1566 = vmatprep.mubr.f32.mxu1 %v4171_v3  ;;  %3796 = vmatpush3.bf16.msra.mxu1 %v4743_v63 }
0x1674   :  { %3798 = vmatprep.subr.bf16.mxu1 %v4768_v5 }
0x1676   :  { %3021 = vmatmul.mubr.msk.f32.gmra.mrb[14].mxu1 %vm232_vm2, %v1432_v18 }
0x1677   :  { %1572 = vmatprep.mubr.f32.mxu1 %v4171_v3  ;;  %3800 = vmatpush3.bf16.msra.mxu1 %v4768_v5 }
0x1678   :  { %3802 = vmatprep.subr.bf16.mxu1 %v4790_v19 }
0x167a   :  { %3022 = vmatmul.mubr.msk.f32.gmra.mrb[16].mxu1 %vm232_vm2, %v1433_v50 }
0x167b   :  { %1578 = vmatprep.mubr.f32.mxu1 %v4171_v3  ;;  %3804 = vmatpush3.bf16.msra.mxu1 %v4790_v19 }
0x167c   :  { %3822 = vmatprep.subr.bf16.mxu1 %v4722_v24 }
0x167e   :  { %3023 = vmatmul.mubr.msk.f32.gmra.mrb[18].mxu1 %vm232_vm2, %v1434_v35 }
0x167f   :  { %1584 = vmatprep.mubr.f32.mxu1 %v4171_v3 }
0x1682   :  { %3024 = vmatmul.mubr.msk.f32.gmra.mrb[20].mxu1 %vm232_vm2, %v1435_v38 }
0x1683   :  { %1590 = vmatprep.mubr.f32.mxu1 %v4171_v3 }
0x1686   :  { %3025 = vmatmul.mubr.msk.f32.gmra.mrb[22].mxu1 %vm232_vm2, %v1436_v40 }
0x1687   :  { %1596 = vmatprep.mubr.f32.mxu1 %v4171_v3 }
0x168a   :  { %3026 = vmatmul.mubr.msk.f32.gmra.mrb[24].mxu1 %vm232_vm2, %v1437_v42 }
0x1741   :  { %v1556_v51 = vpop.f32.mrb[10].mxu1 }
0x1742   :  { %v1557_v52 = vadd.f32 %v1556_v51, %v1459_v30  ;;  %v1558_v53 = vpop.f32.mrb[11].mxu1 }
0x1743   :  { %v4841_v54 = vadd.f32 %v1558_v53, %v1463_v49 }
0x1744   :  { %v1686_v55 = vadd.f32 %v1677_v47, %v1557_v52 }
0x1745   :  { %v1562_v43 = vpop.f32.mrb[12].mxu1 }
0x1746   :  { %4043 = vtanh.f32 %v1686_v55  ;;  %v4843_v26 = vadd.f32 %v1562_v43, %v1459_v30  ;;  %v1564_v56 = vpop.f32.mrb[13].mxu1  ;;  %v3027_v8 = vmul.f32 -1.442695, %v1686_v55 }
0x1747   :  { %v4845_v57 = vadd.f32 %v1564_v56, %v1463_v49 }
0x1749   :  { %v1568_v46 = vpop.f32.mrb[14].mxu1 }
0x174a   :  { %v4847_v58 = vadd.f32 %v1568_v46, %v1459_v30  ;;  %v1570_v10 = vpop.f32.mrb[15].mxu1 }
0x174b   :  { %v4849_v59 = vadd.f32 %v1570_v10, %v1463_v49 }
0x174d   :  { %v1574_v7 = vpop.f32.mrb[16].mxu1 }
0x174e   :  { %v4851_v12 = vadd.f32 %v1574_v7, %v1459_v30  ;;  %v1576_v48 = vpop.f32.mrb[17].mxu1 }
0x174f   :  { %v4853_v21 = vadd.f32 %v1576_v48, %v1463_v49 }
0x1750   :  { %v4044_v60 = vpop.eup %4043 }
0x1751   :  { %v1580_v61 = vpop.f32.mrb[18].mxu1  ;;  %1706 = vrot.lane.b32.xlu0 %v4044_v60, %s4172_s0 }
0x1752   :  { %v4856_v62 = vadd.f32 %v1580_v61, %v1459_v30  ;;  %v1582_v23 = vpop.f32.mrb[19].mxu1 }
0x1753   :  { %v4858_v0 = vadd.f32 %v1582_v23, %v1463_v49 }
0x1755   :  { %v1586_v31 = vpop.f32.mrb[20].mxu1 }
0x1756   :  { %v4860_v36 = vadd.f32 %v1586_v31, %v1459_v30  ;;  %v1588_v1 = vpop.f32.mrb[21].mxu1 }
0x1757   :  { %v4862_v44 = vadd.f32 %v1588_v1, %v1463_v49 }
0x1759   :  { %v1592_v2 = vpop.f32.mrb[22].mxu1 }
0x175a   :  { %v4864_v4 = vadd.f32 %v1592_v2, %v1459_v30  ;;  %v1594_v28 = vpop.f32.mrb[23].mxu1 }
0x175b   :  { %v4866_v41 = vadd.f32 %v1594_v28, %v1463_v49 }
0x175d   :  { %v1598_v9 = vpop.f32.mrb[24].mxu1 }
0x175e   :  { %v4868_v11 = vadd.f32 %v1598_v9, %v1459_v30  ;;  %v1600_v13 = vpop.f32.mrb[25].mxu1 }
0x175f   :  { %v1601_v15 = vadd.f32 %v1600_v13, %v1463_v49 }
0x1761   :  { %v1687_v14 = vadd.f32 %v3409_v45, %v1601_v15 }
0x1763   :  { %4045 = vtanh.f32 %v1687_v14  ;;  %v3028_v22 = vmul.f32 -1.442695, %v1687_v14 }
0x1764   :  { %4047 = vpow2.f32 %v3027_v8 }
0x176d   :  { %v4046_v16 = vpop.eup %4045 }
0x176e   :  { %1708 = vrot.lane.b32.xlu1 %v4046_v16, %s4172_s0  ;;  %v4048_v17 = vpop.eup %4047 }
0x176f   :  { %v1694_v20 = vadd.f32 1.0, %v4048_v17 }
0x1771   :  { %4049 = vrcp.f32 %v1694_v20 }
0x1772   :  { %4051 = vpow2.f32 %v3028_v22 }
0x177b   :  { %v4050_v27 = vpop.eup %4049 }
0x177c   :  { %v4052_v37 = vpop.eup %4051  ;;  %v1702_v35 = vmul.f32 0.0, %v4050_v27 }
0x177d   :  { %v1695_v32 = vadd.f32 1.0, %v4052_v37 }
0x177f   :  { %4053 = vrcp.f32 %v1695_v32 }
0x1789   :  { %v4054_v34 = vpop.eup %4053 }
0x178a   :  { %v1703_v45 = vmul.f32 0.0, %v4054_v34 }
0x17c3   :  { %v1707_v29 = vpop.permute.xlu0 %1706 }
0x17c4   :  { %v1712_v33 = vmul.f32 %v4050_v27, %v1707_v29 }
0x17c6   :  { %1716 = vrot.lane.b32.xlu0 %v1712_v33, %s4172_s0 }
0x17e0   :  { %v1709_v18 = vpop.permute.xlu1 %1708 }
0x17e1   :  { %v1713_v50 = vmul.f32 %v4054_v34, %v1709_v18 }
0x17e3   :  { %1718 = vrot.lane.b32.xlu1 %v1713_v50, %s4172_s0 }
0x1838   :  { %v1717_v38 = vpop.permute.xlu0 %1716 }
0x1839   :  { %v4873_v40 = vadd.f32 %v1717_v38, %v1702_v35 }
0x183b   :  { %4055 = vtanh.f32 %v4873_v40 }
0x1845   :  { %v4056_v42 = vpop.eup %4055 }
0x1846   :  { %1728 = vrot.lane.b32.xlu0 %v4056_v42, %s4172_s0 }
0x1855   :  { %v1719_v47 = vpop.permute.xlu1 %1718 }
0x1856   :  { %v1723_v39 = vadd.f32 %v1719_v47, %v1703_v45 }
0x1858   :  { %4057 = vtanh.f32 %v1723_v39 }
0x1862   :  { %v4058_v30 = vpop.eup %4057 }
0x1863   :  { %1730 = vrot.lane.b32.xlu1 %v4058_v30, %s4172_s0 }
0x18b8   :  { %v1729_v49 = vpop.permute.xlu0 %1728 }
0x18b9   :  { %v1734_v51 = vmul.f32 %v4050_v27, %v1729_v49 }
0x18bb   :  { %1738 = vrot.lane.b32.xlu0 %v1734_v51, %s4174_s17  ;;  %1744 = vrot.lane.b32.xlu1 %v1734_v51, %s4173_s3 }
0x18d5   :  { %v1731_v52 = vpop.permute.xlu1 %1730 }
0x18d6   :  { %v1735_v53 = vmul.f32 %v4054_v34, %v1731_v52 }
0x18d8   :  { %1746 = vrot.lane.b32.xlu1 %v1735_v53, %s4173_s3  ;;  %1740 = vrot.lane.b32.xlu0 %v1735_v53, %s4174_s17 }
0x192d   :  { %v1739_v55 = vpop.permute.xlu0 %1738  ;;  %v1745_v43 = vpop.permute.xlu1 %1744 }
0x192e   :  { %1754 = vst.msk [vmem:[#allocation2] sm:$0xff] %vm375_vm1, %v1739_v55  ;;  %v1750_v56 = vsel %vm375_vm1, %v1739_v55, %v1745_v43 }
0x192f   :  { %v1752_v46 = vmul.f32 %v4483_v25, %v1750_v56 }
0x1931   :  { %3426 = vmatprep.mubr.msk.f32.mxu0 %vm232_vm2, %v1752_v46 }
0x194a   :  { %v1741_v10 = vpop.permute.xlu0 %1740  ;;  %v1747_v7 = vpop.permute.xlu1 %1746 }
0x194b   :  { %v1751_v48 = vsel %vm375_vm1, %v1741_v10, %v1747_v7  ;;  %1755 = vst.msk [vmem:[#allocation2 + $0x38] sm:$0xff] %vm381_vm4, %v1747_v7 }
0x194c   :  { %v1753_v60 = vmul.f32 %v4490_v6, %v1751_v48 }
0x194e   :  { %3427 = vmatmul.mubr.msk.f32.vlgmr.msra.gmra.mrb[24].mxu0 %vm232_vm2, %v1753_v60 }
0x194f   :  { %3808 = vmatpush3.bf16.msra.mxu0 %v4722_v24 }
0x1950   :  { %3810 = vmatprep.subr.bf16.mxu0 %v4743_v63 }
0x1953   :  { %3812 = vmatpush3.bf16.msra.mxu0 %v4743_v63 }
0x1954   :  { %3814 = vmatprep.subr.bf16.mxu0 %v4768_v5 }
0x1957   :  { %3816 = vmatpush3.bf16.msra.mxu0 %v4768_v5 }
0x1958   :  { %3818 = vmatprep.subr.bf16.mxu0 %v4790_v19 }
0x195b   :  { %3820 = vmatpush3.bf16.msra.mxu0 %v4790_v19 }
0x195c   :  { %3838 = vmatprep.subr.bf16.mxu0 %v4722_v24 }
0x1a21   :  { %v3428_v61 = vpop.f32.mrb[24].mxu0 }
0x1a22   :  { %v1838_v23 = vadd.f32 %v3428_v61, %v4866_v41  ;;  %v1828_v31 = vpop.f32.mrb[25].mxu0 }
0x1a23   :  { %v1837_v1 = vadd.f32 %v1828_v31, %v4843_v26 }
0x1a24   :  { %4059 = vtanh.f32 %v1838_v23  ;;  %v3032_v9 = vmul.f32 -1.442695, %v1838_v23 }
0x1a25   :  { %4061 = vtanh.f32 %v1837_v1  ;;  %v3031_v13 = vmul.f32 -1.442695, %v1837_v1 }
0x1a26   :  { %4063 = vpow2.f32 %v3032_v9 }
0x1a27   :  { %4065 = vpow2.f32 %v3031_v13 }
0x1a2e   :  { %v4060_v2 = vpop.eup %4059 }
0x1a2f   :  { %v4062_v28 = vpop.eup %4061  ;;  %1859 = vrot.lane.b32.xlu1 %v4060_v2, %s4172_s0 }
0x1a30   :  { %1857 = vrot.lane.b32.xlu0 %v4062_v28, %s4172_s0  ;;  %v4064_v15 = vpop.eup %4063 }
0x1a31   :  { %v4066_v14 = vpop.eup %4065  ;;  %v1846_v16 = vadd.f32 1.0, %v4064_v15 }
0x1a32   :  { %v1845_v8 = vadd.f32 1.0, %v4066_v14 }
0x1a33   :  { %4067 = vrcp.f32 %v1846_v16 }
0x1a34   :  { %4069 = vrcp.f32 %v1845_v8 }
0x1a3d   :  { %v4068_v41 = vpop.eup %4067 }
0x1a3e   :  { %v4070_v17 = vpop.eup %4069  ;;  %v1854_v29 = vmul.f32 %v4068_v41, %v1723_v39 }
0x1a3f   :  { %v1853_v37 = vmul.f32 %v4070_v17, %v4873_v40 }
0x1aa1   :  { %v1860_v26 = vpop.permute.xlu1 %1859 }
0x1aa2   :  { %v1864_v20 = vmul.f32 %v4068_v41, %v1860_v26  ;;  %v1858_v22 = vpop.permute.xlu0 %1857 }
0x1aa3   :  { %v1863_v27 = vmul.f32 %v4070_v17, %v1858_v22 }
0x1aa4   :  { %1869 = vrot.lane.b32.xlu1 %v1864_v20, %s4172_s0 }
0x1aa5   :  { %1867 = vrot.lane.b32.xlu0 %v1863_v27, %s4172_s0 }
0x1b16   :  { %v1870_v33 = vpop.permute.xlu1 %1869 }
0x1b17   :  { %v4905_v32 = vadd.f32 %v1870_v33, %v1854_v29  ;;  %v1868_v34 = vpop.permute.xlu0 %1867 }
0x1b18   :  { %v4907_v18 = vadd.f32 %v1868_v34, %v1853_v37 }
0x1b19   :  { %4071 = vtanh.f32 %v4905_v32 }
0x1b1a   :  { %4073 = vtanh.f32 %v4907_v18 }
0x1b23   :  { %v4072_v50 = vpop.eup %4071 }
0x1b24   :  { %v4074_v35 = vpop.eup %4073  ;;  %1881 = vrot.lane.b32.xlu1 %v4072_v50, %s4172_s0 }
0x1b25   :  { %1879 = vrot.lane.b32.xlu0 %v4074_v35, %s4172_s0 }
0x1b96   :  { %v1882_v45 = vpop.permute.xlu1 %1881 }
0x1b97   :  { %v1880_v38 = vpop.permute.xlu0 %1879  ;;  %v1886_v40 = vmul.f32 %v4068_v41, %v1882_v45 }
0x1b98   :  { %v1885_v42 = vmul.f32 %v4070_v17, %v1880_v38 }
0x1b9a   :  { %1895 = vrot.lane.b32.xlu1 %v1885_v42, %s4173_s3  ;;  %1889 = vrot.lane.b32.xlu0 %v1885_v42, %s4174_s17 }
0x1b9e   :  { %1897 = vrot.lane.b32.xlu1 %v1886_v40, %s4173_s3  ;;  %1891 = vrot.lane.b32.xlu0 %v1886_v40, %s4174_s17 }
0x1c0c   :  { %v1896_v47 = vpop.permute.xlu1 %1895  ;;  %v1890_v39 = vpop.permute.xlu0 %1889 }
0x1c0d   :  { %v1901_v30 = vsel %vm375_vm1, %v1890_v39, %v1896_v47  ;;  %1905 = vst.msk [vmem:[#allocation2 + $0x8] sm:$0xff] %vm375_vm1, %v1890_v39 }
0x1c0e   :  { %v1903_v49 = vmul.f32 %v4483_v25, %v1901_v30 }
0x1c10   :  { %v1898_v51 = vpop.permute.xlu1 %1897  ;;  %3445 = vmatprep.mubr.msk.f32.mxu1 %vm232_vm2, %v1903_v49  ;;  %v1892_v52 = vpop.permute.xlu0 %1891 }
0x1c11   :  { %1906 = vst.msk [vmem:[#allocation2 + $0x30] sm:$0xff] %vm381_vm4, %v1898_v51  ;;  %v1902_v53 = vsel %vm375_vm1, %v1892_v52, %v1898_v51 }
0x1c12   :  { %v1904_v55 = vmul.f32 %v4490_v6, %v1902_v53 }
0x1c14   :  { %3446 = vmatmul.mubr.msk.f32.vlgmr.msra.gmra.mrb[26].mxu1 %vm232_vm2, %v1904_v55 }
0x1c15   :  { %3824 = vmatpush3.bf16.msra.mxu1 %v4722_v24 }
0x1c16   :  { %3826 = vmatprep.subr.bf16.mxu1 %v4743_v63 }
0x1c19   :  { %3828 = vmatpush3.bf16.msra.mxu1 %v4743_v63 }
0x1c1a   :  { %3830 = vmatprep.subr.bf16.mxu1 %v4768_v5 }
0x1c1d   :  { %3832 = vmatpush3.bf16.msra.mxu1 %v4768_v5 }
0x1c1e   :  { %3834 = vmatprep.subr.bf16.mxu1 %v4790_v19 }
0x1c21   :  { %3836 = vmatpush3.bf16.msra.mxu1 %v4790_v19 }
0x1c22   :  { %3854 = vmatprep.subr.bf16.mxu1 %v4722_v24 }
0x1ce7   :  { %v3447_v43 = vpop.f32.mrb[26].mxu1 }
0x1ce8   :  { %v1989_v56 = vadd.f32 %v3447_v43, %v4862_v44  ;;  %v1979_v46 = vpop.f32.mrb[27].mxu1 }
0x1ce9   :  { %v1988_v10 = vadd.f32 %v1979_v46, %v4847_v58 }
0x1cea   :  { %4075 = vtanh.f32 %v1989_v56  ;;  %v3036_v60 = vmul.f32 -1.442695, %v1989_v56 }
0x1ceb   :  { %4077 = vtanh.f32 %v1988_v10  ;;  %v3035_v61 = vmul.f32 -1.442695, %v1988_v10 }
0x1cec   :  { %4079 = vpow2.f32 %v3036_v60 }
0x1ced   :  { %4081 = vpow2.f32 %v3035_v61 }
0x1cf4   :  { %v4076_v7 = vpop.eup %4075 }
0x1cf5   :  { %v4078_v48 = vpop.eup %4077  ;;  %2010 = vrot.lane.b32.xlu1 %v4076_v7, %s4172_s0 }
0x1cf6   :  { %2008 = vrot.lane.b32.xlu0 %v4078_v48, %s4172_s0  ;;  %v4080_v23 = vpop.eup %4079 }
0x1cf7   :  { %v4082_v31 = vpop.eup %4081  ;;  %v1997_v1 = vadd.f32 1.0, %v4080_v23 }
0x1cf8   :  { %v1996_v2 = vadd.f32 1.0, %v4082_v31 }
0x1cf9   :  { %4083 = vrcp.f32 %v1997_v1 }
0x1cfa   :  { %4085 = vrcp.f32 %v1996_v2 }
0x1d03   :  { %v4084_v44 = vpop.eup %4083 }
0x1d04   :  { %v4086_v28 = vpop.eup %4085  ;;  %v2005_v14 = vmul.f32 %v4084_v44, %v4905_v32 }
0x1d05   :  { %v2004_v8 = vmul.f32 %v4086_v28, %v4907_v18 }
0x1d67   :  { %v2011_v58 = vpop.permute.xlu1 %2010 }
0x1d68   :  { %v2015_v9 = vmul.f32 %v4084_v44, %v2011_v58  ;;  %v2009_v13 = vpop.permute.xlu0 %2008 }
0x1d69   :  { %v2014_v15 = vmul.f32 %v4086_v28, %v2009_v13 }
0x1d6a   :  { %2020 = vrot.lane.b32.xlu1 %v2015_v9, %s4172_s0 }
0x1d6b   :  { %2018 = vrot.lane.b32.xlu0 %v2014_v15, %s4172_s0 }
0x1ddc   :  { %v2021_v16 = vpop.permute.xlu1 %2020 }
0x1ddd   :  { %v4941_v41 = vadd.f32 %v2021_v16, %v2005_v14  ;;  %v2019_v26 = vpop.permute.xlu0 %2018 }
0x1dde   :  { %v4943_v17 = vadd.f32 %v2019_v26, %v2004_v8 }
0x1ddf   :  { %4087 = vtanh.f32 %v4941_v41 }
0x1de0   :  { %4089 = vtanh.f32 %v4943_v17 }
0x1de9   :  { %v4088_v20 = vpop.eup %4087 }
0x1dea   :  { %v4090_v22 = vpop.eup %4089  ;;  %2032 = vrot.lane.b32.xlu1 %v4088_v20, %s4172_s0 }
0x1deb   :  { %2030 = vrot.lane.b32.xlu0 %v4090_v22, %s4172_s0 }
0x1e5c   :  { %v2033_v33 = vpop.permute.xlu1 %2032 }
0x1e5d   :  { %v2031_v27 = vpop.permute.xlu0 %2030  ;;  %v2037_v37 = vmul.f32 %v4084_v44, %v2033_v33 }
0x1e5e   :  { %v2036_v29 = vmul.f32 %v4086_v28, %v2031_v27 }
0x1e60   :  { %2046 = vrot.lane.b32.xlu1 %v2036_v29, %s4173_s3  ;;  %2040 = vrot.lane.b32.xlu0 %v2036_v29, %s4174_s17 }
0x1e64   :  { %2048 = vrot.lane.b32.xlu1 %v2037_v37, %s4173_s3  ;;  %2042 = vrot.lane.b32.xlu0 %v2037_v37, %s4174_s17 }
0x1ed2   :  { %v2047_v32 = vpop.permute.xlu1 %2046  ;;  %v2041_v34 = vpop.permute.xlu0 %2040 }
0x1ed3   :  { %v2052_v18 = vsel %vm375_vm1, %v2041_v34, %v2047_v32  ;;  %2056 = vst.msk [vmem:[#allocation2 + $0x10] sm:$0xff] %vm375_vm1, %v2041_v34 }
0x1ed4   :  { %v2054_v50 = vmul.f32 %v4483_v25, %v2052_v18 }
0x1ed6   :  { %v2049_v35 = vpop.permute.xlu1 %2048  ;;  %3464 = vmatprep.mubr.msk.f32.mxu0 %vm232_vm2, %v2054_v50  ;;  %v2043_v38 = vpop.permute.xlu0 %2042 }
0x1ed7   :  { %2057 = vst.msk [vmem:[#allocation2 + $0x28] sm:$0xff] %vm381_vm4, %v2049_v35  ;;  %v2053_v42 = vsel %vm375_vm1, %v2043_v38, %v2049_v35 }
0x1ed8   :  { %v2055_v45 = vmul.f32 %v4490_v6, %v2053_v42 }
0x1eda   :  { %3465 = vmatmul.mubr.msk.f32.vlgmr.msra.gmra.mrb[26].mxu0 %vm232_vm2, %v2055_v45 }
0x1edb   :  { %3840 = vmatpush3.bf16.msra.mxu0 %v4722_v24 }
0x1edc   :  { %3842 = vmatprep.subr.bf16.mxu0 %v4743_v63 }
0x1edf   :  { %3844 = vmatpush3.bf16.msra.mxu0 %v4743_v63 }
0x1ee0   :  { %3846 = vmatprep.subr.bf16.mxu0 %v4768_v5 }
0x1ee3   :  { %3848 = vmatpush3.bf16.msra.mxu0 %v4768_v5 }
0x1ee4   :  { %3850 = vmatprep.subr.bf16.mxu0 %v4790_v19 }
0x1ee7   :  { %3852 = vmatpush3.bf16.msra.mxu0 %v4790_v19 }
0x1ee8   :  { %3870 = vmatprep.subr.bf16.mxu0 %v4722_v24 }
0x1fad   :  { %v3466_v40 = vpop.f32.mrb[26].mxu0 }
0x1fae   :  { %v2140_v47 = vadd.f32 %v3466_v40, %v4858_v0  ;;  %v2130_v39 = vpop.f32.mrb[27].mxu0 }
0x1faf   :  { %v2139_v30 = vadd.f32 %v2130_v39, %v4851_v12 }
0x1fb0   :  { %4091 = vtanh.f32 %v2140_v47  ;;  %v3040_v52 = vmul.f32 -1.442695, %v2140_v47 }
0x1fb1   :  { %4093 = vtanh.f32 %v2139_v30  ;;  %v3039_v53 = vmul.f32 -1.442695, %v2139_v30 }
0x1fb2   :  { %4095 = vpow2.f32 %v3040_v52 }
0x1fb3   :  { %4097 = vpow2.f32 %v3039_v53 }
0x1fba   :  { %v4092_v49 = vpop.eup %4091 }
0x1fbb   :  { %v4094_v51 = vpop.eup %4093  ;;  %2161 = vrot.lane.b32.xlu1 %v4092_v49, %s4172_s0 }
0x1fbc   :  { %2159 = vrot.lane.b32.xlu0 %v4094_v51, %s4172_s0  ;;  %v4096_v55 = vpop.eup %4095 }
0x1fbd   :  { %v4098_v43 = vpop.eup %4097  ;;  %v2148_v56 = vadd.f32 1.0, %v4096_v55 }
0x1fbe   :  { %v2147_v46 = vadd.f32 1.0, %v4098_v43 }
0x1fbf   :  { %4099 = vrcp.f32 %v2148_v56 }
0x1fc0   :  { %4101 = vrcp.f32 %v2147_v46 }
0x1fc9   :  { %v4100_v0 = vpop.eup %4099 }
0x1fca   :  { %v4102_v10 = vpop.eup %4101  ;;  %v2156_v61 = vmul.f32 %v4100_v0, %v4941_v41 }
0x1fcb   :  { %v2155_v31 = vmul.f32 %v4102_v10, %v4943_v17 }
0x202d   :  { %v2162_v12 = vpop.permute.xlu1 %2161 }
0x202e   :  { %v2166_v7 = vmul.f32 %v4100_v0, %v2162_v12  ;;  %v2160_v48 = vpop.permute.xlu0 %2159 }
0x202f   :  { %v2165_v60 = vmul.f32 %v4102_v10, %v2160_v48 }
0x2030   :  { %2171 = vrot.lane.b32.xlu1 %v2166_v7, %s4172_s0 }
0x2031   :  { %2169 = vrot.lane.b32.xlu0 %v2165_v60, %s4172_s0 }
0x20a2   :  { %v2172_v23 = vpop.permute.xlu1 %2171 }
0x20a3   :  { %v4977_v1 = vadd.f32 %v2172_v23, %v2156_v61  ;;  %v2170_v2 = vpop.permute.xlu0 %2169 }
0x20a4   :  { %v4979_v44 = vadd.f32 %v2170_v2, %v2155_v31 }
0x20a5   :  { %4103 = vtanh.f32 %v4977_v1 }
0x20a6   :  { %4105 = vtanh.f32 %v4979_v44 }
0x20af   :  { %v4104_v58 = vpop.eup %4103 }
0x20b0   :  { %v4106_v28 = vpop.eup %4105  ;;  %2183 = vrot.lane.b32.xlu1 %v4104_v58, %s4172_s0 }
0x20b1   :  { %2181 = vrot.lane.b32.xlu0 %v4106_v28, %s4172_s0 }
0x2122   :  { %v2184_v15 = vpop.permute.xlu1 %2183 }
0x2123   :  { %v2182_v9 = vpop.permute.xlu0 %2181  ;;  %v2188_v14 = vmul.f32 %v4100_v0, %v2184_v15 }
0x2124   :  { %v2187_v13 = vmul.f32 %v4102_v10, %v2182_v9 }
0x2126   :  { %2197 = vrot.lane.b32.xlu1 %v2187_v13, %s4173_s3  ;;  %2191 = vrot.lane.b32.xlu0 %v2187_v13, %s4174_s17 }
0x212a   :  { %2199 = vrot.lane.b32.xlu1 %v2188_v14, %s4173_s3  ;;  %2193 = vrot.lane.b32.xlu0 %v2188_v14, %s4174_s17 }
0x2198   :  { %v2198_v16 = vpop.permute.xlu1 %2197  ;;  %v2192_v8 = vpop.permute.xlu0 %2191 }
0x2199   :  { %v2203_v41 = vsel %vm375_vm1, %v2192_v8, %v2198_v16  ;;  %2207 = vst.msk [vmem:[#allocation2 + $0x18] sm:$0xff] %vm375_vm1, %v2192_v8 }
0x219a   :  { %v2205_v26 = vmul.f32 %v4483_v25, %v2203_v41 }
0x219c   :  { %v2200_v17 = vpop.permute.xlu1 %2199  ;;  %3483 = vmatprep.mubr.msk.f32.mxu1 %vm232_vm2, %v2205_v26  ;;  %v2194_v20 = vpop.permute.xlu0 %2193 }
0x219d   :  { %2208 = vst.msk [vmem:[#allocation2 + $0x20] sm:$0xff] %vm381_vm4, %v2200_v17  ;;  %v2204_v22 = vsel %vm375_vm1, %v2194_v20, %v2200_v17 }
0x219e   :  { %v2206_v27 = vmul.f32 %v4490_v6, %v2204_v22 }
0x21a0   :  { %3484 = vmatmul.mubr.msk.f32.vlgmr.msra.gmra.mrb[28].mxu1 %vm232_vm2, %v2206_v27 }
0x21a1   :  { %3856 = vmatpush3.bf16.msra.mxu1 %v4722_v24 }
0x21a2   :  { %3858 = vmatprep.subr.bf16.mxu1 %v4743_v63 }
0x21a5   :  { %3860 = vmatpush3.bf16.msra.mxu1 %v4743_v63 }
0x21a6   :  { %3862 = vmatprep.subr.bf16.mxu1 %v4768_v5 }
0x21a9   :  { %3864 = vmatpush3.bf16.msra.mxu1 %v4768_v5 }
0x21aa   :  { %3866 = vmatprep.subr.bf16.mxu1 %v4790_v19 }
0x21ad   :  { %3868 = vmatpush3.bf16.msra.mxu1 %v4790_v19 }
0x2273   :  { %v3485_v29 = vpop.f32.mrb[28].mxu1 }
0x2274   :  { %v2291_v33 = vadd.f32 %v3485_v29, %v4853_v21  ;;  %v2281_v37 = vpop.f32.mrb[29].mxu1 }
0x2275   :  { %v2290_v32 = vadd.f32 %v2281_v37, %v4856_v62 }
0x2276   :  { %4107 = vtanh.f32 %v2291_v33  ;;  %v3044_v50 = vmul.f32 -1.442695, %v2291_v33 }
0x2277   :  { %4109 = vtanh.f32 %v2290_v32  ;;  %v3043_v35 = vmul.f32 -1.442695, %v2290_v32 }
0x2278   :  { %4111 = vpow2.f32 %v3044_v50 }
0x2279   :  { %4113 = vpow2.f32 %v3043_v35 }
0x2280   :  { %v4108_v34 = vpop.eup %4107 }
0x2281   :  { %v4110_v18 = vpop.eup %4109  ;;  %2312 = vrot.lane.b32.xlu1 %v4108_v34, %s4172_s0 }
0x2282   :  { %2310 = vrot.lane.b32.xlu0 %v4110_v18, %s4172_s0  ;;  %v4112_v38 = vpop.eup %4111 }
0x2283   :  { %v4114_v42 = vpop.eup %4113  ;;  %v2299_v45 = vadd.f32 1.0, %v4112_v38 }
0x2284   :  { %v2298_v40 = vadd.f32 1.0, %v4114_v42 }
0x2285   :  { %4115 = vrcp.f32 %v2299_v45 }
0x2286   :  { %4117 = vrcp.f32 %v2298_v40 }
0x228f   :  { %v4116_v21 = vpop.eup %4115 }
0x2290   :  { %v4118_v47 = vpop.eup %4117  ;;  %v2307_v51 = vmul.f32 %v4116_v21, %v4977_v1 }
0x2291   :  { %v2306_v53 = vmul.f32 %v4118_v47, %v4979_v44 }
0x22f3   :  { %v2313_v62 = vpop.permute.xlu1 %2312 }
0x22f4   :  { %v2317_v39 = vmul.f32 %v4116_v21, %v2313_v62  ;;  %v2311_v30 = vpop.permute.xlu0 %2310 }
0x22f5   :  { %v2316_v49 = vmul.f32 %v4118_v47, %v2311_v30 }
0x22f6   :  { %2322 = vrot.lane.b32.xlu1 %v2317_v39, %s4172_s0 }
0x22f7   :  { %2320 = vrot.lane.b32.xlu0 %v2316_v49, %s4172_s0 }
0x2368   :  { %v2323_v52 = vpop.permute.xlu1 %2322 }
0x2369   :  { %v5012_v55 = vadd.f32 %v2323_v52, %v2307_v51  ;;  %v2321_v43 = vpop.permute.xlu0 %2320 }
0x236a   :  { %v5014_v56 = vadd.f32 %v2321_v43, %v2306_v53 }
0x236b   :  { %4119 = vtanh.f32 %v5012_v55 }
0x236c   :  { %4121 = vtanh.f32 %v5014_v56 }
0x2375   :  { %v4120_v46 = vpop.eup %4119 }
0x2376   :  { %v4122_v0 = vpop.eup %4121  ;;  %2334 = vrot.lane.b32.xlu1 %v4120_v46, %s4172_s0 }
0x2377   :  { %2332 = vrot.lane.b32.xlu0 %v4122_v0, %s4172_s0 }
0x23e8   :  { %v2335_v7 = vpop.permute.xlu1 %2334 }
0x23e9   :  { %v2333_v12 = vpop.permute.xlu0 %2332  ;;  %v2339_v48 = vmul.f32 %v4116_v21, %v2335_v7 }
0x23ea   :  { %v2338_v10 = vmul.f32 %v4118_v47, %v2333_v12 }
0x23ec   :  { %2348 = vrot.lane.b32.xlu1 %v2338_v10, %s4173_s3  ;;  %2342 = vrot.lane.b32.xlu0 %v2338_v10, %s4174_s17 }
0x23f0   :  { %2350 = vrot.lane.b32.xlu1 %v2339_v48, %s4173_s3  ;;  %2344 = vrot.lane.b32.xlu0 %v2339_v48, %s4174_s17 }
0x245e   :  { %v2349_v60 = vpop.permute.xlu1 %2348  ;;  %v2343_v61 = vpop.permute.xlu0 %2342 }
0x245f   :  { %v2354_v23 = vsel %vm375_vm1, %v2343_v61, %v2349_v60  ;;  %2358 = vst.msk [vmem:[#allocation2 + $0x20] sm:$0xff] %vm375_vm1, %v2343_v61 }
0x2460   :  { %v2356_v31 = vmul.f32 %v4483_v25, %v2354_v23 }
0x2462   :  { %v2351_v1 = vpop.permute.xlu1 %2350  ;;  %3502 = vmatprep.mubr.msk.f32.mxu0 %vm232_vm2, %v2356_v31  ;;  %v2345_v2 = vpop.permute.xlu0 %2344 }
0x2463   :  { %2359 = vst.msk [vmem:[#allocation2 + $0x18] sm:$0xff] %vm381_vm4, %v2351_v1  ;;  %v2355_v44 = vsel %vm375_vm1, %v2345_v2, %v2351_v1 }
0x2464   :  { %v2357_v58 = vmul.f32 %v4490_v6, %v2355_v44 }
0x2466   :  { %3503 = vmatmul.mubr.msk.f32.vlgmr.msra.gmra.mrb[28].mxu0 %vm232_vm2, %v2357_v58 }
0x2467   :  { %3872 = vmatpush3.bf16.msra.mxu0 %v4722_v24 }
0x2468   :  { %3874 = vmatprep.subr.bf16.mxu0 %v4743_v63 }
0x246b   :  { %3876 = vmatpush3.bf16.msra.mxu0 %v4743_v63 }
0x246c   :  { %3878 = vmatprep.subr.bf16.mxu0 %v4768_v5 }
0x246f   :  { %3880 = vmatpush3.bf16.msra.mxu0 %v4768_v5 }
0x2470   :  { %3882 = vmatprep.subr.bf16.mxu0 %v4790_v19 }
0x2473   :  { %3884 = vmatpush3.bf16.msra.mxu0 %v4790_v19 }
0x2539   :  { %v3504_v28 = vpop.f32.mrb[28].mxu0 }
0x253a   :  { %v2442_v9 = vadd.f32 %v3504_v28, %v4849_v59  ;;  %v2432_v13 = vpop.f32.mrb[29].mxu0 }
0x253b   :  { %v2441_v15 = vadd.f32 %v2432_v13, %v4860_v36 }
0x253c   :  { %4123 = vtanh.f32 %v2442_v9  ;;  %v3048_v63 = vmul.f32 -1.442695, %v2442_v9 }
0x253d   :  { %4125 = vtanh.f32 %v2441_v15  ;;  %v3047_v5 = vmul.f32 -1.442695, %v2441_v15 }
0x253e   :  { %4127 = vpow2.f32 %v3048_v63 }
0x253f   :  { %4129 = vpow2.f32 %v3047_v5 }
0x2546   :  { %v4124_v24 = vpop.eup %4123 }
0x2547   :  { %v4126_v14 = vpop.eup %4125  ;;  %2463 = vrot.lane.b32.xlu1 %v4124_v24, %s4172_s0 }
0x2548   :  { %2461 = vrot.lane.b32.xlu0 %v4126_v14, %s4172_s0  ;;  %v4128_v16 = vpop.eup %4127 }
0x2549   :  { %v4130_v19 = vpop.eup %4129  ;;  %v2450_v8 = vadd.f32 1.0, %v4128_v16 }
0x254a   :  { %v2449_v41 = vadd.f32 1.0, %v4130_v19 }
0x254b   :  { %4131 = vrcp.f32 %v2450_v8 }
0x254c   :  { %4133 = vrcp.f32 %v2449_v41 }
0x2555   :  { %v4132_v59 = vpop.eup %4131 }
0x2556   :  { %v4134_v26 = vpop.eup %4133  ;;  %v2458_v27 = vmul.f32 %v4132_v59, %v5012_v55 }
0x2557   :  { %v2457_v33 = vmul.f32 %v4134_v26, %v5014_v56 }
0x25b9   :  { %v2464_v36 = vpop.permute.xlu1 %2463 }
0x25ba   :  { %v2468_v17 = vmul.f32 %v4132_v59, %v2464_v36  ;;  %v2462_v20 = vpop.permute.xlu0 %2461 }
0x25bb   :  { %v2467_v22 = vmul.f32 %v4134_v26, %v2462_v20 }
0x25bc   :  { %2473 = vrot.lane.b32.xlu1 %v2468_v17, %s4172_s0 }
0x25bd   :  { %2471 = vrot.lane.b32.xlu0 %v2467_v22, %s4172_s0 }
0x262e   :  { %v2474_v29 = vpop.permute.xlu1 %2473 }
0x262f   :  { %v2478_v37 = vadd.f32 %v2474_v29, %v2458_v27  ;;  %v2472_v32 = vpop.permute.xlu0 %2471 }
0x2630   :  { %v2477_v34 = vadd.f32 %v2472_v32, %v2457_v33 }
0x2631   :  { %4135 = vtanh.f32 %v2478_v37 }
0x2632   :  { %4137 = vtanh.f32 %v2477_v34 }
0x263b   :  { %v4136_v18 = vpop.eup %4135 }
0x263c   :  { %v4138_v50 = vpop.eup %4137  ;;  %2485 = vrot.lane.b32.xlu1 %v4136_v18, %s4172_s0 }
0x263d   :  { %2483 = vrot.lane.b32.xlu0 %v4138_v50, %s4172_s0 }
0x26ae   :  { %v2486_v42 = vpop.permute.xlu1 %2485 }
0x26af   :  { %v2484_v35 = vpop.permute.xlu0 %2483  ;;  %v2490_v45 = vmul.f32 %v4132_v59, %v2486_v42  ;;  %v2804_v42 = vld [vmem:[%s5173_s7] sm:$0xff] }
0x26b0   :  { %v2489_v38 = vmul.f32 %v4134_v26, %v2484_v35 }
0x26b2   :  { %2499 = vrot.lane.b32.xlu1 %v2489_v38, %s4173_s3  ;;  %2493 = vrot.lane.b32.xlu0 %v2489_v38, %s4174_s17 }
0x26b6   :  { %2501 = vrot.lane.b32.xlu1 %v2490_v45, %s4173_s3  ;;  %2495 = vrot.lane.b32.xlu0 %v2490_v45, %s4174_s17  ;;  %v2805_v45 = vld [vmem:[%s5173_s7 + $0x8] sm:$0xff] }
0x2724   :  { %v2500_v40 = vpop.permute.xlu1 %2499  ;;  %v2494_v21 = vpop.permute.xlu0 %2493 }
0x2725   :  { %v2505_v62 = vsel %vm375_vm1, %v2494_v21, %v2500_v40  ;;  %2509 = vst.msk [vmem:[#allocation2 + $0x28] sm:$0xff] %vm375_vm1, %v2494_v21  ;;  %v2806_v40 = vld [vmem:[%s5173_s7 + $0x10] sm:$0xff]  ;;  %v3886_v21 = vpack.c.bf16 %v2805_v45, %v2804_v42 }
0x2726   :  { %v2507_v47 = vmul.f32 %v4483_v25, %v2505_v62  ;;  %v2807_v62 = vld [vmem:[%s5173_s7 + $0x18] sm:$0xff] }
0x2728   :  { %v2502_v39 = vpop.permute.xlu1 %2501  ;;  %3521 = vmatprep.mubr.msk.f32.mxu1 %vm232_vm2, %v2507_v47  ;;  %v2496_v30 = vpop.permute.xlu0 %2495  ;;  %v3889_v47 = vpack.c.bf16 %v2807_v62, %v2806_v40 }
0x2729   :  { %2510 = vst.msk [vmem:[#allocation2 + $0x10] sm:$0xff] %vm381_vm4, %v2502_v39  ;;  %v2506_v49 = vsel %vm375_vm1, %v2496_v30, %v2502_v39 }
0x272a   :  { %v2508_v51 = vmul.f32 %v4490_v6, %v2506_v49 }
0x272c   :  { %3522 = vmatmul.mubr.msk.f32.vlgmr.msra.gmra.mrb[30].mxu1 %vm232_vm2, %v2508_v51 }
0x272d   :  { %3559 = vmatprep.mubr.msk.f32.mxu1 %vm4176_vm5, %v4171_v3 }
0x27ff   :  { %v3523_v52 = vpop.f32.mrb[30].mxu1 }
0x2800   :  { %v2593_v53 = vadd.f32 %v3523_v52, %v4845_v57  ;;  %v2583_v55 = vpop.f32.mrb[31].mxu1  ;;  %v2808_v52 = vld [vmem:[%s5173_s7 + $0x20] sm:$0xff] }
0x2801   :  { %v2592_v43 = vadd.f32 %v2583_v55, %v4864_v4 }
0x2802   :  { %4139 = vtanh.f32 %v2593_v53  ;;  %v3052_v0 = vmul.f32 -1.442695, %v2593_v53  ;;  %v2809_v53 = vld [vmem:[%s5173_s7 + $0x28] sm:$0xff] }
0x2803   :  { %4141 = vtanh.f32 %v2592_v43  ;;  %v3051_v12 = vmul.f32 -1.442695, %v2592_v43  ;;  %v3892_v55 = vpack.c.bf16 %v2809_v53, %v2808_v52 }
0x2804   :  { %4143 = vpow2.f32 %v3052_v0 }
0x2805   :  { %4145 = vpow2.f32 %v3051_v12 }
0x280c   :  { %v4140_v56 = vpop.eup %4139 }
0x280d   :  { %v4142_v46 = vpop.eup %4141  ;;  %2614 = vrot.lane.b32.xlu1 %v4140_v56, %s4172_s0  ;;  %v2810_v56 = vld [vmem:[%s5173_s7 + $0x30] sm:$0xff] }
0x280e   :  { %2612 = vrot.lane.b32.xlu0 %v4142_v46, %s4172_s0  ;;  %v4144_v10 = vpop.eup %4143  ;;  %v2811_v46 = vld [vmem:[%s5173_s7 + $0x38] sm:$0xff] }
0x280f   :  { %v4146_v7 = vpop.eup %4145  ;;  %v2601_v48 = vadd.f32 1.0, %v4144_v10  ;;  %v3895_v0 = vpack.c.bf16 %v2811_v46, %v2810_v56 }
0x2810   :  { %v2600_v60 = vadd.f32 1.0, %v4146_v7 }
0x2811   :  { %4147 = vrcp.f32 %v2601_v48 }
0x2812   :  { %4149 = vrcp.f32 %v2600_v60 }
0x281b   :  { %v4148_v57 = vpop.eup %4147 }
0x281c   :  { %v4150_v61 = vpop.eup %4149  ;;  %v2609_v2 = vmul.f32 %v4148_v57, %v2478_v37 }
0x281d   :  { %v2608_v58 = vmul.f32 %v4150_v61, %v2477_v34 }
0x287f   :  { %v2615_v4 = vpop.permute.xlu1 %2614 }
0x2880   :  { %v2619_v23 = vmul.f32 %v4148_v57, %v2615_v4  ;;  %v2613_v31 = vpop.permute.xlu0 %2612 }
0x2881   :  { %v2618_v1 = vmul.f32 %v4150_v61, %v2613_v31 }
0x2882   :  { %2624 = vrot.lane.b32.xlu1 %v2619_v23, %s4172_s0 }
0x2883   :  { %2622 = vrot.lane.b32.xlu0 %v2618_v1, %s4172_s0  ;;  %v2894_v1 = vld [vmem:[%s5174_s9 + $0x8] sm:$0xff] }
0x28f4   :  { %v2625_v44 = vpop.permute.xlu1 %2624 }
0x28f5   :  { %v5067_v28 = vadd.f32 %v2625_v44, %v2609_v2  ;;  %v2623_v9 = vpop.permute.xlu0 %2622  ;;  %v2895_v44 = vld [vmem:[%s5174_s9 + $0x10] sm:$0xff] }
0x28f6   :  { %v2628_v13 = vadd.f32 %v2623_v9, %v2608_v58  ;;  %v2896_v58 = vld [vmem:[%s5174_s9 + $0x18] sm:$0xff]  ;;  %v2897_v9 = vld [vmem:[%s5174_s9 + $0x20] sm:$0xff] }
0x28f7   :  { %4151 = vtanh.f32 %v5067_v28 }
0x28f8   :  { %4153 = vtanh.f32 %v2628_v13 }
0x2901   :  { %v4152_v15 = vpop.eup %4151 }
0x2902   :  { %v4154_v24 = vpop.eup %4153  ;;  %2636 = vrot.lane.b32.xlu1 %v4152_v15, %s4172_s0 }
0x2903   :  { %2634 = vrot.lane.b32.xlu0 %v4154_v24, %s4172_s0 }
0x2974   :  { %v2637_v5 = vpop.permute.xlu1 %2636 }
0x2975   :  { %v2635_v14 = vpop.permute.xlu0 %2634  ;;  %v2641_v16 = vmul.f32 %v4148_v57, %v2637_v5 }
0x2976   :  { %v2640_v63 = vmul.f32 %v4150_v61, %v2635_v14  ;;  %v2899_v14 = vld [vmem:[%s5174_s9 + $0x30] sm:$0xff] }
0x2978   :  { %2650 = vrot.lane.b32.xlu1 %v2640_v63, %s4173_s3  ;;  %2644 = vrot.lane.b32.xlu0 %v2640_v63, %s4174_s17  ;;  %v2900_v63 = vld [vmem:[%s5174_s9 + $0x38] sm:$0xff] }
0x2979   :  { %v3907_v5 = vpack.c.bf16 %v2900_v63, %v2899_v14 }
0x297c   :  { %2652 = vrot.lane.b32.xlu1 %v2641_v16, %s4173_s3  ;;  %2646 = vrot.lane.b32.xlu0 %v2641_v16, %s4174_s17 }
0x29ea   :  { %v2651_v19 = vpop.permute.xlu1 %2650  ;;  %v2645_v8 = vpop.permute.xlu0 %2644 }
0x29eb   :  { %v2656_v41 = vsel %vm375_vm1, %v2645_v8, %v2651_v19  ;;  %2660 = vst.msk [vmem:[#allocation2 + $0x30] sm:$0xff] %vm375_vm1, %v2645_v8  ;;  %v3057_v8 = vld [vmem:[%s5175_s8] ss:$0 sm:$0xff] }
0x29ec   :  { %v2658_v59 = vmul.f32 %v4483_v25, %v2656_v41 }
0x29ee   :  { %v2653_v36 = vpop.permute.xlu1 %2652  ;;  %3540 = vmatprep.mubr.msk.f32.mxu0 %vm232_vm2, %v2658_v59  ;;  %v2647_v26 = vpop.permute.xlu0 %2646 }
0x29ef   :  { %2661 = vst.msk [vmem:[#allocation2 + $0x8] sm:$0xff] %vm381_vm4, %v2653_v36  ;;  %v2657_v17 = vsel %vm375_vm1, %v2647_v26, %v2653_v36 }
0x29f0   :  { %v2659_v20 = vmul.f32 %v4490_v6, %v2657_v17 }
0x29f2   :  { %3541 = vmatmul.mubr.msk.f32.vlgmr.msra.gmra.mrb[30].mxu0 %vm232_vm2, %v2659_v20  ;;  %v3059_v20 = vld [vmem:[%s5176_s10] ss:$0 sm:$0xff] }
0x29f3   :  { %3578 = vmatprep.mubr.msk.f32.mxu0 %vm4176_vm5, %v4171_v3  ;;  %v2893_v3 = vld [vmem:[%s5174_s9] sm:$0xff] }
0x29f4   :  { %v3898_v2 = vpack.c.bf16 %v2894_v1, %v2893_v3 }
0x2ac5   :  { %v3542_v22 = vpop.f32.mrb[30].mxu0 }
0x2ac6   :  { %v2744_v27 = vadd.f32 %v3542_v22, %v4841_v54  ;;  %v2734_v29 = vpop.f32.mrb[31].mxu0 }
0x2ac7   :  { %v2743_v33 = vadd.f32 %v2734_v29, %v4868_v11  ;;  %v4175_v11 = vmov 0.0|0.0  }
0x2ac8   :  { %3885 = vmatprep.subr.bf16.mxu1 %v4175_v11  ;;  %3897 = vmatprep.subr.bf16.mxu0 %v4175_v11  ;;  %v3056_v49 = vmul.f32 -1.442695, %v2744_v27 }
0x2ac9   :  { %4155 = vtanh.f32 %v2743_v33  ;;  %v3055_v37 = vmul.f32 -1.442695, %v2743_v33  ;;  %3887 = vmatpush3.bf16.msra.mxu1 %v3886_v21  ;;  %3899 = vmatpush3.bf16.msra.mxu0 %v3898_v2 }
0x2aca   :  { %3888 = vmatprep.subr.bf16.mxu1 %v4175_v11  ;;  %3900 = vmatprep.subr.bf16.mxu0 %v4175_v11 }
0x2acb   :  { %4157 = vpow2.f32 %v3055_v37 }
0x2acd   :  { %3890 = vmatpush3.bf16.msra.mxu1 %v3889_v47 }
0x2ace   :  { %3891 = vmatprep.subr.bf16.mxu1 %v4175_v11 }
0x2ad1   :  { %3893 = vmatpush3.bf16.msra.mxu1 %v3892_v55 }
0x2ad2   :  { %3894 = vmatprep.subr.bf16.mxu1 %v4175_v11 }
0x2ad3   :  { %v4156_v25 = vpop.eup %4155 }
0x2ad4   :  { %2763 = vrot.lane.b32.xlu0 %v4156_v25, %s4172_s0 }
0x2ad5   :  { %v4158_v32 = vpop.eup %4157  ;;  %3896 = vmatpush3.bf16.msra.mxu1 %v3895_v0 }
0x2ad6   :  { %v2751_v34 = vadd.f32 1.0, %v4158_v32 }
0x2ad8   :  { %4159 = vrcp.f32 %v2751_v34 }
0x2ae2   :  { %v4160_v18 = vpop.eup %4159 }
0x2ae3   :  { %v2759_v35 = vmul.f32 %v4160_v18, %v2628_v13  ;;  %v2898_v13 = vld [vmem:[%s5174_s9 + $0x28] sm:$0xff] }
0x2ae4   :  { %v3904_v15 = vpack.c.bf16 %v2898_v13, %v2897_v9 }
0x2b46   :  { %v2764_v50 = vpop.permute.xlu0 %2763 }
0x2b47   :  { %v2769_v6 = vmul.f32 %v4160_v18, %v2764_v50 }
0x2b49   :  { %2773 = vrot.lane.b32.xlu1 %v2769_v6, %s4172_s0 }
0x2bbb   :  { %v2774_v38 = vpop.permute.xlu1 %2773 }
0x2bbc   :  { %v2779_v54 = vadd.f32 %v2774_v38, %v2759_v35 }
0x2bbe   :  { %4161 = vtanh.f32 %v2779_v54 }
0x2bbf   :  { %4163 = vtanh.f32 %v2744_v27 }
0x2bc0   :  { %4165 = vpow2.f32 %v3056_v49 }
0x2bc8   :  { %v4162_v39 = vpop.eup %4161 }
0x2bc9   :  { %2785 = vrot.lane.b32.xlu0 %v4162_v39, %s4172_s0  ;;  %v4164_v30 = vpop.eup %4163 }
0x2bca   :  { %v4166_v51 = vpop.eup %4165 }
0x2bcb   :  { %v2752_v43 = vadd.f32 1.0, %v4166_v51 }
0x2bcd   :  { %2765 = vrot.lane.b32.xlu0 %v4164_v30, %s4172_s0  ;;  %4167 = vrcp.f32 %v2752_v43 }
0x2bd7   :  { %v4168_v7 = vpop.eup %4167 }
0x2bd8   :  { %v2760_v4 = vmul.f32 %v4168_v7, %v5067_v28  ;;  %v3901_v28 = vpack.c.bf16 %v2896_v58, %v2895_v44 }
0x2bda   :  { %3902 = vmatpush3.bf16.msra.mxu0 %v3901_v28 }
0x2bdb   :  { %3903 = vmatprep.subr.bf16.mxu0 %v4175_v11 }
0x2bde   :  { %3905 = vmatpush3.bf16.msra.mxu0 %v3904_v15 }
0x2bdf   :  { %3906 = vmatprep.subr.bf16.mxu0 %v4175_v11 }
0x2be2   :  { %3908 = vmatpush3.bf16.msra.mxu0 %v3907_v5 }
0x2c3b   :  { %v2786_v12 = vpop.permute.xlu0 %2785 }
0x2c3c   :  { %v2791_v10 = vmul.f32 %v4160_v18, %v2786_v12 }
0x2c3e   :  { %2794 = vrot.lane.b32.xlu1 %v2791_v10, %s4174_s17 }
0x2c3f   :  { %v2766_v48 = vpop.permute.xlu0 %2765 }
0x2c40   :  { %v2770_v60 = vmul.f32 %v4168_v7, %v2766_v48 }
0x2c42   :  { %2775 = vrot.lane.b32.xlu1 %v2770_v60, %s4172_s0 }
0x2cb0   :  { %v2795_v57 = vpop.permute.xlu1 %2794 }
0x2cb1   :  { %2797 = vst.msk [vmem:[#allocation2 + $0x38] sm:$0xff] %vm375_vm1, %v2795_v57 }
0x2cb4   :  { %v2776_v61 = vpop.permute.xlu1 %2775 }
0x2cb5   :  { %v2780_v23 = vadd.f32 %v2776_v61, %v2760_v4 }
0x2cb7   :  { %4169 = vtanh.f32 %v2780_v23 }
0x2cb8   :  { %v2803_v31 = vld [vmem:[#allocation2 + $0x38] sm:$0xff] }
0x2cb9   :  { %3560 = vmatmul.mubr.msk.f32.vlgmr.msra.gmra.mrb[32].mxu1 %vm232_vm2, %v2803_v31 }
0x2cc1   :  { %v4170_v24 = vpop.eup %4169 }
0x2cc2   :  { %2787 = vrot.lane.b32.xlu0 %v4170_v24, %s4172_s0 }
0x2d34   :  { %v2788_v16 = vpop.permute.xlu0 %2787 }
0x2d35   :  { %v2792_v19 = vmul.f32 %v4168_v7, %v2788_v16 }
0x2d37   :  { %2799 = vrot.lane.b32.xlu1 %v2792_v19, %s4173_s3 }
0x2d8c   :  { %v2888_v41 = vpop.f32.mrb[32].mxu1 }
0x2d8d   :  { %v2889_v59 = vadd.f32 %v3057_v8, %v2888_v41  ;;  %v3561_v36 = vpop.f32.mrb[33].mxu1 }
0x2d8f   :  { %v2892_v26 = vmax.f32 %v2889_v59, 0.0 }
0x2d91   :  { %3579 = vmatmul.mubr.msk.f32.vlgmr.msra.gmra.mrb[32].mxu0 %vm232_vm2, %v2892_v26 }
0x2da9   :  { %v2800_v17 = vpop.permute.xlu1 %2799 }
0x2daa   :  { %2802 = vst.msk [vmem:[#allocation2] sm:$0xff] %vm381_vm4, %v2800_v17 }
0x2e64   :  { %v2977_v22 = vpop.f32.mrb[32].mxu0 }
0x2e65   :  { %v2978_v27 = vadd.f32 %v3059_v20, %v2977_v22  ;;  %v3580_v29 = vpop.f32.mrb[33].mxu0 }
0x2e67   :  { %2982 = vst.msk [vmem:[%s5177_s11] sm:$0xff] %vm2981_vm6, %v2978_v27 }

</bundles_post_ra>
